<compile_context>
chip_gen: v7x
topology: tpu7x:2x2x1
jax: 0.10.0
libtpu: 0.0.40
codegen_flags: <defaults>
</compile_context>

<pallas_src>
import functools

import jax
import jax.numpy as jnp
from jax.experimental import pallas as pl
from jax.experimental.pallas import tpu as pltpu


def attn_pool_kernel(x_ref, pos_cls_ref, pos_x_ref, wq_ref, wk_ref, wv_ref,
                     bq_ref, bk_ref, bv_ref, wproj_ref, bproj_ref,
                     onehot_ref, onehot_t_ref, o_ref, *, scale):
    # x_ref:       (Bt, N, C)  bf16 spatial tokens, channels on lanes
    # pos_cls_ref: (1, C)      bf16 pos embed of the class token
    # pos_x_ref:   (N, C)      bf16 pos embed of the spatial tokens
    # wq/wk/wv:    (C, E)      bf16 (pre-transposed);  bq/bk/bv: (1, E) f32
    # wproj_ref:   (E, Fp)     bf16 (pre-transposed, F padded to 128-lane mult)
    # bproj_ref:   (1, Fp)     f32
    # onehot_ref:  (E, H) f32  head-membership selector; onehot_t_ref: (H, E)
    # o_ref:       (Bt, Fp)    f32 pooled (class-token) output
    f32 = jnp.float32
    Bt, N, C = x_ref.shape
    E = wq_ref.shape[1]

    x = x_ref[...]                                                   # (Bt, N, C)
    # Class token = spatial mean (f32 accumulation) + pos_embed[0].
    cls_tok = (jnp.mean(x.astype(f32), axis=1)
               + pos_cls_ref[...].astype(f32)).astype(x.dtype)       # (Bt, C)
    # Spatial tokens + pos_embed[1:], flattened for one big MXU matmul.
    tok = (x + pos_x_ref[...][None, :, :]).reshape(Bt * N, C)        # (Bt*N, C)

    # K / V for the N spatial tokens (the only keys/values besides the class
    # token that the class-token query attends to).
    k_x = (jnp.dot(tok, wk_ref[...], preferred_element_type=f32)
           + bk_ref[...]).reshape(Bt, N, E)                          # (Bt, N, E)
    v_x = (jnp.dot(tok, wv_ref[...], preferred_element_type=f32)
           + bv_ref[...]).reshape(Bt, N, E)                          # (Bt, N, E)
    # Q / K / V for the class token -- the only query row that survives x[:, 0].
    q_c = (jnp.dot(cls_tok, wq_ref[...], preferred_element_type=f32)
           + bq_ref[...]) * scale                                    # (Bt, E)
    k_c = jnp.dot(cls_tok, wk_ref[...], preferred_element_type=f32) + bk_ref[...]
    v_c = jnp.dot(cls_tok, wv_ref[...], preferred_element_type=f32) + bv_ref[...]

    # Per-head scores via the head-membership selector (exact, no lane slices):
    #   s[b, n, h] = sum_{e in head h} q_c[b, e] * k[b, n, e]
    onehot = onehot_ref[...]                                         # (E, H)
    qk_x = (q_c[:, None, :] * k_x).reshape(Bt * N, E)
    s_x = jnp.dot(qk_x, onehot, preferred_element_type=f32).reshape(Bt, N, -1)
    s_c = jnp.dot(q_c * k_c, onehot, preferred_element_type=f32)     # (Bt, H)

    # Numerically stable softmax over the T = N + 1 keys, per (batch, head).
    m = jnp.maximum(jnp.max(s_x, axis=1), s_c)                       # (Bt, H)
    p_x = jnp.exp(s_x - m[:, None, :])                               # (Bt, N, H)
    p_c = jnp.exp(s_c - m)                                           # (Bt, H)
    inv_l = pl.reciprocal(p_c + jnp.sum(p_x, axis=1), approx=True)   # EUP divide
    p_x = p_x * inv_l[:, None, :]
    p_c = p_c * inv_l

    # Broadcast per-head weights back onto the E lanes (exact 0/1 selection)
    # and reduce over keys: out[b, e] = sum_t p[b, t, head(e)] * v[b, t, e].
    onehot_t = onehot_t_ref[...]                                     # (H, E)
    p_x_e = jnp.dot(p_x.reshape(Bt * N, -1), onehot_t,
                    preferred_element_type=f32).reshape(Bt, N, E)
    p_c_e = jnp.dot(p_c, onehot_t, preferred_element_type=f32)       # (Bt, E)
    attn = jnp.sum(p_x_e * v_x, axis=1) + p_c_e * v_c                # (Bt, E) f32

    # Output projection of the class token only.
    y = (jnp.dot(attn.astype(wproj_ref.dtype), wproj_ref[...],
                 preferred_element_type=f32) + bproj_ref[...])       # (Bt, Fp)
    o_ref[...] = y.astype(o_ref.dtype)


@functools.partial(jax.jit, static_argnames=("num_heads", "batch_tile"))
def attention_pool2d(x_nchw, params, *, num_heads, batch_tile=8):
    """Pallas implementation of AttentionPool2d.forward. Returns (B, out_features)."""
    B, C, H, W = x_nchw.shape
    N = H * W
    E3, _ = params["qkv_w"].shape
    E = E3 // 3
    F = params["proj_w"].shape[0]
    head_dim = E // num_heads
    scale = head_dim ** -0.5
    cdt = jnp.bfloat16  # MXU compute dtype (f32 accumulation inside the kernel)

    # --- glue (plain XLA): token layout, weight split/transpose, padding -----
    # NOTE: this NCHW -> (B, N, C) transpose is a one-time HBM pass; for very
    # large activations keep (B, C, N) and contract over C inside the kernel.
    x_tokens = x_nchw.reshape(B, C, N).transpose(0, 2, 1).astype(cdt)  # (B, N, C)

    Bt = min(batch_tile, B)
    B_pad = -(-B // Bt) * Bt
    if B_pad != B:
        x_tokens = jnp.pad(x_tokens, ((0, B_pad - B), (0, 0), (0, 0)))

    pos = params["pos_embed"].astype(cdt)          # (N+1, C)
    pos_cls, pos_x = pos[:1], pos[1:]

    wqkv = params["qkv_w"]                          # (3E, C), PyTorch layout
    wq_t = wqkv[:E].T.astype(cdt)                   # (C, E)
    wk_t = wqkv[E:2 * E].T.astype(cdt)
    wv_t = wqkv[2 * E:].T.astype(cdt)
    bqkv = params["qkv_b"].astype(jnp.float32)
    bq, bk, bv = bqkv[None, :E], bqkv[None, E:2 * E], bqkv[None, 2 * E:]

    # Lane-dense output: pad out_features up to a multiple of 128.
    Fp = -(-F // 128) * 128
    wproj_t = params["proj_w"].T.astype(cdt)        # (E, F)
    bproj = params["proj_b"].astype(jnp.float32)[None, :]
    if Fp != F:
        wproj_t = jnp.pad(wproj_t, ((0, 0), (0, Fp - F)))
        bproj = jnp.pad(bproj, ((0, 0), (0, Fp - F)))

    # Head-membership selector: onehot[e, h] = 1 iff lane e belongs to head h.
    head_ids = jnp.arange(E, dtype=jnp.int32) // head_dim
    onehot = (head_ids[:, None] ==
              jnp.arange(num_heads, dtype=jnp.int32)[None, :]).astype(jnp.float32)
    onehot_t = onehot.T

    kernel = functools.partial(attn_pool_kernel, scale=scale)

    out = pl.pallas_call(
        kernel,
        out_shape=jax.ShapeDtypeStruct((B_pad, Fp), jnp.float32),
        grid_spec=pltpu.PrefetchScalarGridSpec(
            num_scalar_prefetch=0,
            grid=(B_pad // Bt,),
            in_specs=[
                pl.BlockSpec((Bt, N, C), lambda b: (b, 0, 0)),   # x tokens
                pl.BlockSpec((1, C), lambda b: (0, 0)),          # pos[0]
                pl.BlockSpec((N, C), lambda b: (0, 0)),          # pos[1:]
                pl.BlockSpec((C, E), lambda b: (0, 0)),          # wq
                pl.BlockSpec((C, E), lambda b: (0, 0)),          # wk
                pl.BlockSpec((C, E), lambda b: (0, 0)),          # wv
                pl.BlockSpec((1, E), lambda b: (0, 0)),          # bq
                pl.BlockSpec((1, E), lambda b: (0, 0)),          # bk
                pl.BlockSpec((1, E), lambda b: (0, 0)),          # bv
                pl.BlockSpec((E, Fp), lambda b: (0, 0)),         # wproj
                pl.BlockSpec((1, Fp), lambda b: (0, 0)),         # bproj
                pl.BlockSpec((E, num_heads), lambda b: (0, 0)),  # onehot
                pl.BlockSpec((num_heads, E), lambda b: (0, 0)),  # onehot.T
            ],
            out_specs=pl.BlockSpec((Bt, Fp), lambda b: (b, 0)),
        ),
        compiler_params=pltpu.CompilerParams(
            dimension_semantics=("parallel",)),
    )(x_tokens, pos_cls, pos_x, wq_t, wk_t, wv_t, bq, bk, bv,
      wproj_t, bproj, onehot, onehot_t)

    return out[:B, :F].astype(x_nchw.dtype)


def attention_pool2d_reference(x_nchw, params, *, num_heads):
    """Pure-JAX (f32) transcription of the PyTorch forward, for verification."""
    B, C, H, W = x_nchw.shape
    N = H * W
    x = x_nchw.reshape(B, C, N).transpose(0, 2, 1)
    x = jnp.concatenate([x.mean(axis=1, keepdims=True), x], axis=1)
    x = x + params["pos_embed"][None]
    qkv = x @ params["qkv_w"].T + params["qkv_b"]
    E = params["qkv_w"].shape[0] // 3
    head_dim = E // num_heads
    qkv = qkv.reshape(B, N + 1, 3, num_heads, head_dim).transpose(2, 0, 3, 1, 4)
    q, k, v = qkv[0], qkv[1], qkv[2]
    attn = (q @ jnp.swapaxes(k, -2, -1)) * head_dim ** -0.5
    attn = jax.nn.softmax(attn, axis=-1)
    out = jnp.swapaxes(attn @ v, 1, 2).reshape(B, N + 1, E)
    out = out @ params["proj_w"].T + params["proj_b"]
    return out[:, 0]


def init_params(key, *, in_features, feat_size, num_heads,
                embed_dim=None, out_features=None):
    embed_dim = embed_dim or in_features
    out_features = out_features or in_features
    assert embed_dim % num_heads == 0
    spatial_dim = feat_size[0] * feat_size[1]
    std = in_features ** -0.5
    k0, k1, k2, k3, k4 = jax.random.split(key, 5)
    bound = 1.0 / (embed_dim ** 0.5)   # nn.Linear default init for proj
    params = {
        "pos_embed": (jax.random.truncated_normal(
            k0, -2.0, 2.0, (spatial_dim + 1, in_features), jnp.float32) * std),
        "qkv_w": (jax.random.truncated_normal(
            k1, -2.0, 2.0, (embed_dim * 3, in_features), jnp.float32) * std),
        # module zero-inits the qkv bias; use a small nonzero one here so the
        # bias path is actually exercised by the self-test.
        "qkv_b": jax.random.normal(k4, (embed_dim * 3,), jnp.float32) * 0.02,
        "proj_w": jax.random.uniform(
            k2, (out_features, embed_dim), jnp.float32, -bound, bound),
        "proj_b": jax.random.uniform(
            k3, (out_features,), jnp.float32, -bound, bound),
    }
    return params


if __name__ == "__main__":
    # Small shapes consistent with the module:
    # B=16, in_features=32, feat_size=(8, 8) -> N=64 tokens, num_heads=4 (hd=8).
    # B=16 with a batch tile of 8 gives a grid of 2 (megacore-friendly on v7x).
    B, C, H, W = 16, 32, 8, 8
    num_heads = 4

    key = jax.random.PRNGKey(0)
    kx, kp = jax.random.split(key)
    x = jax.random.normal(kx, (B, C, H, W), jnp.float32)
    params = init_params(kp, in_features=C, feat_size=(H, W), num_heads=num_heads)

    out = jax.block_until_ready(attention_pool2d(x, params, num_heads=num_heads))
    ref = jax.block_until_ready(
        attention_pool2d_reference(x, params, num_heads=num_heads))

    assert out.shape == (B, C), out.shape
    # Kernel computes the matmuls in bf16 (f32 accumulation); compare against
    # the f32 reference with a tolerance covering bf16 input/weight rounding.
    max_err = float(jnp.max(jnp.abs(out - ref)))
    assert jnp.allclose(out, ref, rtol=3e-2, atol=3e-2), f"max abs err: {max_err}"
    print("KERNEL_OK")
</pallas_src>

<mosaic_0001>
module attributes {stable_mosaic.version = 11 : i64} {
  func.func @attn_pool_kernel(%arg0: i32, %arg1: memref<8x64x32xbf16, #tpu.memory_space<vmem>>, %arg2: memref<1x32xbf16, #tpu.memory_space<vmem>>, %arg3: memref<64x32xbf16, #tpu.memory_space<vmem>>, %arg4: memref<32x32xbf16, #tpu.memory_space<vmem>>, %arg5: memref<32x32xbf16, #tpu.memory_space<vmem>>, %arg6: memref<32x32xbf16, #tpu.memory_space<vmem>>, %arg7: memref<1x32xf32, #tpu.memory_space<vmem>>, %arg8: memref<1x32xf32, #tpu.memory_space<vmem>>, %arg9: memref<1x32xf32, #tpu.memory_space<vmem>>, %arg10: memref<32x128xbf16, #tpu.memory_space<vmem>>, %arg11: memref<1x128xf32, #tpu.memory_space<vmem>>, %arg12: memref<32x4xf32, #tpu.memory_space<vmem>>, %arg13: memref<4x32xf32, #tpu.memory_space<vmem>>, %arg14: memref<8x128xf32, #tpu.memory_space<vmem>>) attributes {dimension_semantics = [#tpu.dimension_semantics<parallel>], iteration_bounds = array<i64: 2>, scalar_prefetch = 0 : i64, scratch_operands = 0 : i64, tpu.core_type = #tpu.core_type<tc>, window_params = [{transform_indices = @transform_0, window_bounds = array<i64: 8, 64, 32>}, {pipeline_mode = #tpu.pipeline_mode<synchronous>, transform_indices = @transform_1, window_bounds = array<i64: 1, 32>}, {pipeline_mode = #tpu.pipeline_mode<synchronous>, transform_indices = @transform_2, window_bounds = array<i64: 64, 32>}, {pipeline_mode = #tpu.pipeline_mode<synchronous>, transform_indices = @transform_3, window_bounds = array<i64: 32, 32>}, {pipeline_mode = #tpu.pipeline_mode<synchronous>, transform_indices = @transform_4, window_bounds = array<i64: 32, 32>}, {pipeline_mode = #tpu.pipeline_mode<synchronous>, transform_indices = @transform_5, window_bounds = array<i64: 32, 32>}, {pipeline_mode = #tpu.pipeline_mode<synchronous>, transform_indices = @transform_6, window_bounds = array<i64: 1, 32>}, {pipeline_mode = #tpu.pipeline_mode<synchronous>, transform_indices = @transform_7, window_bounds = array<i64: 1, 32>}, {pipeline_mode = #tpu.pipeline_mode<synchronous>, transform_indices = @transform_8, window_bounds = array<i64: 1, 32>}, {pipeline_mode = #tpu.pipeline_mode<synchronous>, transform_indices = @transform_9, window_bounds = array<i64: 32, 128>}, {pipeline_mode = #tpu.pipeline_mode<synchronous>, transform_indices = @transform_10, window_bounds = array<i64: 1, 128>}, {pipeline_mode = #tpu.pipeline_mode<synchronous>, transform_indices = @transform_11, window_bounds = array<i64: 32, 4>}, {pipeline_mode = #tpu.pipeline_mode<synchronous>, transform_indices = @transform_12, window_bounds = array<i64: 4, 32>}, {transform_indices = @transform_13, window_bounds = array<i64: 8, 128>}]} {
    %c0 = arith.constant 0 : index
    %c0_0 = arith.constant 0 : index
    %c0_1 = arith.constant 0 : index
    %0 = vector.load %arg1[%c0, %c0_0, %c0_1] : memref<8x64x32xbf16, #tpu.memory_space<vmem>>, vector<8x64x32xbf16>
    %1 = arith.extf %0 : vector<8x64x32xbf16> to vector<8x64x32xf32>
    %cst = arith.constant dense<0.000000e+00> : vector<8x32xf32>
    %2 = vector.multi_reduction <add>, %1, %cst [1] : vector<8x64x32xf32> to vector<8x32xf32>
    %cst_2 = arith.constant 6.400000e+01 : f32
    %3 = vector.broadcast %cst_2 : f32 to vector<8x32xf32>
    %4 = arith.divf %2, %3 : vector<8x32xf32>
    %c0_3 = arith.constant 0 : index
    %c0_4 = arith.constant 0 : index
    %5 = vector.load %arg2[%c0_3, %c0_4] : memref<1x32xbf16, #tpu.memory_space<vmem>>, vector<1x32xbf16>
    %6 = arith.extf %5 : vector<1x32xbf16> to vector<1x32xf32>
    %7 = vector.broadcast %6 : vector<1x32xf32> to vector<8x32xf32>
    %8 = arith.addf %4, %7 : vector<8x32xf32>
    %9 = arith.truncf %8 : vector<8x32xf32> to vector<8x32xbf16>
    %c0_5 = arith.constant 0 : index
    %c0_6 = arith.constant 0 : index
    %10 = vector.load %arg3[%c0_5, %c0_6] : memref<64x32xbf16, #tpu.memory_space<vmem>>, vector<64x32xbf16>
    %11 = vector.shape_cast %10 : vector<64x32xbf16> to vector<1x64x32xbf16>
    %12 = vector.broadcast %11 : vector<1x64x32xbf16> to vector<8x64x32xbf16>
    %13 = arith.addf %0, %12 : vector<8x64x32xbf16>
    %14 = vector.shape_cast %13 : vector<8x64x32xbf16> to vector<512x32xbf16>
    %c0_7 = arith.constant 0 : index
    %c0_8 = arith.constant 0 : index
    %15 = vector.load %arg5[%c0_7, %c0_8] : memref<32x32xbf16, #tpu.memory_space<vmem>>, vector<32x32xbf16>
    %cst_9 = arith.constant dense<0.000000e+00> : vector<512x32xf32>
    %16 = tpu.matmul %14, %15, %cst_9 {dimension_numbers = #tpu.dot_dimension_numbers<[1], [0], [0], [1], [0, 0, 1, 1], [], []>} : vector<512x32xbf16>, vector<32x32xbf16>, vector<512x32xf32> -> vector<512x32xf32>
    %c0_10 = arith.constant 0 : index
    %c0_11 = arith.constant 0 : index
    %17 = vector.load %arg8[%c0_10, %c0_11] : memref<1x32xf32, #tpu.memory_space<vmem>>, vector<1x32xf32>
    %18 = vector.broadcast %17 : vector<1x32xf32> to vector<512x32xf32>
    %19 = arith.addf %16, %18 : vector<512x32xf32>
    %20 = vector.shape_cast %19 : vector<512x32xf32> to vector<8x64x32xf32>
    %c0_12 = arith.constant 0 : index
    %c0_13 = arith.constant 0 : index
    %21 = vector.load %arg6[%c0_12, %c0_13] : memref<32x32xbf16, #tpu.memory_space<vmem>>, vector<32x32xbf16>
    %cst_14 = arith.constant dense<0.000000e+00> : vector<512x32xf32>
    %22 = tpu.matmul %14, %21, %cst_14 {dimension_numbers = #tpu.dot_dimension_numbers<[1], [0], [0], [1], [0, 0, 1, 1], [], []>} : vector<512x32xbf16>, vector<32x32xbf16>, vector<512x32xf32> -> vector<512x32xf32>
    %c0_15 = arith.constant 0 : index
    %c0_16 = arith.constant 0 : index
    %23 = vector.load %arg9[%c0_15, %c0_16] : memref<1x32xf32, #tpu.memory_space<vmem>>, vector<1x32xf32>
    %24 = vector.broadcast %23 : vector<1x32xf32> to vector<512x32xf32>
    %25 = arith.addf %22, %24 : vector<512x32xf32>
    %26 = vector.shape_cast %25 : vector<512x32xf32> to vector<8x64x32xf32>
    %c0_17 = arith.constant 0 : index
    %c0_18 = arith.constant 0 : index
    %27 = vector.load %arg4[%c0_17, %c0_18] : memref<32x32xbf16, #tpu.memory_space<vmem>>, vector<32x32xbf16>
    %cst_19 = arith.constant dense<0.000000e+00> : vector<8x32xf32>
    %28 = tpu.matmul %9, %27, %cst_19 {dimension_numbers = #tpu.dot_dimension_numbers<[1], [0], [0], [1], [0, 0, 1, 1], [], []>} : vector<8x32xbf16>, vector<32x32xbf16>, vector<8x32xf32> -> vector<8x32xf32>
    %c0_20 = arith.constant 0 : index
    %c0_21 = arith.constant 0 : index
    %29 = vector.load %arg7[%c0_20, %c0_21] : memref<1x32xf32, #tpu.memory_space<vmem>>, vector<1x32xf32>
    %30 = vector.broadcast %29 : vector<1x32xf32> to vector<8x32xf32>
    %31 = arith.addf %28, %30 : vector<8x32xf32>
    %cst_22 = arith.constant 0.353553385 : f32
    %32 = vector.broadcast %cst_22 : f32 to vector<8x32xf32>
    %33 = arith.mulf %31, %32 : vector<8x32xf32>
    %c0_23 = arith.constant 0 : index
    %c0_24 = arith.constant 0 : index
    %34 = vector.load %arg5[%c0_23, %c0_24] : memref<32x32xbf16, #tpu.memory_space<vmem>>, vector<32x32xbf16>
    %cst_25 = arith.constant dense<0.000000e+00> : vector<8x32xf32>
    %35 = tpu.matmul %9, %34, %cst_25 {dimension_numbers = #tpu.dot_dimension_numbers<[1], [0], [0], [1], [0, 0, 1, 1], [], []>} : vector<8x32xbf16>, vector<32x32xbf16>, vector<8x32xf32> -> vector<8x32xf32>
    %c0_26 = arith.constant 0 : index
    %c0_27 = arith.constant 0 : index
    %36 = vector.load %arg8[%c0_26, %c0_27] : memref<1x32xf32, #tpu.memory_space<vmem>>, vector<1x32xf32>
    %37 = vector.broadcast %36 : vector<1x32xf32> to vector<8x32xf32>
    %38 = arith.addf %35, %37 : vector<8x32xf32>
    %c0_28 = arith.constant 0 : index
    %c0_29 = arith.constant 0 : index
    %39 = vector.load %arg6[%c0_28, %c0_29] : memref<32x32xbf16, #tpu.memory_space<vmem>>, vector<32x32xbf16>
    %cst_30 = arith.constant dense<0.000000e+00> : vector<8x32xf32>
    %40 = tpu.matmul %9, %39, %cst_30 {dimension_numbers = #tpu.dot_dimension_numbers<[1], [0], [0], [1], [0, 0, 1, 1], [], []>} : vector<8x32xbf16>, vector<32x32xbf16>, vector<8x32xf32> -> vector<8x32xf32>
    %c0_31 = arith.constant 0 : index
    %c0_32 = arith.constant 0 : index
    %41 = vector.load %arg9[%c0_31, %c0_32] : memref<1x32xf32, #tpu.memory_space<vmem>>, vector<1x32xf32>
    %42 = vector.broadcast %41 : vector<1x32xf32> to vector<8x32xf32>
    %43 = arith.addf %40, %42 : vector<8x32xf32>
    %c0_33 = arith.constant 0 : index
    %c0_34 = arith.constant 0 : index
    %44 = vector.load %arg12[%c0_33, %c0_34] : memref<32x4xf32, #tpu.memory_space<vmem>>, vector<32x4xf32>
    %45 = vector.shape_cast %33 : vector<8x32xf32> to vector<8x1x32xf32>
    %46 = vector.broadcast %45 : vector<8x1x32xf32> to vector<8x64x32xf32>
    %47 = arith.mulf %46, %20 : vector<8x64x32xf32>
    %48 = vector.shape_cast %47 : vector<8x64x32xf32> to vector<512x32xf32>
    %cst_35 = arith.constant dense<0.000000e+00> : vector<512x4xf32>
    %49 = tpu.matmul %48, %44, %cst_35 {dimension_numbers = #tpu.dot_dimension_numbers<[1], [0], [0], [1], [0, 0, 1, 1], [], []>} : vector<512x32xf32>, vector<32x4xf32>, vector<512x4xf32> -> vector<512x4xf32>
    %50 = vector.shape_cast %49 : vector<512x4xf32> to vector<8x64x4xf32>
    %51 = arith.mulf %33, %38 : vector<8x32xf32>
    %cst_36 = arith.constant dense<0.000000e+00> : vector<8x4xf32>
    %52 = tpu.matmul %51, %44, %cst_36 {dimension_numbers = #tpu.dot_dimension_numbers<[1], [0], [0], [1], [0, 0, 1, 1], [], []>} : vector<8x32xf32>, vector<32x4xf32>, vector<8x4xf32> -> vector<8x4xf32>
    %cst_37 = arith.constant dense<0xFF800000> : vector<8x4xf32>
    %53 = vector.multi_reduction <maximumf>, %50, %cst_37 [1] : vector<8x64x4xf32> to vector<8x4xf32>
    %54 = arith.maximumf %53, %52 : vector<8x4xf32>
    %55 = vector.shape_cast %54 : vector<8x4xf32> to vector<8x1x4xf32>
    %56 = vector.broadcast %55 : vector<8x1x4xf32> to vector<8x64x4xf32>
    %57 = arith.subf %50, %56 : vector<8x64x4xf32>
    %58 = math.exp %57 : vector<8x64x4xf32>
    %59 = arith.subf %52, %54 : vector<8x4xf32>
    %60 = math.exp %59 : vector<8x4xf32>
    %cst_38 = arith.constant dense<0.000000e+00> : vector<8x4xf32>
    %61 = vector.multi_reduction <add>, %58, %cst_38 [1] : vector<8x64x4xf32> to vector<8x4xf32>
    %62 = arith.addf %60, %61 : vector<8x4xf32>
    %63 = tpu.reciprocal %62 {approx = true} : vector<8x4xf32> -> vector<8x4xf32>
    %64 = vector.shape_cast %63 : vector<8x4xf32> to vector<8x1x4xf32>
    %65 = vector.broadcast %64 : vector<8x1x4xf32> to vector<8x64x4xf32>
    %66 = arith.mulf %58, %65 : vector<8x64x4xf32>
    %67 = arith.mulf %60, %63 : vector<8x4xf32>
    %c0_39 = arith.constant 0 : index
    %c0_40 = arith.constant 0 : index
    %68 = vector.load %arg13[%c0_39, %c0_40] : memref<4x32xf32, #tpu.memory_space<vmem>>, vector<4x32xf32>
    %69 = vector.shape_cast %66 : vector<8x64x4xf32> to vector<512x4xf32>
    %cst_41 = arith.constant dense<0.000000e+00> : vector<512x32xf32>
    %70 = tpu.matmul %69, %68, %cst_41 {dimension_numbers = #tpu.dot_dimension_numbers<[1], [0], [0], [1], [0, 0, 1, 1], [], []>} : vector<512x4xf32>, vector<4x32xf32>, vector<512x32xf32> -> vector<512x32xf32>
    %71 = vector.shape_cast %70 : vector<512x32xf32> to vector<8x64x32xf32>
    %cst_42 = arith.constant dense<0.000000e+00> : vector<8x32xf32>
    %72 = tpu.matmul %67, %68, %cst_42 {dimension_numbers = #tpu.dot_dimension_numbers<[1], [0], [0], [1], [0, 0, 1, 1], [], []>} : vector<8x4xf32>, vector<4x32xf32>, vector<8x32xf32> -> vector<8x32xf32>
    %73 = arith.mulf %71, %26 : vector<8x64x32xf32>
    %cst_43 = arith.constant dense<0.000000e+00> : vector<8x32xf32>
    %74 = vector.multi_reduction <add>, %73, %cst_43 [1] : vector<8x64x32xf32> to vector<8x32xf32>
    %75 = arith.mulf %72, %43 : vector<8x32xf32>
    %76 = arith.addf %74, %75 : vector<8x32xf32>
    %77 = arith.truncf %76 : vector<8x32xf32> to vector<8x32xbf16>
    %c0_44 = arith.constant 0 : index
    %c0_45 = arith.constant 0 : index
    %78 = vector.load %arg10[%c0_44, %c0_45] : memref<32x128xbf16, #tpu.memory_space<vmem>>, vector<32x128xbf16>
    %cst_46 = arith.constant dense<0.000000e+00> : vector<8x128xf32>
    %79 = tpu.matmul %77, %78, %cst_46 {dimension_numbers = #tpu.dot_dimension_numbers<[1], [0], [0], [1], [0, 0, 1, 1], [], []>} : vector<8x32xbf16>, vector<32x128xbf16>, vector<8x128xf32> -> vector<8x128xf32>
    %c0_47 = arith.constant 0 : index
    %c0_48 = arith.constant 0 : index
    %80 = vector.load %arg11[%c0_47, %c0_48] : memref<1x128xf32, #tpu.memory_space<vmem>>, vector<1x128xf32>
    %81 = vector.broadcast %80 : vector<1x128xf32> to vector<8x128xf32>
    %82 = arith.addf %79, %81 : vector<8x128xf32>
    %c0_49 = arith.constant 0 : index
    %c0_50 = arith.constant 0 : index
    %83 = vector.load %arg14[%c0_49, %c0_50] : memref<8x128xf32, #tpu.memory_space<vmem>>, vector<8x128xf32>
    tpu.vector_store %arg14[%c0_49, %c0_50], %82 {strides = array<i32>} : memref<8x128xf32, #tpu.memory_space<vmem>>, vector<8x128xf32>,
    return
  }
  func.func @transform_0(%arg0: i32) -> (i32, i32, i32) {
    %c0_i32 = arith.constant 0 : i32
    %c0_i32_0 = arith.constant 0 : i32
    %c0_i32_1 = arith.constant 0 : i32
    return %arg0, %c0_i32, %c0_i32_0 : i32, i32, i32
  }
  func.func @transform_1(%arg0: i32) -> (i32, i32) {
    %c0_i32 = arith.constant 0 : i32
    %c0_i32_0 = arith.constant 0 : i32
    %c0_i32_1 = arith.constant 0 : i32
    return %c0_i32, %c0_i32_0 : i32, i32
  }
  func.func @transform_2(%arg0: i32) -> (i32, i32) {
    %c0_i32 = arith.constant 0 : i32
    %c0_i32_0 = arith.constant 0 : i32
    %c0_i32_1 = arith.constant 0 : i32
    return %c0_i32, %c0_i32_0 : i32, i32
  }
  func.func @transform_3(%arg0: i32) -> (i32, i32) {
    %c0_i32 = arith.constant 0 : i32
    %c0_i32_0 = arith.constant 0 : i32
    %c0_i32_1 = arith.constant 0 : i32
    return %c0_i32, %c0_i32_0 : i32, i32
  }
  func.func @transform_4(%arg0: i32) -> (i32, i32) {
    %c0_i32 = arith.constant 0 : i32
    %c0_i32_0 = arith.constant 0 : i32
    %c0_i32_1 = arith.constant 0 : i32
    return %c0_i32, %c0_i32_0 : i32, i32
  }
  func.func @transform_5(%arg0: i32) -> (i32, i32) {
    %c0_i32 = arith.constant 0 : i32
    %c0_i32_0 = arith.constant 0 : i32
    %c0_i32_1 = arith.constant 0 : i32
    return %c0_i32, %c0_i32_0 : i32, i32
  }
  func.func @transform_6(%arg0: i32) -> (i32, i32) {
    %c0_i32 = arith.constant 0 : i32
    %c0_i32_0 = arith.constant 0 : i32
    %c0_i32_1 = arith.constant 0 : i32
    return %c0_i32, %c0_i32_0 : i32, i32
  }
  func.func @transform_7(%arg0: i32) -> (i32, i32) {
    %c0_i32 = arith.constant 0 : i32
    %c0_i32_0 = arith.constant 0 : i32
    %c0_i32_1 = arith.constant 0 : i32
    return %c0_i32, %c0_i32_0 : i32, i32
  }
  func.func @transform_8(%arg0: i32) -> (i32, i32) {
    %c0_i32 = arith.constant 0 : i32
    %c0_i32_0 = arith.constant 0 : i32
    %c0_i32_1 = arith.constant 0 : i32
    return %c0_i32, %c0_i32_0 : i32, i32
  }
  func.func @transform_9(%arg0: i32) -> (i32, i32) {
    %c0_i32 = arith.constant 0 : i32
    %c0_i32_0 = arith.constant 0 : i32
    %c0_i32_1 = arith.constant 0 : i32
    return %c0_i32, %c0_i32_0 : i32, i32
  }
  func.func @transform_10(%arg0: i32) -> (i32, i32) {
    %c0_i32 = arith.constant 0 : i32
    %c0_i32_0 = arith.constant 0 : i32
    %c0_i32_1 = arith.constant 0 : i32
    return %c0_i32, %c0_i32_0 : i32, i32
  }
  func.func @transform_11(%arg0: i32) -> (i32, i32) {
    %c0_i32 = arith.constant 0 : i32
    %c0_i32_0 = arith.constant 0 : i32
    %c0_i32_1 = arith.constant 0 : i32
    return %c0_i32, %c0_i32_0 : i32, i32
  }
  func.func @transform_12(%arg0: i32) -> (i32, i32) {
    %c0_i32 = arith.constant 0 : i32
    %c0_i32_0 = arith.constant 0 : i32
    %c0_i32_1 = arith.constant 0 : i32
    return %c0_i32, %c0_i32_0 : i32, i32
  }
  func.func @transform_13(%arg0: i32) -> (i32, i32) {
    %c0_i32 = arith.constant 0 : i32
    %c0_i32_0 = arith.constant 0 : i32
    return %arg0, %c0_i32 : i32, i32
  }
}

</mosaic_0001>

<bundles_post_ra>
// kernel: attention_pool2d.1
= control target key start
LH: loop header
LB: loop body
LE: loop exit
PB: predicated region body
PF: predicated region fallthrough
CT: control target
= control target key end

     0   :  { %s8418_s0 = inlined_call_operand.vmem [shape: bf16[16,64,32], index: 0, kind: input, shape index: {}]   ;;  %s8419_s1 = inlined_call_operand.vmem [shape: bf16[1,32], index: 1, kind: input, shape index: {}]   ;;  %s8420_s2 = inlined_call_operand.vmem [shape: bf16[64,32], index: 2, kind: input, shape index: {}]   ;;  %s8421_s3 = inlined_call_operand.vmem [shape: bf16[32,32], index: 3, kind: input, shape index: {}]   ;;  %s8422_s4 = inlined_call_operand.vmem [shape: bf16[32,32], index: 4, kind: input, shape index: {}]   ;;  %s8423_s5 = inlined_call_operand.vmem [shape: bf16[32,32], index: 5, kind: input, shape index: {}]   ;;  %s8424_s6 = inlined_call_operand.vmem [shape: f32[1,32], index: 6, kind: input, shape index: {}]   ;;  %s8425_s7 = inlined_call_operand.vmem [shape: f32[1,32], index: 7, kind: input, shape index: {}]   ;;  %s8426_s8 = inlined_call_operand.vmem [shape: f32[1,32], index: 8, kind: input, shape index: {}]   ;;  %s8427_s9 = inlined_call_operand.vmem [shape: bf16[32,128], index: 9, kind: input, shape index: {}]   ;;  %s8428_s10 = inlined_call_operand.vmem [shape: f32[1,128], index: 10, kind: input, shape index: {}]   ;;  %s8429_s11 = inlined_call_operand.vmem [shape: f32[32,4], index: 11, kind: input, shape index: {}]   ;;  %s8430_s12 = inlined_call_operand.vmem [shape: f32[4,32], index: 12, kind: input, shape index: {}]   ;;  %s8431_s13 = inlined_call_operand.hbm [shape: f32[16,128], index: 13, kind: output, shape index: {}]  }
   0x1   :  { %8483 = sst [smem:[#allocation106_spill]] %s8422_s4 }
   0x2   :  { %18 = vsyncpa [#allocation3], 0 }
   0x3   :  { %20 = vsyncpa [#allocation3 + $0x1], 0  ;;  %s5799_s25 = smov 0   ;;  %s5801_s26 = smov 0  }
   0x4   :  { %s5803_s27 = smov 0   ;;  %s5805_s28 = smov 0  }
   0x5 LB: > { %8484 = sst [smem:[#allocation5_spill]] %s5718_s27  ;;  %s5820_s29 = sadd.s32 4294967295, %s5722_s28   ;;  %s5722_s28 = sphi %s5805_s28, %s8806_s28   ;;  %s5718_s27 = sphi %s5803_s27, %s8803_s27   ;;  %s5714_s26 = sphi %s5801_s26, %s8805_s26   ;;  %s5710_s25 = sphi %s5799_s25, %s8804_s25  }
   0x6   : > { %s4594_s30 = sadd.s32 4294967294, %s5722_s28   ;;  %s5824_s14 = sadd.s32 1, %s5722_s28  }
   0x7   : > { %s311_s15 = sadd.s32 1, %s5718_s27  ;;  %s308_s16 = ssub.s32 %s5722_s28, %s5824_s14 }
   0x8   : > { %p321_p0 = scmp.ne.s32.totalorder %s5718_s27, %s5714_s26  ;;  %p309_p1 = scmp.eq.s32.totalorder %s308_s16, 0 }
   0x9   : > { %p322_p2 = scmp.eq.s32.totalorder %s5820_s29, 1  ;;  %p327_p3 = scmp.ne.s32.totalorder %s5714_s26, %s5710_s25 }
   0xa   : > { %p328_p4 = scmp.eq.s32.totalorder %s4594_s30, 1  ;;  %p4597_p7 = scmp.ge.s32.totalorder %s5722_s28, 1 }
   0xb   : > { %s5835_s17 = scalar_select %p309_p1, %s5718_s27, %s311_s15  }
   0xc   : > { %p5837_p5 = por %p322_p2, %p321_p0  ;;  %p5841_p6 = por %p328_p4, %p327_p3 }
   0xd   : > { %8485 = sst [smem:[#allocation6_spill]] %s5835_s17  ;;  %p392_p8 = scmp.lt.s32.totalorder %s5722_s28, 3 }
   0xf   : > { %p393_p9 = pnand %p4597_p7, %p392_p8 }
  0x11   : > { %396 = sbr.rel (%p393_p9) target bundleno = 1433 (0x599), region = 72 }
  0x18   : > { %s8488_s4 = sld [smem:[#allocation106_spill]]  ;;  %s4599_s22 = sshll.u32 %s5820_s29, 3  ;;  %v5515_v1 = vld [vmem:[%s8423_s5] sm:$0xff]   ;;  %v5517_v3 = vld [vmem:[%s8423_s5 + $0x8] sm:$0xff]   ;;  %vm573_vm0 = vcmask 261120   ;;  %v8433_v15 = vmov 0.0   ;;  %v753_v47 = vlaneseq }
  0x19   : > { %p438_p10 = scmp.lt.s32.totalorder %s4599_s22, 15  ;;  %5139 = vmatprep.subr.bf16.mxu1 %v5515_v1  ;;  %v5870_v4 = vld [vmem:[%s8420_s2] sm:$0xf]  ;;  %v5875_v5 = vld [vmem:[%s8420_s2 + $0x4] sm:$0xf]  ;;  %v5519_v55 = vld [vmem:[%s8421_s3 + $0x8] sm:$0xff]  }
  0x1a   : > { %5140 = vmatpush3.bf16.msra.mxu1 %v5515_v1  ;;  %v5880_v6 = vld [vmem:[%s8420_s2 + $0x8] sm:$0xf]  ;;  %v5890_v7 = vld [vmem:[%s8420_s2 + $0xc] sm:$0xf]  ;;  %v5902_v17 = vld [vmem:[%s8420_s2 + $0x10] sm:$0xf] }
  0x1b   : > { %s8808_s22 = smov (!%p438_p10, %s4599_s22), 15  ;;  %5141 = vmatprep.subr.bf16.mxu1 %v5517_v3  ;;  %v5912_v24 = vld [vmem:[%s8420_s2 + $0x14] sm:$0xf]  ;;  %v5518_v32 = vld [vmem:[%s8421_s3] sm:$0xff]   ;;  %v5925_v34 = vld [vmem:[%s8420_s2 + $0x18] sm:$0xf] }
  0x1c   : > { %s4850_s24 = sshll.u32 %s8808_s22, 5  ;;  %v5934_v40 = vld [vmem:[%s8420_s2 + $0x1c] sm:$0xf]  ;;  %vm1753_vm1 = vcmask 1041409   ;;  %vm1756_vm2 = vcmask 1042434   ;;  %vm1759_vm3 = vcmask 1043459  }
  0x1d   : > { %s5885_s27 = scalar_lea.vmem %s8418_s0, %s4850_s24  ;;  %vm1762_vm4 = vcmask 1044484   ;;  %vm1765_vm5 = vcmask 1045509   ;;  %vm1768_vm6 = vcmask 1046534   ;;  %vm1771_vm7 = vcmask 1047559   ;;  %s434_s24 = sand.u32 1, %s5714_s26  }
  0x1e   : > { %v5850_v0 = vld [vmem:[%s8488_s4] sm:$0xff]   ;;  %v5860_v2 = vld [vmem:[%s8488_s4 + $0x8] sm:$0xff]   ;;  %5142 = vmatpush3.bf16.msra.mxu1 %v5517_v3  ;;  %v449_v22 = vld [vmem:[%s5885_s27 + $0x10] sm:$0xf]  ;;  %vm5725_vm8 = vmmov 0   ;;  %vm2719_vm9 = vcmask 31744  }
  0x1f   : > { %5071 = vmatprep.subr.bf16.mxu0 %v5850_v0  ;;  %v445_v8 = vld [vmem:[%s5885_s27] sm:$0xf]  ;;  %v446_v9 = vld [vmem:[%s5885_s27 + $0x4] sm:$0xf]  ;;  %v447_v10 = vld [vmem:[%s5885_s27 + $0x8] sm:$0xf]  ;;  %5215 = vmatprep.subr.bf16.mxu1 %v8433_v15  ;;  %v513_v28 = vunpack.c.l.bf16 %v449_v22  ;;  %v785_v37 = vadd.bf16 %v5902_v17, %v449_v22 }
  0x20   : > { %5072 = vmatpush3.bf16.msra.mxu0 %v5850_v0  ;;  %v509_v11 = vunpack.c.l.bf16 %v445_v8  ;;  %v510_v12 = vunpack.c.l.bf16 %v446_v9  ;;  %v511_v13 = vunpack.c.l.bf16 %v447_v10  ;;  %v781_v14 = vadd.bf16 %v5870_v4, %v445_v8  ;;  %v448_v16 = vld [vmem:[%s5885_s27 + $0xc] sm:$0xf]  ;;  %v450_v23 = vld [vmem:[%s5885_s27 + $0x14] sm:$0xf]  ;;  %v451_v33 = vld [vmem:[%s5885_s27 + $0x18] sm:$0xf] }
  0x21   : > { %5073 = vmatprep.subr.bf16.mxu0 %v5860_v2  ;;  %v782_v18 = vadd.bf16 %v5875_v5, %v446_v9  ;;  %v512_v19 = vunpack.c.l.bf16 %v448_v16  ;;  %v783_v20 = vadd.bf16 %v5880_v6, %v447_v10  ;;  %v784_v21 = vadd.bf16 %v5890_v7, %v448_v16  ;;  %v452_v39 = vld [vmem:[%s5885_s27 + $0x1c] sm:$0xf]  ;;  %v453_v44 = vld [vmem:[%s5885_s27 + $0x20] sm:$0xf]  ;;  %v454_v49 = vld [vmem:[%s5885_s27 + $0x24] sm:$0xf] }
  0x22   : > { %v574_v25 = vsel %vm573_vm0, %v509_v11, 0.0  ;;  %v575_v26 = vsel %vm573_vm0, %v510_v12, 0.0  ;;  %v577_v27 = vsel %vm573_vm0, %v511_v13, 0.0  ;;  %v514_v36 = vunpack.c.l.bf16 %v450_v23  ;;  %v455_v54 = vld [vmem:[%s5885_s27 + $0x28] sm:$0xf]  ;;  %s4847_s16 = sshll.u32 %s5820_s29, 7 }
  0x23   : > { %v576_v29 = vadd.f32 %v575_v26, %v574_v25  ;;  %v4603_v30 = vcombine.low %v781_v14, %v782_v18  ;;  %v4604_v31 = vcombine.low %v783_v20, %v784_v21  ;;  %v579_v35 = vsel %vm573_vm0, %v512_v19, 0.0  ;;  %v456_v63 = vld [vmem:[%s5885_s27 + $0x2c] sm:$0xf]  ;;  %v457_v10 = vld [vmem:[%s5885_s27 + $0x30] sm:$0xf]  ;;  %s8376_s17 = scalar_lea.hbm %s8431_s13, %s4847_s16  ;;  %s4522_s22 = scalar_lea.sflag [#allocation3], %s434_s24 }
  0x24   : > { %5074 = vmatpush3.bf16.msra.mxu0 %v5860_v2  ;;  %v786_v38 = vadd.bf16 %v5912_v24, %v450_v23  ;;  %v515_v42 = vunpack.c.l.bf16 %v451_v33  ;;  %v516_v43 = vunpack.c.l.bf16 %v452_v39  ;;  %v581_v45 = vsel %vm573_vm0, %v513_v28, 0.0  ;;  %v458_v11 = vld [vmem:[%s5885_s27 + $0x34] sm:$0xf] }
  0x25   : > { %5207 = vmatprep.subr.bf16.mxu0 %v8433_v15  ;;  %v578_v41 = vadd.f32 %v577_v27, %v576_v29  ;;  %5075 = vmatprep.mubr.msk.bf16.mxu0 %vm573_vm0, %v4603_v30  ;;  %v787_v48 = vadd.bf16 %v5925_v34, %v451_v33  ;;  %v583_v51 = vsel %vm573_vm0, %v514_v36, 0.0  ;;  %v788_v53 = vadd.bf16 %v5934_v40, %v452_v39  ;;  %v459_v27 = vld [vmem:[%s5885_s27 + $0x38] sm:$0xf] }
  0x26   : > { %5143 = vmatprep.mubr.msk.bf16.mxu1 %vm573_vm0, %v4603_v30  ;;  %v4605_v46 = vcombine.low %v785_v37, %v786_v38  ;;  %v585_v52 = vsel %vm573_vm0, %v515_v42, 0.0  ;;  %v587_v56 = vsel %vm573_vm0, %v516_v43, 0.0  ;;  %v517_v57 = vunpack.c.l.bf16 %v453_v44  ;;  %v461_v37 = vld [vmem:[%s5885_s27 + $0x40] sm:$0xf]  ;;  %v462_v42 = vld [vmem:[%s5885_s27 + $0x44] sm:$0xf] }
  0x27   : > { %5076 = vmatmul.mubr.msk.bf16.vlgmr.msra.gmra.mrb[0].mxu0 %vm573_vm0, %v4604_v31  ;;  %5144 = vmatmul.mubr.msk.bf16.vlgmr.msra.gmra.mrb[0].mxu1 %vm573_vm0, %v4604_v31  ;;  %v580_v50 = vadd.f32 %v579_v35, %v578_v41  ;;  %v518_v58 = vunpack.c.l.bf16 %v454_v49  ;;  %v789_v59 = vadd.bf16 %v5870_v4, %v453_v44  ;;  %v4606_v61 = vcombine.low %v787_v48, %v788_v53  ;;  %v460_v31 = vld [vmem:[%s5885_s27 + $0x3c] sm:$0xf] }
  0x28   : > { %5208 = vmatpush3.bf16.msra.mxu0 %v5518_v32  ;;  %5216 = vmatpush3.bf16.msra.mxu1 %v5850_v0  ;;  %v790_v62 = vadd.bf16 %v5875_v5, %v454_v49  ;;  %v519_v1 = vunpack.c.l.bf16 %v455_v54  ;;  %v595_v0 = vsel %vm573_vm0, %v517_v57, 0.0  ;;  %v520_v8 = vunpack.c.l.bf16 %v456_v63 }
  0x29   : > { %5079 = vmatprep.mubr.msk.bf16.mxu0 %vm573_vm0, %v4605_v46  ;;  %5147 = vmatprep.mubr.msk.bf16.mxu1 %vm573_vm0, %v4605_v46  ;;  %v582_v60 = vadd.f32 %v581_v45, %v580_v50  ;;  %v596_v3 = vsel %vm573_vm0, %v518_v58, 0.0  ;;  %v791_v9 = vadd.bf16 %v5880_v6, %v455_v54  ;;  %v792_v19 = vadd.bf16 %v5890_v7, %v456_v63  ;;  %v5998_v54 = vld [vmem:[%s8419_s1] sm:$0x1]  ;;  %v6006_v63 = vld [vmem:[%s5885_s27 + $0x50] sm:$0xf] }
  0x2a   : > { %5209 = vmatprep.subr.bf16.mxu0 %v8433_v15  ;;  %5217 = vmatprep.subr.bf16.mxu1 %v8433_v15  ;;  %v597_v13 = vadd.f32 %v596_v3, %v595_v0  ;;  %v4607_v14 = vcombine.low %v789_v59, %v790_v62  ;;  %v598_v16 = vsel %vm573_vm0, %v519_v1, 0.0  ;;  %v600_v18 = vsel %vm573_vm0, %v520_v8, 0.0  ;;  %v6009_v1 = vld [vmem:[%s5885_s27 + $0x54] sm:$0xf] }
  0x2b   : > { %v584_v12 = vadd.f32 %v583_v51, %v582_v60  ;;  %v521_v20 = vunpack.c.l.bf16 %v457_v10  ;;  %v522_v21 = vunpack.c.l.bf16 %v458_v11  ;;  %v793_v25 = vadd.bf16 %v5902_v17, %v457_v10 }
  0x2c   : > { %5210 = vmatpush3.bf16.msra.mxu0 %v5519_v55  ;;  %5218 = vmatpush3.bf16.msra.mxu1 %v5860_v2  ;;  %v599_v23 = vadd.f32 %v598_v16, %v597_v13  ;;  %v794_v26 = vadd.bf16 %v5912_v24, %v458_v11  ;;  %v523_v28 = vunpack.c.l.bf16 %v459_v27  ;;  %v5979_v32 = vshrl.u32 %v753_v47, 7  ;;  %v5988_v47 = vld [vmem:[%s5885_s27 + $0x48] sm:$0xf]  ;;  %v6020_v13 = vld [vmem:[%s5885_s27 + $0x58] sm:$0xf] }
  0x2d   : > { %5223 = vmatprep.subr.bf16.mxu0 %v8433_v15  ;;  %v586_v22 = vadd.f32 %v585_v52, %v584_v12  ;;  %v602_v2 = vsel %vm573_vm0, %v521_v20, 0.0  ;;  %v4608_v33 = vcombine.low %v791_v9, %v792_v19  ;;  %v604_v35 = vsel %vm573_vm0, %v522_v21, 0.0  ;;  %v5992_v52 = vld [vmem:[%s5885_s27 + $0x4c] sm:$0xf] }
  0x2e   : > { %v601_v30 = vadd.f32 %v600_v18, %v599_v23  ;;  %v524_v36 = vunpack.c.l.bf16 %v460_v31  ;;  %v4609_v41 = vcombine.low %v793_v25, %v794_v26  ;;  %v525_v43 = vunpack.c.l.bf16 %v461_v37  ;;  %v6029_v25 = vld [vmem:[%s5885_s27 + $0x5c] sm:$0xf] }
  0x2f   : > { %5080 = vmatmul.mubr.msk.bf16.gmra.mrb[4].mxu0 %vm573_vm0, %v4606_v61  ;;  %5148 = vmatmul.mubr.msk.bf16.gmra.mrb[4].mxu1 %vm573_vm0, %v4606_v61  ;;  %v588_v29 = vadd.f32 %v587_v56, %v586_v22  ;;  %v606_v44 = vsel %vm573_vm0, %v523_v28, 0.0  ;;  %v795_v45 = vadd.bf16 %v5925_v34, %v459_v27  ;;  %v796_v46 = vadd.bf16 %v5934_v40, %v460_v31 }
  0x30   : > { %5083 = vmatprep.mubr.msk.bf16.mxu0 %vm573_vm0, %v4607_v14  ;;  %5151 = vmatprep.mubr.msk.bf16.mxu1 %vm573_vm0, %v4607_v14  ;;  %v603_v39 = vadd.f32 %v602_v2, %v601_v30  ;;  %v526_v48 = vunpack.c.l.bf16 %v462_v42  ;;  %v616_v51 = vsel %vm573_vm0, %v525_v43, 0.0  ;;  %v527_v53 = vunpack.c.l.bf16 %v5988_v47  ;;  %v6051_v43 = vld [vmem:[%s5885_s27 + $0x6c] sm:$0xf] }
  0x31   : > { %v589_v38 = vrot.slane %v588_v29, 4  ;;  %v608_v55 = vsel %vm573_vm0, %v524_v36, 0.0  ;;  %v797_v57 = vadd.bf16 %v5870_v4, %v461_v37  ;;  %v528_v58 = vunpack.c.l.bf16 %v5992_v52  ;;  %v6041_v36 = vld [vmem:[%s5885_s27 + $0x64] sm:$0xf] }
  0x32   : > { %v605_v50 = vadd.f32 %v604_v35, %v603_v39  ;;  %v617_v56 = vsel %vm573_vm0, %v526_v48, 0.0  ;;  %v619_v62 = vsel %vm573_vm0, %v527_v53, 0.0  ;;  %v798_v0 = vadd.bf16 %v5875_v5, %v462_v42  ;;  %v6038_v35 = vld [vmem:[%s5885_s27 + $0x60] sm:$0xf]  ;;  %v6048_v42 = vld [vmem:[%s5885_s27 + $0x68] sm:$0xf] }
  0x33   : > { %v590_v49 = vadd.f32 %v589_v38, %v588_v29  ;;  %v618_v61 = vadd.f32 %v617_v56, %v616_v51  ;;  %v621_v3 = vsel %vm573_vm0, %v528_v58, 0.0  ;;  %v529_v8 = vunpack.c.l.bf16 %v6006_v63 }
  0x34   : > { %v607_v60 = vadd.f32 %v606_v44, %v605_v50  ;;  %v530_v9 = vunpack.c.l.bf16 %v6009_v1  ;;  %v752_v14 = vunpack.c.l.bf16 %v5998_v54  ;;  %v6024_v16 = vsub.s32 0, %v5979_v32 }
  0x35   : > { %v591_v59 = vrot.slane %v590_v49, 2  ;;  %v620_v12 = vadd.f32 %v619_v62, %v618_v61  ;;  %v623_v18 = vsel %vm573_vm0, %v529_v8, 0.0  ;;  %v531_v19 = vunpack.c.l.bf16 %v6020_v13 }
  0x36   : > { %v609_v11 = vadd.f32 %v608_v55, %v607_v60  ;;  %8489 = vst [vmem:[#allocation7_spill] sm:$0xff] %v6024_v16  ;;  %v4610_v22 = vcombine.low %v795_v45, %v796_v46  ;;  %v4611_v26 = vcombine.low %v797_v57, %v798_v0  ;;  %v799_v27 = vadd.bf16 %v5880_v6, %v5988_v47 }
  0x37   : > { %5084 = vmatmul.mubr.msk.bf16.gmra.mrb[8].mxu0 %vm573_vm0, %v4608_v33  ;;  %5152 = vmatmul.mubr.msk.bf16.gmra.mrb[8].mxu1 %vm573_vm0, %v4608_v33  ;;  %v592_v10 = vadd.f32 %v591_v59, %v590_v49  ;;  %v622_v23 = vadd.f32 %v621_v3, %v620_v12  ;;  %v625_v2 = vsel %vm573_vm0, %v530_v9, 0.0  ;;  %v532_v28 = vunpack.c.l.bf16 %v6029_v25 }
  0x38   : > { %5087 = vmatprep.mubr.msk.bf16.mxu0 %vm573_vm0, %v4609_v41  ;;  %5155 = vmatprep.mubr.msk.bf16.mxu1 %vm573_vm0, %v4609_v41  ;;  %v610_v21 = vrot.slane %v609_v11, 4  ;;  %v800_v31 = vadd.bf16 %v5890_v7, %v5992_v52  ;;  %v627_v37 = vsel %vm573_vm0, %v531_v19, 0.0  ;;  %v533_v39 = vunpack.c.l.bf16 %v6038_v35 }
  0x39   : > { %v593_v20 = vrot.slane %v592_v10, 1  ;;  %v624_v33 = vadd.f32 %v623_v18, %v622_v23  ;;  %v629_v38 = vsel %vm573_vm0, %v532_v28, 0.0  ;;  %v534_v41 = vunpack.c.l.bf16 %v6041_v36 }
  0x3a   : > { %v611_v30 = vadd.f32 %v610_v21, %v609_v11  ;;  %v801_v48 = vadd.bf16 %v5902_v17, %v6006_v63  ;;  %v637_v47 = vsel %vm573_vm0, %v533_v39, 0.0  ;;  %v535_v50 = vunpack.c.l.bf16 %v6048_v42  ;;  %v6073_v63 = vld [vmem:[%s5885_s27 + $0x70] sm:$0xf]  ;;  %v6089_v21 = vld [vmem:[%s5885_s27 + $0x78] sm:$0xf] }
  0x3b   : > { %v594_v29 = vadd.f32 %v593_v20, %v592_v10  ;;  %v626_v46 = vadd.f32 %v625_v2, %v624_v33  ;;  %v638_v49 = vsel %vm573_vm0, %v534_v41, 0.0  ;;  %v802_v52 = vadd.bf16 %v5912_v24, %v6009_v1  ;;  %v6076_v1 = vld [vmem:[%s5885_s27 + $0x74] sm:$0xf] }
  0x3c   : > { %v612_v45 = vrot.slane %v611_v30, 2  ;;  %v536_v54 = vunpack.c.l.bf16 %v6051_v43  ;;  %v6066_v55 = vrot.slane %v752_v14, %v6024_v16  ;;  %v4612_v56 = vcombine.low %v799_v27, %v800_v31  ;;  %v6093_v27 = vld [vmem:[%s5885_s27 + $0x7c] sm:$0xf] }
  0x3d   : > { %v743_v44 = vmul.f32 0.015625, %v594_v29  ;;  %v628_v53 = vadd.f32 %v627_v37, %v626_v46  ;;  %v639_v57 = vadd.f32 %v638_v49, %v637_v47  ;;  %v640_v58 = vsel %vm573_vm0, %v535_v50, 0.0 }
  0x3e   : > { %v613_v51 = vadd.f32 %v612_v45, %v611_v30  ;;  %v803_v61 = vadd.bf16 %v5925_v34, %v6020_v13  ;;  %v642_v62 = vsel %vm573_vm0, %v536_v54, 0.0  ;;  %v537_v8 = vunpack.c.l.bf16 %v6073_v63 }
  0x3f   : > { %5088 = vmatmul.mubr.msk.bf16.gmra.mrb[12].mxu0 %vm573_vm0, %v4610_v22  ;;  %5156 = vmatmul.mubr.msk.bf16.gmra.mrb[12].mxu1 %vm573_vm0, %v4610_v22  ;;  %v630_v60 = vadd.f32 %v629_v38, %v628_v53  ;;  %v757_v0 = vadd.f32 %v6066_v55, %v743_v44  ;;  %v641_v3 = vadd.f32 %v640_v58, %v639_v57  ;;  %v538_v9 = vunpack.c.l.bf16 %v6076_v1  ;;  %v6107_v38 = vld [vmem:[%s5885_s27 + $0x84] sm:$0xf] }
  0x40   : > { %5091 = vmatprep.mubr.msk.bf16.mxu0 %vm573_vm0, %v4611_v26  ;;  %5159 = vmatprep.mubr.msk.bf16.mxu1 %vm573_vm0, %v4611_v26  ;;  %v614_v59 = vrot.slane %v613_v51, 1  ;;  %v4613_v11 = vcombine.low %v801_v48, %v802_v52  ;;  %v804_v13 = vadd.bf16 %v5934_v40, %v6029_v25  ;;  %v805_v14 = vadd.bf16 %v5870_v4, %v6038_v35  ;;  %v6104_v35 = vld [vmem:[%s5885_s27 + $0x80] sm:$0xf]  ;;  %v6113_v48 = vld [vmem:[%s5885_s27 + $0x88] sm:$0xf] }
  0x41   : > { %v631_v12 = vrot.slane %v630_v60, 4  ;;  %v806_v18 = vadd.bf16 %v5875_v5, %v6041_v36  ;;  %v643_v19 = vadd.f32 %v642_v62, %v641_v3  ;;  %v644_v20 = vsel %vm573_vm0, %v537_v8, 0.0  ;;  %v6129_v8 = vld [vmem:[%s5885_s27 + $0x90] sm:$0xf] }
  0x42   : > { %v615_v10 = vadd.f32 %v614_v59, %v613_v51  ;;  %v646_v26 = vsel %vm573_vm0, %v538_v9, 0.0  ;;  %v539_v25 = vunpack.c.l.bf16 %v6089_v21  ;;  %v765_v2 = vpack.c.bf16 %v757_v0, %v757_v0  ;;  %v6117_v51 = vld [vmem:[%s5885_s27 + $0x8c] sm:$0xf] }
  0x43   : > { %v632_v23 = vadd.f32 %v631_v12, %v630_v60  ;;  %v645_v28 = vadd.f32 %v644_v20, %v643_v19  ;;  %v540_v29 = vunpack.c.l.bf16 %v6093_v27  ;;  %v4614_v36 = vcombine.low %v803_v61, %v804_v13  ;;  %v6136_v12 = vld [vmem:[%s5885_s27 + $0x94] sm:$0xf] }
  0x44   : > { %v744_v22 = vmul.f32 0.015625, %v615_v10  ;;  %v648_v33 = vsel %vm573_vm0, %v539_v25, 0.0  ;;  %v541_v39 = vunpack.c.l.bf16 %v6104_v35  ;;  %v4615_v44 = vcombine.low %v805_v14, %v806_v18 }
  0x45   : > { %v633_v31 = vrot.slane %v632_v23, 2  ;;  %v647_v37 = vadd.f32 %v646_v26, %v645_v28  ;;  %v650_v45 = vsel %vm573_vm0, %v540_v29, 0.0  ;;  %v542_v46 = vunpack.c.l.bf16 %v6107_v38  ;;  %v6153_v26 = vld [vmem:[%s5885_s27 + $0x9c] sm:$0xf] }
  0x46   : > { %v758_v30 = vadd.f32 %v6066_v55, %v744_v22  ;;  %v1744_v47 = vunpack.c.l.b16 %v765_v2  ;;  %v658_v50 = vsel %vm573_vm0, %v541_v39, 0.0  ;;  %v543_v52 = vunpack.c.l.bf16 %v6113_v48  ;;  %v6149_v22 = vld [vmem:[%s5885_s27 + $0x98] sm:$0xf] }
  0x47   : > { %5092 = vmatmul.mubr.msk.bf16.gmra.mrb[16].mxu0 %vm573_vm0, %v4612_v56  ;;  %5160 = vmatmul.mubr.msk.bf16.gmra.mrb[16].mxu1 %vm573_vm0, %v4612_v56  ;;  %v649_v49 = vadd.f32 %v648_v33, %v647_v37  ;;  %v634_v54 = vadd.f32 %v633_v31, %v632_v23  ;;  %v659_v56 = vsel %vm573_vm0, %v542_v46, 0.0  ;;  %v544_v57 = vunpack.c.l.bf16 %v6117_v51 }
  0x48   : > { %5095 = vmatprep.mubr.msk.bf16.mxu0 %vm573_vm0, %v4613_v11  ;;  %5163 = vmatprep.mubr.msk.bf16.mxu1 %vm573_vm0, %v4613_v11  ;;  %v766_v41 = vpack.c.bf16 %v758_v30, %v758_v30  ;;  %v660_v59 = vadd.f32 %v659_v56, %v658_v50  ;;  %v661_v60 = vsel %vm573_vm0, %v543_v52, 0.0  ;;  %v807_v62 = vadd.bf16 %v5880_v6, %v6048_v42  ;;  %v6179_v52 = vld [vmem:[%s5885_s27 + $0xa8] sm:$0xf] }
  0x49   : > { %v651_v58 = vadd.f32 %v650_v45, %v649_v49  ;;  %v808_v0 = vadd.bf16 %v5890_v7, %v6051_v43  ;;  %v663_v3 = vsel %vm573_vm0, %v544_v57, 0.0  ;;  %v809_v9 = vadd.bf16 %v5902_v17, %v6073_v63 }
  0x4a   : > { %v1745_v53 = vunpack.c.l.b16 %v766_v41  ;;  %v662_v11 = vadd.f32 %v661_v60, %v660_v59  ;;  %v545_v42 = vunpack.c.l.bf16 %v6129_v8  ;;  %v635_v13 = vrot.slane %v634_v54, 1 }
  0x4b   : > { %v652_v10 = vrot.slane %v651_v58, 4  ;;  %v810_v14 = vadd.bf16 %v5912_v24, %v6076_v1  ;;  %v546_v63 = vunpack.c.l.bf16 %v6136_v12  ;;  %v547_v25 = vunpack.c.l.bf16 %v6149_v22 }
  0x4c   : > { %v1752_v61 = vrot.slane %v1745_v53, 7  ;;  %v664_v19 = vadd.f32 %v663_v3, %v662_v11  ;;  %v665_v20 = vsel %vm573_vm0, %v545_v42, 0.0  ;;  %v4616_v2 = vcombine.low %v807_v62, %v808_v0  ;;  %v6182_v53 = vld [vmem:[%s5885_s27 + $0xac] sm:$0xf]  ;;  %v6192_v3 = vld [vmem:[%s5885_s27 + $0xb0] sm:$0xf] }
  0x4d   : > { %v653_v18 = vadd.f32 %v652_v10, %v651_v58  ;;  %v667_v23 = vsel %vm573_vm0, %v546_v63, 0.0  ;;  %v548_v1 = vunpack.c.l.bf16 %v6153_v26  ;;  %v636_v29 = vadd.f32 %v635_v13, %v634_v54  ;;  %v6197_v42 = vld [vmem:[%s5885_s27 + $0xb4] sm:$0xf] }
  0x4e   : > { %v6140_v43 = vsel %vm1753_vm1, %v1752_v61, %v1744_v47  ;;  %v666_v28 = vadd.f32 %v665_v20, %v664_v19  ;;  %v4617_v30 = vcombine.low %v809_v9, %v810_v14  ;;  %v811_v31 = vadd.bf16 %v5925_v34, %v6089_v21  ;;  %v6207_v20 = vld [vmem:[%s5885_s27 + $0xb8] sm:$0xf] }
  0x4f   : > { %5096 = vmatmul.mubr.msk.bf16.gmra.mrb[20].mxu0 %vm573_vm0, %v4614_v36  ;;  %5164 = vmatmul.mubr.msk.bf16.gmra.mrb[20].mxu1 %vm573_vm0, %v4614_v36  ;;  %v669_v33 = vsel %vm573_vm0, %v547_v25, 0.0  ;;  %v6161_v36 = vld [vmem:[%s5885_s27 + $0xa0] sm:$0xf]  ;;  %v654_v37 = vrot.slane %v653_v18, 2  ;;  %v812_v39 = vadd.bf16 %v5934_v40, %v6093_v27  ;;  %v813_v46 = vadd.bf16 %v5870_v4, %v6104_v35 }
  0x50   : > { %5099 = vmatprep.mubr.msk.bf16.mxu0 %vm573_vm0, %v4615_v44  ;;  %5167 = vmatprep.mubr.msk.bf16.mxu1 %vm573_vm0, %v4615_v44  ;;  %v668_v41 = vadd.f32 %v667_v23, %v666_v28  ;;  %v6166_v44 = vld [vmem:[%s5885_s27 + $0xa4] sm:$0xf]  ;;  %v549_v45 = vunpack.c.l.bf16 %v6161_v36  ;;  %v814_v21 = vadd.bf16 %v5875_v5, %v6107_v38  ;;  %v671_v47 = vsel %vm573_vm0, %v548_v1, 0.0  ;;  %v6211_v28 = vld [vmem:[%s5885_s27 + $0xbc] sm:$0xf] }
  0x51   : > { %v550_v49 = vunpack.c.l.bf16 %v6166_v44  ;;  %v745_v35 = vmul.f32 0.015625, %v636_v29  ;;  %v551_v54 = vunpack.c.l.bf16 %v6179_v52  ;;  %v552_v56 = vunpack.c.l.bf16 %v6182_v53  ;;  %v6214_v1 = vld [vmem:[%s5885_s27 + $0xc0] sm:$0xf] }
  0x52   : > { %v670_v27 = vadd.f32 %v669_v33, %v668_v41  ;;  %v679_v50 = vsel %vm573_vm0, %v549_v45, 0.0  ;;  %v655_v57 = vadd.f32 %v654_v37, %v653_v18  ;;  %v4618_v60 = vcombine.low %v811_v31, %v812_v39  ;;  %v6222_v31 = vld [vmem:[%s5885_s27 + $0xc4] sm:$0xf] }
  0x53   : > { %v680_v38 = vsel %vm573_vm0, %v550_v49, 0.0  ;;  %v4619_v61 = vcombine.low %v813_v46, %v814_v21  ;;  %v682_v62 = vsel %vm573_vm0, %v551_v54, 0.0  ;;  %v684_v0 = vsel %vm573_vm0, %v552_v56, 0.0 }
  0x54   : > { %v672_v58 = vadd.f32 %v671_v47, %v670_v27  ;;  %v681_v59 = vadd.f32 %v680_v38, %v679_v50  ;;  %v815_v9 = vadd.bf16 %v5880_v6, %v6113_v48  ;;  %v553_v13 = vunpack.c.l.bf16 %v6192_v3  ;;  %v6234_v27 = vld [vmem:[%s5885_s27 + $0xc8] sm:$0xf]  ;;  %v6237_v50 = vld [vmem:[%s5885_s27 + $0xcc] sm:$0xf] }
  0x55   : > { %v759_v14 = vadd.f32 %v6066_v55, %v745_v35  ;;  %v816_v63 = vadd.bf16 %v5890_v7, %v6117_v51  ;;  %v817_v18 = vadd.bf16 %v5902_v17, %v6129_v8  ;;  %v554_v19 = vunpack.c.l.bf16 %v6197_v42 }
  0x56   : > { %v673_v10 = vrot.slane %v672_v58, 4  ;;  %v683_v11 = vadd.f32 %v682_v62, %v681_v59  ;;  %v656_v48 = vrot.slane %v655_v57, 1  ;;  %v818_v29 = vadd.bf16 %v5912_v24, %v6136_v12 }
  0x57   : > { %5100 = vmatmul.mubr.msk.bf16.gmra.mrb[24].mxu0 %vm573_vm0, %v4616_v2  ;;  %5168 = vmatmul.mubr.msk.bf16.gmra.mrb[24].mxu1 %vm573_vm0, %v4616_v2  ;;  %v686_v2 = vsel %vm573_vm0, %v553_v13, 0.0  ;;  %v688_v51 = vsel %vm573_vm0, %v554_v19, 0.0  ;;  %v555_v8 = vunpack.c.l.bf16 %v6207_v20  ;;  %v4620_v39 = vcombine.low %v815_v9, %v816_v63 }
  0x58   : > { %5103 = vmatprep.mubr.msk.bf16.mxu0 %vm573_vm0, %v4617_v30  ;;  %5171 = vmatprep.mubr.msk.bf16.mxu1 %vm573_vm0, %v4617_v30  ;;  %v674_v23 = vadd.f32 %v673_v10, %v672_v58  ;;  %v685_v25 = vadd.f32 %v684_v0, %v683_v11  ;;  %v556_v30 = vunpack.c.l.bf16 %v6211_v28  ;;  %v819_v12 = vadd.bf16 %v5925_v34, %v6149_v22 }
  0x59   : > { %v690_v41 = vsel %vm573_vm0, %v555_v8, 0.0  ;;  %v557_v45 = vunpack.c.l.bf16 %v6214_v1  ;;  %v657_v46 = vadd.f32 %v656_v48, %v655_v57  ;;  %v558_v49 = vunpack.c.l.bf16 %v6222_v31  ;;  %v6261_v48 = vld [vmem:[%s5885_s27 + $0xd8] sm:$0xf] }
  0x5a   : > { %v675_v33 = vrot.slane %v674_v23, 2  ;;  %v687_v37 = vadd.f32 %v686_v2, %v685_v25  ;;  %v767_v35 = vpack.c.bf16 %v759_v14, %v759_v14  ;;  %v4621_v38 = vcombine.low %v817_v18, %v818_v29  ;;  %v6266_v2 = vld [vmem:[%s5885_s27 + $0xdc] sm:$0xf] }
  0x5b   : > { %v692_v54 = vsel %vm573_vm0, %v556_v30, 0.0  ;;  %v700_v22 = vsel %vm573_vm0, %v557_v45, 0.0  ;;  %v820_v58 = vadd.bf16 %v5934_v40, %v6153_v26  ;;  %v701_v57 = vsel %vm573_vm0, %v558_v49, 0.0  ;;  %v6279_v45 = vld [vmem:[%s5885_s27 + $0xe4] sm:$0xf] }
  0x5c   : > { %v676_v21 = vadd.f32 %v675_v33, %v674_v23  ;;  %v689_v47 = vadd.f32 %v688_v51, %v687_v37  ;;  %v821_v62 = vadd.bf16 %v5870_v4, %v6161_v36  ;;  %v702_v0 = vadd.f32 %v701_v57, %v700_v22  ;;  %v6289_v22 = vld [vmem:[%s5885_s27 + $0xe8] sm:$0xf] }
  0x5d   : > { %v559_v9 = vunpack.c.l.bf16 %v6234_v27  ;;  %v560_v10 = vunpack.c.l.bf16 %v6237_v50  ;;  %v746_v11 = vmul.f32 0.015625, %v657_v46  ;;  %v822_v26 = vadd.bf16 %v5875_v5, %v6166_v44 }
  0x5e   : > { %v677_v56 = vrot.slane %v676_v21, 1  ;;  %v691_v59 = vadd.f32 %v690_v41, %v689_v47  ;;  %v6268_v29 = vunpack.c.l.b16 %v767_v35  ;;  %v4622_v51 = vcombine.low %v819_v12, %v820_v58  ;;  %v6276_v41 = vld [vmem:[%s5885_s27 + $0xe0] sm:$0xf] }
  0x5f   : > { %5104 = vmatmul.mubr.msk.bf16.gmra.mrb[28].mxu0 %vm573_vm0, %v4618_v60  ;;  %5172 = vmatmul.mubr.msk.bf16.gmra.mrb[28].mxu1 %vm573_vm0, %v4618_v60  ;;  %v6245_v60 = vld [vmem:[%s5885_s27 + $0xd0] sm:$0xf]  ;;  %v703_v63 = vsel %vm573_vm0, %v559_v9, 0.0  ;;  %v705_v18 = vsel %vm573_vm0, %v560_v10, 0.0  ;;  %v760_v30 = vadd.f32 %v6066_v55, %v746_v11  ;;  %v4623_v46 = vcombine.low %v821_v62, %v822_v26  ;;  %v6299_v9 = vld [vmem:[%s5885_s27 + $0xec] sm:$0xf] }
  0x60   : > { %5107 = vmatprep.mubr.msk.bf16.mxu0 %vm573_vm0, %v4619_v61  ;;  %5175 = vmatprep.mubr.msk.bf16.mxu1 %vm573_vm0, %v4619_v61  ;;  %v6248_v61 = vld [vmem:[%s5885_s27 + $0xd4] sm:$0xf]  ;;  %v678_v13 = vadd.f32 %v677_v56, %v676_v21  ;;  %v693_v14 = vadd.f32 %v692_v54, %v691_v59  ;;  %v561_v19 = vunpack.c.l.bf16 %v6245_v60  ;;  %v704_v44 = vadd.f32 %v703_v63, %v702_v0 }
  0x61   : > { %v562_v36 = vunpack.c.l.bf16 %v6248_v61  ;;  %v823_v21 = vadd.bf16 %v5880_v6, %v6179_v52  ;;  %v564_v47 = vunpack.c.l.bf16 %v6266_v2  ;;  %v824_v35 = vadd.bf16 %v5890_v7, %v6182_v53 }
  0x62   : > { %v747_v23 = vmul.f32 0.015625, %v678_v13  ;;  %v694_v25 = vrot.slane %v693_v14, 4  ;;  %v707_v8 = vsel %vm573_vm0, %v561_v19, 0.0  ;;  %v706_v37 = vadd.f32 %v705_v18, %v704_v44  ;;  %v6308_v18 = vld [vmem:[%s5885_s27 + $0xf0] sm:$0xf] }
  0x63   : > { %v709_v12 = vsel %vm573_vm0, %v562_v36, 0.0  ;;  %v825_v56 = vadd.bf16 %v5902_v17, %v6192_v3  ;;  %v565_v52 = vunpack.c.l.bf16 %v6276_v41  ;;  %v566_v59 = vunpack.c.l.bf16 %v6279_v45  ;;  %v6311_v19 = vld [vmem:[%s5885_s27 + $0xf4] sm:$0xf] }
  0x64   : > { %v695_v33 = vadd.f32 %v694_v25, %v693_v14  ;;  %v761_v49 = vadd.f32 %v6066_v55, %v747_v23  ;;  %v708_v54 = vadd.f32 %v707_v8, %v706_v37  ;;  %v768_v57 = vpack.c.bf16 %v760_v30, %v760_v30  ;;  %v6319_v37 = vld [vmem:[%s5885_s27 + $0xf8] sm:$0xf] }
  0x65   : > { %v826_v62 = vadd.bf16 %v5912_v24, %v6197_v42  ;;  %v713_v10 = vsel %vm573_vm0, %v564_v47, 0.0  ;;  %v721_v3 = vsel %vm573_vm0, %v565_v52, 0.0  ;;  %v722_v11 = vsel %vm573_vm0, %v566_v59, 0.0 }
  0x66   : > { %v710_v0 = vadd.f32 %v709_v12, %v708_v54  ;;  %v567_v13 = vunpack.c.l.bf16 %v6289_v22  ;;  %v769_v26 = vpack.c.bf16 %v761_v49, %v761_v49  ;;  %v723_v63 = vadd.f32 %v722_v11, %v721_v3 }
  0x67   : > { %5108 = vmatmul.mubr.msk.bf16.gmra.mrb[32].mxu0 %vm573_vm0, %v4620_v39  ;;  %5176 = vmatmul.mubr.msk.bf16.gmra.mrb[32].mxu1 %vm573_vm0, %v4620_v39  ;;  %v563_v39 = vunpack.c.l.bf16 %v6261_v48  ;;  %v1755_v36 = vrot.slane %v6268_v29, 6  ;;  %v4624_v23 = vcombine.low %v823_v21, %v824_v35  ;;  %v568_v25 = vunpack.c.l.bf16 %v6299_v9  ;;  %v6325_v21 = vld [vmem:[%s5885_s27 + $0xfc] sm:$0xf]  ;;  %s4598_s27 = sshll.u32 %s434_s24, 3 }
  0x68   : > { %5111 = vmatprep.mubr.msk.bf16.mxu0 %vm573_vm0, %v4621_v38  ;;  %5179 = vmatprep.mubr.msk.bf16.mxu1 %vm573_vm0, %v4621_v38  ;;  %v696_v38 = vrot.slane %v695_v33, 2  ;;  %v724_v44 = vsel %vm573_vm0, %v567_v13, 0.0  ;;  %v569_v29 = vunpack.c.l.bf16 %v6308_v18  ;;  %v570_v47 = vunpack.c.l.bf16 %v6311_v19  ;;  %s436_s20 = scalar_lea.vmem [#allocation2], %s4598_s27  ;;  %s5728_s27 = smov [#allocation2]  }
  0x69   : > { %v711_v58 = vsel %vm573_vm0, %v563_v39, 0.0  ;;  %v1747_v39 = vunpack.c.l.b16 %v768_v57  ;;  %v726_v12 = vsel %vm573_vm0, %v568_v25, 0.0  ;;  %v827_v54 = vadd.bf16 %v5925_v34, %v6207_v20  ;;  %s4535_s21 = sshll.u32 %s436_s20, 4  ;;  %s5664_s30 = sshll.u32 %s5728_s27, 4  ;;  %s8378_s21 = int_to_ptr.vmem [resolvable:$true] %s4535_s21  ;;  %s5665_s30 = int_to_ptr.vmem [resolvable:$false] %s5664_s30 }
  0x6a   : > { %v697_v53 = vadd.f32 %v696_v38, %v695_v33  ;;  %v712_v42 = vadd.f32 %v711_v58, %v710_v0  ;;  %v725_v33 = vadd.f32 %v724_v44, %v723_v63  ;;  %v730_v58 = vsel %vm573_vm0, %v570_v47, 0.0  ;;  %s5660_s29 = scalar_lea.vmem %s8378_s21, 128  ;;  %s5666_s15 = scalar_lea.vmem %s5665_s30, 256 }
  0x6b   : > { %v571_v52 = vunpack.c.l.bf16 %v6319_v37  ;;  %v1758_v0 = vrot.slane %v1747_v39, 5  ;;  %v829_v3 = vadd.bf16 %v5870_v4, %v6214_v1  ;;  %vm3696_vm10 = vcmask 1043456   ;;  %p5661_p11 = scmp.ne.s32.totalorder %s8378_s21, %s5660_s29  ;;  %p5667_p0 = scmp.lt.s32.totalorder %s8378_s21, %s5665_s30 }
  0x6c   : > { %v698_v14 = vrot.slane %v697_v53, 1  ;;  %v714_v30 = vadd.f32 %v713_v10, %v712_v42  ;;  %v727_v38 = vadd.f32 %v726_v12, %v725_v33  ;;  %v828_v10 = vadd.bf16 %v5934_v40, %v6211_v28  ;;  %p5668_p1 = scmp.lt.s32.totalorder %s5666_s15, %s5660_s29 }
  0x6d   : > { %v732_v20 = vsel %vm573_vm0, %v571_v52, 0.0  ;;  %v830_v28 = vadd.bf16 %v5875_v5, %v6222_v31  ;;  %p5662_p12 = pnand %p5661_p11, %p5837_p5 }
  0x6e   : > { %v699_v8 = vadd.f32 %v698_v14, %v697_v53  ;;  %v715_v35 = vrot.slane %v714_v30, 4  ;;  %v572_v53 = vunpack.c.l.bf16 %v6325_v21  ;;  %v4626_v25 = vcombine.low %v827_v54, %v828_v10  ;;  %p5669_p2 = por %p5668_p1, %p5667_p0 }
  0x6f   : > { %5112 = vmatmul.mubr.msk.bf16.gmra.mrb[36].mxu0 %vm573_vm0, %v4622_v51  ;;  %5180 = vmatmul.mubr.msk.bf16.gmra.mrb[36].mxu1 %vm573_vm0, %v4622_v51  ;;  %v4625_v51 = vcombine.low %v825_v56, %v826_v62  ;;  %v728_v56 = vsel %vm573_vm0, %v569_v29, 0.0  ;;  %v4627_v31 = vcombine.low %v829_v3, %v830_v28  ;;  %p5663_p13 = pneg %p5662_p12 }
  0x70   : > { %5115 = vmatprep.mubr.msk.bf16.mxu0 %vm573_vm0, %v4623_v46  ;;  %5183 = vmatprep.mubr.msk.bf16.mxu1 %vm573_vm0, %v4623_v46  ;;  %v1748_v46 = vunpack.c.l.b16 %v769_v26  ;;  %v748_v49 = vmul.f32 0.015625, %v699_v8  ;;  %v716_v57 = vadd.f32 %v715_v35, %v714_v30  ;;  %v729_v62 = vadd.f32 %v728_v56, %v727_v38 }
  0x71   : > { %v734_v42 = vsel %vm573_vm0, %v572_v53, 0.0  ;;  %p5670_p3 = pnand %p5669_p2, %p5663_p13 }
  0x72   : > { %v762_v59 = vadd.f32 %v6066_v55, %v748_v49  ;;  %v1761_v11 = vrot.slane %v1748_v46, 4  ;;  %v717_v26 = vrot.slane %v716_v57, 2  ;;  %v731_v14 = vadd.f32 %v730_v58, %v729_v62  ;;  %v5655_v62 = vld [vmem:[%s8420_s2 + $0x4] sm:$0xf] }
  0x73   : > { %v833_v46 = vadd.bf16 %v5902_v17, %v6245_v60  ;;  %v834_v49 = vadd.bf16 %v5912_v24, %v6248_v61  ;;  %v835_v60 = vadd.bf16 %v5925_v34, %v6261_v48  ;;  %v836_v61 = vadd.bf16 %v5934_v40, %v6266_v2 }
  0x74   : > { %v770_v13 = vpack.c.bf16 %v762_v59, %v762_v59  ;;  %v718_v1 = vadd.f32 %v717_v26, %v716_v57  ;;  %v733_v63 = vadd.f32 %v732_v20, %v731_v14  ;;  %v5654_v59 = vld [vmem:[%s8420_s2] sm:$0xf]  ;;  %v838_v48 = vadd.bf16 %v5655_v62, %v6279_v45  ;;  %v5657_v45 = vld [vmem:[%s8420_s2 + $0xc] sm:$0xf] }
  0x75   : > { %v4629_v56 = vcombine.low %v833_v46, %v834_v49  ;;  %v837_v57 = vadd.bf16 %v5654_v59, %v6276_v41  ;;  %v5656_v41 = vld [vmem:[%s8420_s2 + $0x8] sm:$0xf]  ;;  %v842_v14 = vadd.bf16 %v5912_v24, %v6311_v19  ;;  %v1910_v19 = vld [vmem:[%s8429_s11] sm:$0xff] }
  0x76   : > { %v1749_v4 = vunpack.c.l.b16 %v770_v13  ;;  %v735_v30 = vadd.f32 %v734_v42, %v733_v63  ;;  %v840_v13 = vadd.bf16 %v5657_v45, %v6299_v9  ;;  %v843_v9 = vadd.bf16 %v5925_v34, %v6319_v37  ;;  %v5658_v34 = vld [vmem:[%s8423_s5] sm:$0xff]   ;;  %v1911_v37 = vld [vmem:[%s8429_s11 + $0x8] sm:$0xff] }
  0x77   : > { %5116 = vmatmul.mubr.msk.bf16.gmra.mrb[40].mxu0 %vm573_vm0, %v4624_v23  ;;  %5184 = vmatmul.mubr.msk.bf16.gmra.mrb[40].mxu1 %vm573_vm0, %v4624_v23  ;;  %v1757_v23 = vsel %vm1756_vm2, %v1755_v36, %v6140_v43  ;;  %v831_v43 = vadd.bf16 %v5880_v6, %v6234_v27  ;;  %v832_v36 = vadd.bf16 %v5890_v7, %v6237_v50 }
  0x78   : > { %5119 = vmatprep.mubr.msk.bf16.mxu0 %vm573_vm0, %v4625_v51  ;;  %5187 = vmatprep.mubr.msk.bf16.mxu1 %vm573_vm0, %v4625_v51  ;;  %v1760_v44 = vsel %vm1759_vm3, %v1758_v0, %v1757_v23  ;;  %v1764_v8 = vrot.slane %v1749_v4, 3  ;;  %v719_v51 = vrot.slane %v718_v1, 1  ;;  %v736_v39 = vrot.slane %v735_v30, 4 }
  0x79   : > { %v1763_v5 = vsel %vm1762_vm4, %v1761_v11, %v1760_v44  ;;  %v4628_v54 = vcombine.low %v831_v43, %v832_v36  ;;  %v4630_v0 = vcombine.low %v835_v60, %v836_v61  ;;  %v4631_v3 = vcombine.low %v837_v57, %v838_v48 }
  0x7a   : > { %v720_v33 = vadd.f32 %v719_v51, %v718_v1  ;;  %v1766_v12 = vsel %vm1765_vm5, %v1764_v8, %v1763_v5  ;;  %v737_v47 = vadd.f32 %v736_v39, %v735_v30  ;;  %v839_v11 = vadd.bf16 %v5656_v41, %v6289_v22  ;;  %v1912_v30 = vld [vmem:[%s8429_s11 + $0x10] sm:$0xff]  ;;  %v1913_v5 = vld [vmem:[%s8429_s11 + $0x18] sm:$0xff] }
  0x7b   : > { %v844_v1 = vadd.bf16 %v5934_v40, %v6325_v21  ;;  %v5659_v40 = vld [vmem:[%s8423_s5 + $0x8] sm:$0xff]   ;;  %v5457_v21 = vpack.c.bf16 %v1911_v37, %v1910_v19  ;;  %v5461_v39 = vpack.c.bf16 %v1913_v5, %v1912_v30 }
  0x7c   : > { %v749_v29 = vmul.f32 0.015625, %v720_v33  ;;  %v738_v38 = vrot.slane %v737_v47, 2  ;;  %v4632_v22 = vcombine.low %v839_v11, %v840_v13 }
  0x7d   : > { %5458 = vmatprep.subr.bf16.mxu1 %v5457_v21 }
  0x7e   : > { %v763_v35 = vadd.f32 %v6066_v55, %v749_v29  ;;  %v739_v27 = vadd.f32 %v738_v38, %v737_v47 }
  0x7f   : > { %5120 = vmatmul.mubr.msk.bf16.gmra.mrb[44].mxu0 %vm573_vm0, %v4626_v25  ;;  %5188 = vmatmul.mubr.msk.bf16.gmra.mrb[44].mxu1 %vm573_vm0, %v4626_v25 }
  0x80   : > { %5123 = vmatprep.mubr.msk.bf16.mxu0 %vm573_vm0, %v4627_v31  ;;  %5191 = vmatprep.mubr.msk.bf16.mxu1 %vm573_vm0, %v4627_v31  ;;  %v771_v6 = vpack.c.bf16 %v763_v35, %v763_v35  ;;  %v740_v50 = vrot.slane %v739_v27, 1 }
  0x82   : > { %v1750_v7 = vunpack.c.l.b16 %v771_v6  ;;  %v741_v58 = vadd.f32 %v740_v50, %v739_v27 }
  0x84   : > { %v1767_v52 = vrot.slane %v1750_v7, 2  ;;  %v750_v53 = vmul.f32 0.015625, %v741_v58 }
  0x86   : > { %v1769_v2 = vsel %vm1768_vm6, %v1767_v52, %v1766_v12  ;;  %v764_v10 = vadd.f32 %v6066_v55, %v750_v53  ;;  %v841_v55 = vadd.bf16 %v5902_v17, %v6308_v18  ;;  %v4634_v17 = vcombine.low %v843_v9, %v844_v1 }
  0x87   : > { %5124 = vmatmul.mubr.msk.bf16.gmra.mrb[48].mxu0 %vm573_vm0, %v4628_v54  ;;  %5192 = vmatmul.mubr.msk.bf16.gmra.mrb[48].mxu1 %vm573_vm0, %v4628_v54  ;;  %v5726_v18 = vmov 0.0|0.0  }
  0x88   : > { %5127 = vmatprep.mubr.msk.bf16.mxu0 %vm573_vm0, %v4629_v56  ;;  %5195 = vmatprep.mubr.msk.bf16.mxu1 %vm573_vm0, %v4629_v56  ;;  %v772_v20 = vpack.c.bf16 %v764_v10, %v764_v10  ;;  %v4633_v4 = vcombine.low %v841_v55, %v842_v14 }
  0x8a   : > { %v1751_v26 = vunpack.c.l.b16 %v772_v20 }
  0x8c   : > { %v1770_v28 = vrot.slane %v1751_v26, 1 }
  0x8e   : > { %v1772_v42 = vsel %vm1771_vm7, %v1770_v28, %v1769_v2 }
  0x8f   : > { %5128 = vmatmul.mubr.msk.bf16.gmra.mrb[52].mxu0 %vm573_vm0, %v4630_v0  ;;  %5196 = vmatmul.mubr.msk.bf16.gmra.mrb[52].mxu1 %vm573_vm0, %v4630_v0  ;;  %v1773_v24 = vpack.c.b16 %v1772_v42, %v1772_v42 }
  0x90   : > { %5131 = vmatprep.mubr.msk.bf16.mxu0 %vm573_vm0, %v4631_v3  ;;  %5199 = vmatprep.mubr.msk.bf16.mxu1 %vm573_vm0, %v4631_v3 }
  0x97   : > { %5132 = vmatmul.mubr.msk.bf16.gmra.mrb[56].mxu0 %vm573_vm0, %v4632_v22  ;;  %5200 = vmatmul.mubr.msk.bf16.gmra.mrb[56].mxu1 %vm573_vm0, %v4632_v22 }
  0x98   : > { %5135 = vmatprep.mubr.msk.bf16.mxu0 %vm573_vm0, %v4633_v4  ;;  %5203 = vmatprep.mubr.msk.bf16.mxu1 %vm573_vm0, %v4633_v4 }
  0x9f   : > { %5136 = vmatmul.mubr.msk.bf16.gmra.mrb[60].mxu0 %vm573_vm0, %v4634_v17  ;;  %5204 = vmatmul.mubr.msk.bf16.gmra.mrb[60].mxu1 %vm573_vm0, %v4634_v17 }
  0xa0   : > { %5211 = vmatprep.mubr.msk.bf16.mxu0 %vm5725_vm8, %v8433_v15  ;;  %5219 = vmatprep.mubr.msk.bf16.mxu1 %vm5725_vm8, %v8433_v15 }
  0xa7   : > { %5212 = vmatmul.mubr.msk.bf16.vlgmr.msra.gmra.mrb[64].mxu0 %vm573_vm0, %v1773_v24  ;;  %5220 = vmatmul.mubr.msk.bf16.vlgmr.msra.gmra.mrb[64].mxu1 %vm573_vm0, %v1773_v24 }
  0xa8   : > { %5224 = vmatpush3.bf16.msra.mxu0 %v5658_v34  ;;  %5227 = vmatprep.mubr.msk.bf16.mxu0 %vm5725_vm8, %v8433_v15 }
  0xa9   : > { %5225 = vmatprep.subr.bf16.mxu0 %v8433_v15  ;;  %5460 = vmatpush3.bf16.msra.mxu1 %v5457_v21 }
  0xaa   : > { %5462 = vmatprep.subr.bf16.mxu1 %v5461_v39 }
  0xac   : > { %5226 = vmatpush3.bf16.msra.mxu0 %v5659_v40 }
  0xad   : > { %5465 = vmatprep.subr.bf16.mxu0 %v5726_v18  ;;  %5464 = vmatpush3.bf16.msra.mxu1 %v5461_v39 }
  0xae   : > { %5444 = vmatprep.subr.mxu1 %v8433_v15 }
  0xaf   : > { %5228 = vmatmul.mubr.msk.bf16.vlgmr.msra.gmra.mrb[68].mxu0 %vm573_vm0, %v1773_v24 }
  0xb0   : > { %5343 = vmatprep.mubr.msk.f32.mxu0 %vm5725_vm8, %v8433_v15  ;;  %5467 = vmatpush3.bf16.msra.mxu0 %v5457_v21 }
  0xb1   : > { %5468 = vmatprep.subr.bf16.mxu0 %v5726_v18 }
  0xb4   : > { %5470 = vmatpush3.bf16.msra.mxu0 %v5461_v39 }
  0xfa   : > { %v6433_v63 = vpop.f32.mrb[0].mxu0  ;;  %v6435_v23 = vpop.f32.mrb[0].mxu1 }
  0xfb   : > { %8490 = vst [vmem:[#allocation8_spill] sm:$0xff] %v6435_v23  ;;  %v6437_v25 = vpop.f32.mrb[1].mxu0  ;;  %v6439_v44 = vpop.f32.mrb[1].mxu1 }
  0xfc   : > { %8491 = vst [vmem:[#allocation9_spill] sm:$0xff] %v6439_v44  ;;  %v6441_v8 = vpop.f32.mrb[2].mxu0  ;;  %v6443_v51 = vpop.f32.mrb[2].mxu1 }
  0xfd   : > { %8492 = vst [vmem:[#allocation10_spill] sm:$0xff] %v6443_v51  ;;  %v6451_v31 = vpop.f32.mrb[3].mxu0  ;;  %v6453_v33 = vpop.f32.mrb[3].mxu1 }
  0xfe   : > { %8493 = vst [vmem:[#allocation11_spill] sm:$0xff] %v6453_v33 }
 0x102   : > { %v6456_v12 = vpop.f32.mrb[4].mxu0  ;;  %v6458_v43 = vpop.f32.mrb[4].mxu1 }
 0x103   : > { %8494 = vst [vmem:[#allocation12_spill] sm:$0xff] %v6458_v43  ;;  %v6460_v36 = vpop.f32.mrb[5].mxu0  ;;  %v6462_v29 = vpop.f32.mrb[5].mxu1 }
 0x104   : > { %8495 = vst [vmem:[#allocation13_spill] sm:$0xff] %v6462_v29  ;;  %v6464_v47 = vpop.f32.mrb[6].mxu0  ;;  %v6466_v46 = vpop.f32.mrb[6].mxu1 }
 0x105   : > { %8496 = vst [vmem:[#allocation14_spill] sm:$0xff] %v6466_v46  ;;  %v6468_v49 = vpop.f32.mrb[7].mxu0  ;;  %v6470_v35 = vpop.f32.mrb[7].mxu1 }
 0x106   : > { %8497 = vst [vmem:[#allocation15_spill] sm:$0xff] %v6470_v35 }
 0x10a   : > { %v6472_v38 = vpop.f32.mrb[8].mxu0  ;;  %v6474_v54 = vpop.f32.mrb[8].mxu1 }
 0x10b   : > { %8498 = vst [vmem:[#allocation16_spill] sm:$0xff] %v6474_v54  ;;  %v6476_v6 = vpop.f32.mrb[9].mxu0  ;;  %v6478_v27 = vpop.f32.mrb[9].mxu1 }
 0x10c   : > { %8499 = vst [vmem:[#allocation17_spill] sm:$0xff] %v6478_v27  ;;  %v6480_v56 = vpop.f32.mrb[10].mxu0  ;;  %v6482_v7 = vpop.f32.mrb[10].mxu1 }
 0x10d   : > { %8500 = vst [vmem:[#allocation18_spill] sm:$0xff] %v6482_v7  ;;  %v6484_v50 = vpop.f32.mrb[11].mxu0  ;;  %v6486_v60 = vpop.f32.mrb[11].mxu1 }
 0x10e   : > { %8501 = vst [vmem:[#allocation19_spill] sm:$0xff] %v6486_v60 }
 0x112   : > { %v6488_v61 = vpop.f32.mrb[12].mxu0  ;;  %v6490_v58 = vpop.f32.mrb[12].mxu1 }
 0x113   : > { %8502 = vst [vmem:[#allocation20_spill] sm:$0xff] %v6490_v58  ;;  %v6492_v52 = vpop.f32.mrb[13].mxu0  ;;  %v6494_v59 = vpop.f32.mrb[13].mxu1 }
 0x114   : > { %8503 = vst [vmem:[#allocation21_spill] sm:$0xff] %v6494_v59  ;;  %v6496_v57 = vpop.f32.mrb[14].mxu0  ;;  %v6498_v62 = vpop.f32.mrb[14].mxu1 }
 0x115   : > { %8504 = vst [vmem:[#allocation22_spill] sm:$0xff] %v6498_v62  ;;  %v6500_v48 = vpop.f32.mrb[15].mxu0  ;;  %v6502_v53 = vpop.f32.mrb[15].mxu1 }
 0x116   : > { %8505 = vst [vmem:[#allocation23_spill] sm:$0xff] %v6502_v53 }
 0x11a   : > { %v6504_v2 = vpop.f32.mrb[16].mxu0  ;;  %v6506_v0 = vpop.f32.mrb[16].mxu1 }
 0x11b   : > { %8506 = vst [vmem:[#allocation24_spill] sm:$0xff] %v6506_v0  ;;  %v6508_v10 = vpop.f32.mrb[17].mxu0  ;;  %v6510_v3 = vpop.f32.mrb[17].mxu1 }
 0x11c   : > { %8507 = vst [vmem:[#allocation25_spill] sm:$0xff] %v6510_v3  ;;  %v6512_v20 = vpop.f32.mrb[18].mxu0  ;;  %v6514_v41 = vpop.f32.mrb[18].mxu1 }
 0x11d   : > { %8508 = vst [vmem:[#allocation26_spill] sm:$0xff] %v6514_v41  ;;  %v6516_v11 = vpop.f32.mrb[19].mxu0  ;;  %v6518_v45 = vpop.f32.mrb[19].mxu1 }
 0x11e   : > { %8509 = vst [vmem:[#allocation27_spill] sm:$0xff] %v6518_v45 }
 0x122   : > { %v6520_v13 = vpop.f32.mrb[20].mxu0  ;;  %v6522_v26 = vpop.f32.mrb[20].mxu1 }
 0x123   : > { %8510 = vst [vmem:[#allocation28_spill] sm:$0xff] %v6522_v26  ;;  %v6524_v55 = vpop.f32.mrb[21].mxu0  ;;  %v6526_v14 = vpop.f32.mrb[21].mxu1 }
 0x124   : > { %8511 = vst [vmem:[#allocation29_spill] sm:$0xff] %v6526_v14  ;;  %v6528_v28 = vpop.f32.mrb[22].mxu0  ;;  %v6530_v22 = vpop.f32.mrb[22].mxu1 }
 0x125   : > { %8512 = vst [vmem:[#allocation30_spill] sm:$0xff] %v6530_v22  ;;  %v6532_v42 = vpop.f32.mrb[23].mxu0  ;;  %v6534_v4 = vpop.f32.mrb[23].mxu1 }
 0x126   : > { %8513 = vst [vmem:[#allocation31_spill] sm:$0xff] %v6534_v4 }
 0x12a   : > { %v6536_v9 = vpop.f32.mrb[24].mxu0  ;;  %v6538_v1 = vpop.f32.mrb[24].mxu1 }
 0x12b   : > { %8514 = vst [vmem:[#allocation32_spill] sm:$0xff] %v6538_v1  ;;  %v6540_v17 = vpop.f32.mrb[25].mxu0  ;;  %v6542_v24 = vpop.f32.mrb[25].mxu1 }
 0x12c   : > { %8515 = vst [vmem:[#allocation33_spill] sm:$0xff] %v6542_v24  ;;  %v6544_v34 = vpop.f32.mrb[26].mxu0  ;;  %v6546_v40 = vpop.f32.mrb[26].mxu1 }
 0x12d   : > { %8516 = vst [vmem:[#allocation34_spill] sm:$0xff] %v6546_v40  ;;  %v6548_v18 = vpop.f32.mrb[27].mxu0  ;;  %v6550_v19 = vpop.f32.mrb[27].mxu1 }
 0x12e   : > { %8517 = vst [vmem:[#allocation35_spill] sm:$0xff] %v6550_v19 }
 0x132   : > { %v6552_v37 = vpop.f32.mrb[28].mxu0  ;;  %v6554_v21 = vpop.f32.mrb[28].mxu1 }
 0x133   : > { %8518 = vst [vmem:[#allocation36_spill] sm:$0xff] %v6554_v21  ;;  %v6556_v30 = vpop.f32.mrb[29].mxu0  ;;  %v6558_v5 = vpop.f32.mrb[29].mxu1 }
 0x134   : > { %8519 = vst [vmem:[#allocation37_spill] sm:$0xff] %v6558_v5  ;;  %v6560_v39 = vpop.f32.mrb[30].mxu0  ;;  %v6562_v15 = vpop.f32.mrb[30].mxu1 }
 0x135   : > { %8520 = vst [vmem:[#allocation38_spill] sm:$0xff] %v6562_v15  ;;  %v6564_v1 = vpop.f32.mrb[31].mxu0  ;;  %v6566_v24 = vpop.f32.mrb[31].mxu1 }
 0x136   : > { %8521 = vst [vmem:[#allocation39_spill] sm:$0xff] %v6566_v24 }
 0x13a   : > { %v6568_v40 = vpop.f32.mrb[32].mxu0  ;;  %v6570_v26 = vpop.f32.mrb[32].mxu1 }
 0x13b   : > { %8522 = vst [vmem:[#allocation40_spill] sm:$0xff] %v6570_v26  ;;  %v6572_v19 = vpop.f32.mrb[33].mxu0  ;;  %v6574_v22 = vpop.f32.mrb[33].mxu1 }
 0x13c   : > { %8523 = vst [vmem:[#allocation41_spill] sm:$0xff] %v6574_v22  ;;  %v6576_v21 = vpop.f32.mrb[34].mxu0  ;;  %v6578_v14 = vpop.f32.mrb[34].mxu1 }
 0x13d   : > { %8524 = vst [vmem:[#allocation42_spill] sm:$0xff] %v6578_v14  ;;  %v6580_v5 = vpop.f32.mrb[35].mxu0  ;;  %v6582_v4 = vpop.f32.mrb[35].mxu1 }
 0x13e   : > { %8525 = vst [vmem:[#allocation43_spill] sm:$0xff] %v6582_v4 }
 0x142   : > { %v6584_v15 = vpop.f32.mrb[36].mxu0  ;;  %v6586_v0 = vpop.f32.mrb[36].mxu1 }
 0x143   : > { %8526 = vst [vmem:[#allocation44_spill] sm:$0xff] %v6586_v0  ;;  %v6588_v24 = vpop.f32.mrb[37].mxu0  ;;  %v6590_v41 = vpop.f32.mrb[37].mxu1 }
 0x144   : > { %8527 = vst [vmem:[#allocation45_spill] sm:$0xff] %v6590_v41  ;;  %v6592_v26 = vpop.f32.mrb[38].mxu0  ;;  %v6594_v3 = vpop.f32.mrb[38].mxu1 }
 0x145   : > { %8528 = vst [vmem:[#allocation46_spill] sm:$0xff] %v6594_v3  ;;  %v6596_v22 = vpop.f32.mrb[39].mxu0  ;;  %v6598_v45 = vpop.f32.mrb[39].mxu1 }
 0x146   : > { %8529 = vst [vmem:[#allocation47_spill] sm:$0xff] %v6598_v45 }
 0x14a   : > { %v6600_v14 = vpop.f32.mrb[40].mxu0  ;;  %v6602_v58 = vpop.f32.mrb[40].mxu1 }
 0x14b   : > { %8530 = vst [vmem:[#allocation48_spill] sm:$0xff] %v6602_v58  ;;  %v6604_v4 = vpop.f32.mrb[41].mxu0  ;;  %v6606_v62 = vpop.f32.mrb[41].mxu1 }
 0x14c   : > { %8531 = vst [vmem:[#allocation49_spill] sm:$0xff] %v6606_v62  ;;  %v6608_v0 = vpop.f32.mrb[42].mxu0  ;;  %v6610_v59 = vpop.f32.mrb[42].mxu1 }
 0x14d   : > { %8532 = vst [vmem:[#allocation50_spill] sm:$0xff] %v6610_v59  ;;  %v6612_v41 = vpop.f32.mrb[43].mxu0  ;;  %v6614_v53 = vpop.f32.mrb[43].mxu1 }
 0x14e   : > { %8533 = vst [vmem:[#allocation51_spill] sm:$0xff] %v6614_v53 }
 0x152   : > { %v6616_v3 = vpop.f32.mrb[44].mxu0  ;;  %v6618_v54 = vpop.f32.mrb[44].mxu1 }
 0x153   : > { %8534 = vst [vmem:[#allocation52_spill] sm:$0xff] %v6618_v54  ;;  %v6620_v45 = vpop.f32.mrb[45].mxu0  ;;  %v6622_v7 = vpop.f32.mrb[45].mxu1 }
 0x154   : > { %8535 = vst [vmem:[#allocation53_spill] sm:$0xff] %v6622_v7  ;;  %v6624_v58 = vpop.f32.mrb[46].mxu0  ;;  %v6626_v27 = vpop.f32.mrb[46].mxu1 }
 0x155   : > { %8536 = vst [vmem:[#allocation54_spill] sm:$0xff] %v6626_v27  ;;  %v6628_v62 = vpop.f32.mrb[47].mxu0  ;;  %v6630_v60 = vpop.f32.mrb[47].mxu1 }
 0x156   : > { %8537 = vst [vmem:[#allocation55_spill] sm:$0xff] %v6630_v60 }
 0x15a   : > { %v6632_v59 = vpop.f32.mrb[48].mxu0  ;;  %v6634_v43 = vpop.f32.mrb[48].mxu1 }
 0x15b   : > { %8538 = vst [vmem:[#allocation56_spill] sm:$0xff] %v6634_v43  ;;  %v6636_v53 = vpop.f32.mrb[49].mxu0  ;;  %v6638_v46 = vpop.f32.mrb[49].mxu1 }
 0x15c   : > { %8539 = vst [vmem:[#allocation57_spill] sm:$0xff] %v6638_v46  ;;  %v6640_v54 = vpop.f32.mrb[50].mxu0  ;;  %v6642_v29 = vpop.f32.mrb[50].mxu1 }
 0x15d   : > { %8540 = vst [vmem:[#allocation58_spill] sm:$0xff] %v6642_v29  ;;  %v6644_v7 = vpop.f32.mrb[51].mxu0  ;;  %v6646_v35 = vpop.f32.mrb[51].mxu1 }
 0x15e   : > { %8541 = vst [vmem:[#allocation59_spill] sm:$0xff] %v6644_v7  ;;  %8542 = vst [vmem:[#allocation60_spill] sm:$0xff] %v6646_v35  ;;  %v5727_v35 = vmov 1966171168  }
 0x162   : > { %v6648_v27 = vpop.f32.mrb[52].mxu0  ;;  %v6650_v23 = vpop.f32.mrb[52].mxu1 }
 0x163   : > { %8543 = vst [vmem:[#allocation61_spill] sm:$0xff] %v6648_v27  ;;  %8544 = vst [vmem:[#allocation62_spill] sm:$0xff] %v6650_v23  ;;  %v6652_v60 = vpop.f32.mrb[53].mxu0  ;;  %v6654_v51 = vpop.f32.mrb[53].mxu1  ;;  %v1917_v27 = vunpack.c.l.s4 %v5727_v35 }
 0x164   : > { %8545 = vst [vmem:[#allocation63_spill] sm:$0xff] %v6652_v60  ;;  %8546 = vst [vmem:[#allocation64_spill] sm:$0xff] %v6654_v51  ;;  %v6656_v43 = vpop.f32.mrb[54].mxu0  ;;  %v6658_v44 = vpop.f32.mrb[54].mxu1 }
 0x165   : > { %8547 = vst [vmem:[#allocation65_spill] sm:$0xff] %v6656_v43  ;;  %8548 = vst [vmem:[#allocation66_spill] sm:$0xff] %v6658_v44  ;;  %v6660_v46 = vpop.f32.mrb[55].mxu0  ;;  %v6662_v33 = vpop.f32.mrb[55].mxu1 }
 0x166   : > { %8549 = vst [vmem:[#allocation67_spill] sm:$0xff] %v6662_v33  ;;  %v6683_v33 = vld [vmem:[%s8425_s7] ss:$0 sm:$0xff] }
 0x167   : > { %v6687_v35 = vadd.f32 %v6433_v63, %v6683_v33  ;;  %v6707_v63 = vadd.f32 %v6683_v33, %v6460_v36  ;;  %v6730_v36 = vadd.f32 %v6683_v33, %v6476_v6 }
 0x169   : > { %8555 = vst [vmem:[#allocation73_spill] sm:$0xff] %v6687_v35 }
 0x16a   : > { %v6664_v29 = vpop.f32.mrb[56].mxu0  ;;  %v6666_v16 = vpop.f32.mrb[56].mxu1 }
 0x16b   : > { %8550 = vst [vmem:[#allocation68_spill] sm:$0xff] %v6666_v16  ;;  %v6668_v7 = vpop.f32.mrb[57].mxu0  ;;  %v6670_v23 = vpop.f32.mrb[57].mxu1  ;;  %v1918_v16 = vunpack.c.0.s8 %v1917_v27 }
 0x16c   : > { %8551 = vst [vmem:[#allocation69_spill] sm:$0xff] %v6670_v23  ;;  %v6672_v60 = vpop.f32.mrb[58].mxu0  ;;  %v6674_v51 = vpop.f32.mrb[58].mxu1  ;;  %v6691_v23 = vadd.f32 %v6683_v33, %v6437_v25 }
 0x16d   : > { %8552 = vst [vmem:[#allocation70_spill] sm:$0xff] %v6674_v51  ;;  %v6676_v43 = vpop.f32.mrb[59].mxu0  ;;  %v6678_v44 = vpop.f32.mrb[59].mxu1  ;;  %v6695_v51 = vadd.f32 %v6441_v8, %v6683_v33  ;;  %v6714_v35 = vsub.s32 %v1918_v16, %v5979_v32  ;;  %v6718_v8 = vadd.f32 %v6464_v47, %v6683_v33  ;;  %v6738_v16 = vadd.f32 %v6480_v56, %v6683_v33 }
 0x16e   : > { %8553 = vst [vmem:[#allocation71_spill] sm:$0xff] %v6676_v43  ;;  %8554 = vst [vmem:[#allocation72_spill] sm:$0xff] %v6678_v44  ;;  %v6699_v44 = vadd.f32 %v6683_v33, %v6451_v31  ;;  %v6703_v43 = vadd.f32 %v6456_v12, %v6683_v33  ;;  %v6722_v31 = vadd.f32 %v6683_v33, %v6468_v49 }
 0x16f   : > { %8557 = vst [vmem:[#allocation75_spill] sm:$0xff] %v6714_v35  ;;  %v6726_v12 = vadd.f32 %v6472_v38, %v6683_v33  ;;  %v6742_v47 = vadd.f32 %v6683_v33, %v6484_v50  ;;  %v6746_v49 = vadd.f32 %v6488_v61, %v6683_v33  ;;  %v6750_v38 = vadd.f32 %v6683_v33, %v6492_v52 }
 0x170   : > { %v6758_v56 = vadd.f32 %v6496_v57, %v6683_v33  ;;  %v6762_v50 = vadd.f32 %v6683_v33, %v6500_v48  ;;  %v6766_v61 = vadd.f32 %v6504_v2, %v6683_v33  ;;  %v6770_v52 = vadd.f32 %v6683_v33, %v6508_v10 }
 0x171   : > { %8558 = vst [vmem:[#allocation76_spill] sm:$0xff] %v6726_v12  ;;  %8560 = vst [vmem:[#allocation78_spill] sm:$0xff] %v6746_v49  ;;  %v6778_v57 = vadd.f32 %v6512_v20, %v6683_v33  ;;  %v6782_v48 = vadd.f32 %v6683_v33, %v6516_v11  ;;  %v6786_v2 = vadd.f32 %v6520_v13, %v6683_v33 }
 0x172   : > { %v6709_v27 = vpop.f32.mrb[60].mxu0  ;;  %v6711_v25 = vpop.f32.mrb[60].mxu1  ;;  %v6790_v10 = vadd.f32 %v6683_v33, %v6524_v55  ;;  %v6798_v20 = vadd.f32 %v6683_v33, %v6532_v42  ;;  %v6802_v11 = vadd.f32 %v6536_v9, %v6683_v33  ;;  %v6806_v13 = vadd.f32 %v6683_v33, %v6540_v17  ;;  %v4704_v17 = vld [vmem:[%s8424_s6] ss:$0 sm:$0xff] }
 0x173   : > { %8556 = vst [vmem:[#allocation74_spill] sm:$0xff] %v6711_v25  ;;  %v6732_v25 = vpop.f32.mrb[61].mxu0  ;;  %v6734_v32 = vpop.f32.mrb[61].mxu1  ;;  %v6810_v55 = vadd.f32 %v6544_v34, %v6683_v33  ;;  %v6818_v42 = vadd.f32 %v6552_v37, %v6683_v33  ;;  %v6822_v9 = vadd.f32 %v6683_v33, %v6556_v30  ;;  %v6829_v34 = vadd.f32 %v6560_v39, %v6683_v33 }
 0x174   : > { %8559 = vst [vmem:[#allocation77_spill] sm:$0xff] %v6734_v32  ;;  %v6752_v6 = vpop.f32.mrb[62].mxu0  ;;  %v6754_v12 = vpop.f32.mrb[62].mxu1  ;;  %v6837_v37 = vadd.f32 %v6568_v40, %v6683_v33  ;;  %v6841_v30 = vadd.f32 %v6683_v33, %v6572_v19  ;;  %v6849_v39 = vadd.f32 %v6683_v33, %v6580_v5  ;;  %v6857_v40 = vadd.f32 %v6683_v33, %v6588_v24 }
 0x175   : > { %8561 = vst [vmem:[#allocation79_spill] sm:$0xff] %v6754_v12  ;;  %v6772_v32 = vpop.f32.mrb[63].mxu0  ;;  %v6774_v49 = vpop.f32.mrb[63].mxu1  ;;  %v6794_v12 = vadd.f32 %v6528_v28, %v6683_v33  ;;  %v6814_v28 = vadd.f32 %v6683_v33, %v6548_v18  ;;  %8563 = vst [vmem:[#allocation81_spill] sm:$0xff] %v6829_v34  ;;  %v6833_v18 = vadd.f32 %v6683_v33, %v6564_v1 }
 0x176   : > { %8562 = vst [vmem:[#allocation80_spill] sm:$0xff] %v6774_v49  ;;  %8564 = vst [vmem:[#allocation82_spill] sm:$0xff] %v6837_v37  ;;  %v6845_v49 = vadd.f32 %v6576_v21, %v6683_v33  ;;  %v6853_v1 = vadd.f32 %v6584_v15, %v6683_v33  ;;  %v6861_v19 = vadd.f32 %v6592_v26, %v6683_v33 }
 0x177   : > { %8566 = vst [vmem:[#allocation84_spill] sm:$0xff] %v6849_v39  ;;  %v6865_v21 = vadd.f32 %v6683_v33, %v6596_v22  ;;  %v6874_v24 = vadd.f32 %v6683_v33, %v6604_v4  ;;  %v6878_v26 = vadd.f32 %v6608_v0, %v6683_v33  ;;  %v6882_v22 = vadd.f32 %v6683_v33, %v6612_v41 }
 0x178   : > { %8565 = vst [vmem:[#allocation83_spill] sm:$0xff] %v6845_v49  ;;  %8567 = vst [vmem:[#allocation85_spill] sm:$0xff] %v6853_v1  ;;  %v6870_v1 = vadd.f32 %v6600_v14, %v6683_v33  ;;  %v6890_v14 = vadd.f32 %v6683_v33, %v6620_v45  ;;  %v6894_v4 = vadd.f32 %v6624_v58, %v6683_v33  ;;  %v8571_v58 = vld [vmem:[#allocation59_spill] sm:$0xff] }
 0x179   : > { %v6898_v41 = vadd.f32 %v6683_v33, %v6628_v62  ;;  %v6910_v45 = vadd.f32 %v6640_v54, %v6683_v33 }
 0x17a   : > { %v1823_v37 = vpop.f32.mrb[64].mxu0  ;;  %v1864_v34 = vpop.f32.mrb[64].mxu1 }
 0x17b   : > { %v1824_v5 = vadd.f32 %v4704_v17, %v1823_v37  ;;  %v5213_v49 = vpop.f32.mrb[65].mxu0  ;;  %v1865_v39 = vadd.f32 %v6683_v33, %v1864_v34  ;;  %v5221_v15 = vpop.f32.mrb[65].mxu1  ;;  %v6886_v34 = vadd.f32 %v6616_v3, %v6683_v33  ;;  %v6906_v3 = vadd.f32 %v6683_v33, %v6636_v53  ;;  %8570 = vst [vmem:[#allocation88_spill] sm:$0xff] %v6910_v45 }
 0x17c   : > { %v1826_v49 = vpop.f32.mrb[66].mxu0  ;;  %v1867_v17 = vpop.f32.mrb[66].mxu1  ;;  %v6935_v45 = vadd.f32 %v6664_v29, %v6683_v33  ;;  %v6954_v29 = vadd.f32 %v6709_v27, %v6683_v33  ;;  %v8585_v27 = vld [vmem:[#allocation7_spill] sm:$0xff] }
 0x17d   : > { %v1829_v0 = vmul.f32 0.35355338, %v1824_v5  ;;  %v5214_v37 = vpop.f32.mrb[67].mxu0  ;;  %v5222_v15 = vpop.f32.mrb[67].mxu1  ;;  %v6902_v49 = vadd.f32 %v6632_v59, %v6683_v33  ;;  %8569 = vst [vmem:[#allocation87_spill] sm:$0xff] %v6906_v3  ;;  %v6914_v5 = vadd.f32 %v6683_v33, %v8571_v58  ;;  %v8574_v3 = vld [vmem:[#allocation65_spill] sm:$0xff]  ;;  %v6931_v58 = vadd.f32 %v6683_v33, %v6660_v46 }
 0x17e   : > { %v8572_v15 = vld [vmem:[#allocation61_spill] sm:$0xff]  ;;  %v6927_v54 = vadd.f32 %v8574_v3, %v6683_v33  ;;  %v6946_v3 = vadd.f32 %v6672_v60, %v6683_v33  ;;  %v8579_v46 = vld [vmem:[#allocation71_spill] sm:$0xff]  ;;  %8581 = vst [vmem:[#allocation89_spill] sm:$0xff] %v6954_v29  ;;  %v6964_v60 = vadd.f32 %v6752_v6, %v6683_v33 }
 0x17f   : > { %8568 = vst [vmem:[#allocation86_spill] sm:$0xff] %v6902_v49  ;;  %v1915_v17 = vcombine.high %v1829_v0, %v1829_v0  ;;  %v1922_v62 = vrot.slane %v1829_v0, %v6714_v35  ;;  %v2645_v37 = vmul.f32 %v1865_v39, %v1829_v0  ;;  %v6919_v59 = vadd.f32 %v8572_v15, %v6683_v33  ;;  %v8573_v49 = vld [vmem:[#allocation63_spill] sm:$0xff] }
 0x180   : > { %v6923_v53 = vadd.f32 %v6683_v33, %v8573_v49  ;;  %8575 = vst [vmem:[#allocation59_spill] sm:$0xff] %v6927_v54  ;;  %8576 = vst [vmem:[#allocation61_spill] sm:$0xff] %v6935_v45  ;;  %v6942_v49 = vadd.f32 %v6683_v33, %v6668_v7  ;;  %v6950_v54 = vadd.f32 %v6683_v33, %v8579_v46 }
 0x181   : > { %v1929_v39 = vrot.slane %v1915_v17, %v6714_v35  ;;  %v1930_v0 = vcombine.high %v1922_v62, %v1922_v62  ;;  %v1938_v15 = vrot.slane %v1922_v62, %v6714_v35  ;;  %5344 = vmatmul.mubr.msk.f32.vlgmr.msra.gmra.mrb[72].mxu0 %vm573_vm0, %v2645_v37  ;;  %8578 = vst [vmem:[#allocation65_spill] sm:$0xff] %v6946_v3  ;;  %8583 = vst [vmem:[#allocation91_spill] sm:$0xff] %v6964_v60 }
 0x182   : > { %8577 = vst [vmem:[#allocation63_spill] sm:$0xff] %v6942_v49  ;;  %8580 = vst [vmem:[#allocation71_spill] sm:$0xff] %v6950_v54  ;;  %v6960_v7 = vadd.f32 %v6683_v33, %v6732_v25  ;;  %v6968_v46 = vadd.f32 %v6683_v33, %v6772_v32  ;;  %v6973_v49 = vpop.f32.mrb[68].mxu0 }
 0x183   : > { %v1931_v17 = vcombine.high %v1929_v39, %v1929_v39  ;;  %v1945_v62 = vrot.slane %v1929_v39, %v6714_v35  ;;  %v1952_v37 = vrot.slane %v1930_v0, %v6714_v35  ;;  %v1960_v45 = vcombine.high %v1938_v15, %v1938_v15  ;;  %8586 = vst [vmem:[#allocation7_spill] sm:$0xff] %v6973_v49  ;;  %v5229_v33 = vpop.f32.mrb[69].mxu0  ;;  %v8587_v49 = vld [vmem:[#allocation73_spill] sm:$0xff] }
 0x184   : > { %8582 = vst [vmem:[#allocation90_spill] sm:$0xff] %v6960_v7  ;;  %8584 = vst [vmem:[#allocation92_spill] sm:$0xff] %v6968_v46  ;;  %v1967_v29 = vrot.slane %v1938_v15, %v8585_v27 }
 0x185   : > { %v1959_v3 = vrot.slane %v1931_v17, %v6714_v35  ;;  %v1961_v39 = vcombine.high %v1945_v62, %v1945_v62  ;;  %v1962_v54 = vcombine.high %v1952_v37, %v1952_v37  ;;  %v1971_v0 = vrot.slane %v1952_v37, %v8585_v27  ;;  %v1907_v37 = vpop.f32.mrb[70].mxu0 }
 0x186   : > { %v1975_v25 = vrot.slane %v1960_v45, %v8585_v27  ;;  %v1983_v7 = vrot.slane %v1945_v62, %v8585_v27  ;;  %v2004_v6 = vmul.f32 %v1967_v29, %v6691_v23  ;;  %v2005_v60 = vmul.f32 %v1967_v29, %v6699_v44  ;;  %v5230_v33 = vpop.f32.mrb[71].mxu0  ;;  %v8589_v37 = vld [vmem:[#allocation78_spill] sm:$0xff] }
 0x187   : > { %v1963_v32 = vcombine.high %v1959_v3, %v1959_v3  ;;  %v1979_v15 = vrot.slane %v1962_v54, %v8585_v27  ;;  %v1987_v17 = vrot.slane %v1959_v3, %v8585_v27  ;;  %v6982_v35 = vrot.slane %v1961_v39, %v8585_v27  ;;  %v8593_v33 = vld [vmem:[#allocation83_spill] sm:$0xff] }
 0x188   : > { %5239 = vmatprep.mubr.msk.f32.mxu1 %vm573_vm0, %v2004_v6  ;;  %v2006_v45 = vmul.f32 %v1967_v29, %v8587_v49  ;;  %v2007_v62 = vmul.f32 %v1967_v29, %v6695_v51  ;;  %v2008_v23 = vmul.f32 %v1967_v29, %v6707_v63  ;;  %v2009_v44 = vmul.f32 %v1967_v29, %v6722_v31  ;;  %v8588_v49 = vld [vmem:[#allocation76_spill] sm:$0xff] }
 0x189   : > { %v6990_v46 = vrot.slane %v1963_v32, %v8585_v27  ;;  %5240 = vmatmul.mubr.msk.f32.vlgmr.msra.gmra.mrb[68].mxu1 %vm573_vm0, %v2005_v60  ;;  %v2010_v54 = vmul.f32 %v1967_v29, %v6703_v43  ;;  %v2011_v3 = vmul.f32 %v1967_v29, %v6718_v8  ;;  %v2012_v39 = vmul.f32 %v1971_v0, %v6730_v36 }
 0x18a   : > { %5242 = vmatprep.mubr.msk.f32.mxu1 %vm573_vm0, %v2006_v45  ;;  %v2013_v51 = vmul.f32 %v1971_v0, %v6742_v47  ;;  %v2014_v63 = vmul.f32 %v1971_v0, %v8588_v49  ;;  %v2015_v31 = vmul.f32 %v1971_v0, %v6738_v16  ;;  %v2016_v6 = vmul.f32 %v1971_v0, %v6750_v38 }
 0x18b   : > { %v2017_v32 = vmul.f32 %v1971_v0, %v6762_v50  ;;  %v2018_v60 = vmul.f32 %v1971_v0, %v8589_v37  ;;  %v2019_v43 = vmul.f32 %v1971_v0, %v6758_v56  ;;  %v2020_v8 = vmul.f32 %v1975_v25, %v6770_v52  ;;  %v8590_v0 = vld [vmem:[#allocation81_spill] sm:$0xff] }
 0x18c   : > { %v2021_v36 = vmul.f32 %v1975_v25, %v6782_v48  ;;  %v2022_v29 = vmul.f32 %v1975_v25, %v6766_v61  ;;  %v2023_v47 = vmul.f32 %v1975_v25, %v6778_v57  ;;  %v2024_v45 = vmul.f32 %v1975_v25, %v6790_v10 }
 0x18d   : > { %5243 = vmatmul.mubr.msk.f32.gmra.mrb[70].mxu1 %vm573_vm0, %v2007_v62  ;;  %v2025_v16 = vmul.f32 %v1975_v25, %v6798_v20  ;;  %v2026_v38 = vmul.f32 %v1975_v25, %v6786_v2  ;;  %v2027_v50 = vmul.f32 %v1975_v25, %v6794_v12  ;;  %v2028_v56 = vmul.f32 %v1979_v15, %v6806_v13  ;;  %v8591_v25 = vld [vmem:[#allocation84_spill] sm:$0xff]  ;;  %v8592_v62 = vld [vmem:[#allocation82_spill] sm:$0xff] }
 0x18e   : > { %5245 = vmatprep.mubr.msk.f32.mxu1 %vm573_vm0, %v2008_v23  ;;  %v2029_v52 = vmul.f32 %v1979_v15, %v6814_v28  ;;  %v2030_v61 = vmul.f32 %v1979_v15, %v6802_v11  ;;  %v2031_v57 = vmul.f32 %v1979_v15, %v6810_v55  ;;  %v2032_v48 = vmul.f32 %v1979_v15, %v6822_v9  ;;  %v8594_v9 = vld [vmem:[#allocation85_spill] sm:$0xff] }
 0x18f   : > { %v2033_v10 = vmul.f32 %v1979_v15, %v6833_v18  ;;  %v2034_v20 = vmul.f32 %v1979_v15, %v6818_v42  ;;  %v2035_v2 = vmul.f32 %v1979_v15, %v8590_v0  ;;  %v2036_v12 = vmul.f32 %v1983_v7, %v6841_v30 }
 0x190   : > { %v2037_v13 = vmul.f32 %v1983_v7, %v8591_v25  ;;  %v2038_v23 = vmul.f32 %v1983_v7, %v8592_v62  ;;  %v2039_v28 = vmul.f32 %v1983_v7, %v8593_v33  ;;  %v2040_v11 = vmul.f32 %v1983_v7, %v6857_v40  ;;  %v8595_v25 = vld [vmem:[#allocation87_spill] sm:$0xff] }
 0x191   : > { %5246 = vmatmul.mubr.msk.f32.gmra.mrb[72].mxu1 %vm573_vm0, %v2009_v44  ;;  %v2041_v55 = vmul.f32 %v1983_v7, %v6865_v21  ;;  %v2042_v18 = vmul.f32 %v1983_v7, %v8594_v9  ;;  %v2043_v42 = vmul.f32 %v1983_v7, %v6861_v19  ;;  %v2044_v15 = vmul.f32 %v1987_v17, %v6874_v24  ;;  %v8596_v7 = vld [vmem:[#allocation86_spill] sm:$0xff]  ;;  %v8600_v62 = vld [vmem:[#allocation71_spill] sm:$0xff]  ;;  %v8602_v9 = vld [vmem:[#allocation65_spill] sm:$0xff] }
 0x192   : > { %5248 = vmatprep.mubr.msk.f32.mxu1 %vm573_vm0, %v2010_v54  ;;  %v2045_v30 = vmul.f32 %v1987_v17, %v6882_v22  ;;  %v2046_v49 = vmul.f32 %v1987_v17, %v6870_v1  ;;  %v2047_v37 = vmul.f32 %v1987_v17, %v6878_v26  ;;  %v2048_v40 = vmul.f32 %v1987_v17, %v6890_v14  ;;  %v8597_v1 = vld [vmem:[#allocation88_spill] sm:$0xff] }
 0x193   : > { %v2049_v44 = vmul.f32 %v1987_v17, %v6898_v41  ;;  %v2050_v21 = vmul.f32 %v1987_v17, %v6886_v34  ;;  %v2051_v0 = vmul.f32 %v1987_v17, %v6894_v4  ;;  %v2052_v19 = vmul.f32 %v6982_v35, %v8595_v25  ;;  %v8598_v41 = vld [vmem:[#allocation59_spill] sm:$0xff]  ;;  %v8603_v25 = vld [vmem:[#allocation90_spill] sm:$0xff] }
 0x194   : > { %v2053_v24 = vmul.f32 %v6982_v35, %v6914_v5  ;;  %v2054_v22 = vmul.f32 %v6982_v35, %v8596_v7  ;;  %v2055_v26 = vmul.f32 %v6982_v35, %v8597_v1  ;;  %v2056_v14 = vmul.f32 %v6982_v35, %v6923_v53  ;;  %v8599_v17 = vld [vmem:[#allocation63_spill] sm:$0xff]  ;;  %v8601_v53 = vld [vmem:[#allocation61_spill] sm:$0xff]  ;;  %v8604_v7 = vld [vmem:[#allocation92_spill] sm:$0xff] }
 0x195   : > { %5249 = vmatmul.mubr.msk.f32.gmra.mrb[74].mxu1 %vm573_vm0, %v2011_v3  ;;  %v2057_v34 = vmul.f32 %v6982_v35, %v6931_v58  ;;  %v2058_v4 = vmul.f32 %v6982_v35, %v6919_v59  ;;  %v2059_v5 = vmul.f32 %v6982_v35, %v8598_v41  ;;  %v2060_v54 = vmul.f32 %v6990_v46, %v8599_v17  ;;  %v8605_v1 = vld [vmem:[#allocation89_spill] sm:$0xff]  ;;  %v8606_v17 = vld [vmem:[#allocation91_spill] sm:$0xff] }
 0x196   : > { %5251 = vmatprep.mubr.msk.f32.mxu1 %vm573_vm0, %v2012_v39  ;;  %v2061_v33 = vmul.f32 %v6990_v46, %v8600_v62  ;;  %v2062_v3 = vmul.f32 %v6990_v46, %v8601_v53  ;;  %v2063_v58 = vmul.f32 %v6990_v46, %v8602_v9  ;;  %v2064_v59 = vmul.f32 %v6990_v46, %v8603_v25 }
 0x197   : > { %v2065_v35 = vmul.f32 %v6990_v46, %v8604_v7  ;;  %v2066_v41 = vmul.f32 %v6990_v46, %v8605_v1  ;;  %v2067_v39 = vmul.f32 %v6990_v46, %v8606_v17  ;;  %v8607_v46 = vmov 0.0  }
 0x199   : > { %5252 = vmatmul.mubr.msk.f32.gmra.mrb[76].mxu1 %vm573_vm0, %v2013_v51 }
 0x19a   : > { %5254 = vmatprep.mubr.msk.f32.mxu1 %vm573_vm0, %v2014_v63 }
 0x19d   : > { %5255 = vmatmul.mubr.msk.f32.gmra.mrb[78].mxu1 %vm573_vm0, %v2015_v31 }
 0x19e   : > { %5257 = vmatprep.mubr.msk.f32.mxu1 %vm573_vm0, %v2016_v6 }
 0x1a1   : > { %5258 = vmatmul.mubr.msk.f32.gmra.mrb[80].mxu1 %vm573_vm0, %v2017_v32 }
 0x1a2   : > { %5260 = vmatprep.mubr.msk.f32.mxu1 %vm573_vm0, %v2018_v60 }
 0x1a5   : > { %5261 = vmatmul.mubr.msk.f32.gmra.mrb[82].mxu1 %vm573_vm0, %v2019_v43 }
 0x1a6   : > { %5263 = vmatprep.mubr.msk.f32.mxu1 %vm573_vm0, %v2020_v8 }
 0x1a9   : > { %5264 = vmatmul.mubr.msk.f32.gmra.mrb[84].mxu1 %vm573_vm0, %v2021_v36 }
 0x1aa   : > { %5266 = vmatprep.mubr.msk.f32.mxu1 %vm573_vm0, %v2022_v29 }
 0x1ad   : > { %5267 = vmatmul.mubr.msk.f32.gmra.mrb[86].mxu1 %vm573_vm0, %v2023_v47 }
 0x1ae   : > { %5269 = vmatprep.mubr.msk.f32.mxu1 %vm573_vm0, %v2024_v45 }
 0x1b1   : > { %5270 = vmatmul.mubr.msk.f32.gmra.mrb[88].mxu1 %vm573_vm0, %v2025_v16 }
 0x1b2   : > { %5272 = vmatprep.mubr.msk.f32.mxu1 %vm573_vm0, %v2026_v38 }
 0x1b5   : > { %5273 = vmatmul.mubr.msk.f32.gmra.mrb[90].mxu1 %vm573_vm0, %v2027_v50 }
 0x1b6   : > { %5275 = vmatprep.mubr.msk.f32.mxu1 %vm573_vm0, %v2028_v56 }
 0x1b9   : > { %5276 = vmatmul.mubr.msk.f32.gmra.mrb[92].mxu1 %vm573_vm0, %v2029_v52 }
 0x1ba   : > { %5278 = vmatprep.mubr.msk.f32.mxu1 %vm573_vm0, %v2030_v61 }
 0x1bd   : > { %5279 = vmatmul.mubr.msk.f32.gmra.mrb[94].mxu1 %vm573_vm0, %v2031_v57 }
 0x1be   : > { %5281 = vmatprep.mubr.msk.f32.mxu1 %vm573_vm0, %v2032_v48 }
 0x1c1   : > { %5282 = vmatmul.mubr.msk.f32.gmra.mrb[96].mxu1 %vm573_vm0, %v2033_v10 }
 0x1c2   : > { %5284 = vmatprep.mubr.msk.f32.mxu1 %vm573_vm0, %v2034_v20 }
 0x1c5   : > { %5285 = vmatmul.mubr.msk.f32.gmra.mrb[98].mxu1 %vm573_vm0, %v2035_v2 }
 0x1c6   : > { %5287 = vmatprep.mubr.msk.f32.mxu1 %vm573_vm0, %v2036_v12 }
 0x1c9   : > { %5288 = vmatmul.mubr.msk.f32.gmra.mrb[100].mxu1 %vm573_vm0, %v2037_v13 }
 0x1ca   : > { %5290 = vmatprep.mubr.msk.f32.mxu1 %vm573_vm0, %v2038_v23 }
 0x1cd   : > { %5291 = vmatmul.mubr.msk.f32.gmra.mrb[102].mxu1 %vm573_vm0, %v2039_v28 }
 0x1ce   : > { %5293 = vmatprep.mubr.msk.f32.mxu1 %vm573_vm0, %v2040_v11 }
 0x1d1   : > { %5294 = vmatmul.mubr.msk.f32.gmra.mrb[104].mxu1 %vm573_vm0, %v2041_v55 }
 0x1d2   : > { %5296 = vmatprep.mubr.msk.f32.mxu1 %vm573_vm0, %v2042_v18 }
 0x1d5   : > { %5297 = vmatmul.mubr.msk.f32.gmra.mrb[106].mxu1 %vm573_vm0, %v2043_v42 }
 0x1d6   : > { %5299 = vmatprep.mubr.msk.f32.mxu1 %vm573_vm0, %v2044_v15 }
 0x1d9   : > { %5300 = vmatmul.mubr.msk.f32.gmra.mrb[108].mxu1 %vm573_vm0, %v2045_v30 }
 0x1da   : > { %5302 = vmatprep.mubr.msk.f32.mxu1 %vm573_vm0, %v2046_v49 }
 0x1dd   : > { %5303 = vmatmul.mubr.msk.f32.gmra.mrb[110].mxu1 %vm573_vm0, %v2047_v37 }
 0x1de   : > { %5305 = vmatprep.mubr.msk.f32.mxu1 %vm573_vm0, %v2048_v40 }
 0x1e1   : > { %5306 = vmatmul.mubr.msk.f32.gmra.mrb[112].mxu1 %vm573_vm0, %v2049_v44 }
 0x1e2   : > { %5308 = vmatprep.mubr.msk.f32.mxu1 %vm573_vm0, %v2050_v21 }
 0x1e5   : > { %5309 = vmatmul.mubr.msk.f32.gmra.mrb[114].mxu1 %vm573_vm0, %v2051_v0 }
 0x1e6   : > { %5311 = vmatprep.mubr.msk.f32.mxu1 %vm573_vm0, %v2052_v19 }
 0x1e9   : > { %5312 = vmatmul.mubr.msk.f32.gmra.mrb[116].mxu1 %vm573_vm0, %v2053_v24 }
 0x1ea   : > { %5314 = vmatprep.mubr.msk.f32.mxu1 %vm573_vm0, %v2054_v22 }
 0x1ed   : > { %5315 = vmatmul.mubr.msk.f32.gmra.mrb[118].mxu1 %vm573_vm0, %v2055_v26 }
 0x1ee   : > { %5317 = vmatprep.mubr.msk.f32.mxu1 %vm573_vm0, %v2056_v14 }
 0x1f1   : > { %5318 = vmatmul.mubr.msk.f32.gmra.mrb[120].mxu1 %vm573_vm0, %v2057_v34 }
 0x1f2   : > { %5320 = vmatprep.mubr.msk.f32.mxu1 %vm573_vm0, %v2058_v4 }
 0x1f5   : > { %5321 = vmatmul.mubr.msk.f32.gmra.mrb[122].mxu1 %vm573_vm0, %v2059_v5 }
 0x1f6   : > { %5323 = vmatprep.mubr.msk.f32.mxu1 %vm573_vm0, %v2060_v54 }
 0x1f9   : > { %5324 = vmatmul.mubr.msk.f32.gmra.mrb[124].mxu1 %vm573_vm0, %v2061_v33 }
 0x1fa   : > { %5326 = vmatprep.mubr.msk.f32.mxu1 %vm573_vm0, %v2062_v3 }
 0x1fd   : > { %5327 = vmatmul.mubr.msk.f32.gmra.mrb[126].mxu1 %vm573_vm0, %v2063_v58 }
 0x1fe   : > { %5329 = vmatprep.mubr.msk.f32.mxu1 %vm573_vm0, %v2064_v59 }
 0x201   : > { %5330 = vmatmul.mubr.msk.f32.gmra.mrb[128].mxu1 %vm573_vm0, %v2065_v35 }
 0x202   : > { %5332 = vmatprep.mubr.msk.f32.mxu1 %vm573_vm0, %v2066_v41 }
 0x205   : > { %5333 = vmatmul.mubr.msk.f32.gmra.mrb[130].mxu1 %vm573_vm0, %v2067_v39 }
 0x206   : > { %5446 = vmatprep.mubr.msk.f32.mxu1 %vm5725_vm8, %v8607_v46 }
 0x254   : > { %v7131_v51 = vpop.f32.mrb[72].mxu0 }
 0x255   : > { %v5345_v63 = vpop.f32.mrb[73].mxu0 }
 0x25c   : > { %v7133_v31 = vpop.f32.mrb[68].mxu1 }
 0x25d   : > { %v2721_v6 = vsel %vm2719_vm9, %v7133_v31, -inf  ;;  %v7137_v32 = vpop.f32.mrb[69].mxu1 }
 0x25e   : > { %v2720_v60 = vsel %vm2719_vm9, %v7137_v32, -inf }
 0x25f   : > { %v2722_v43 = vmax.f32 %v2720_v60, %v2721_v6 }
 0x260   : > { %v7141_v8 = vpop.f32.mrb[70].mxu1 }
 0x261   : > { %v7143_v36 = vpop.f32.mrb[71].mxu1  ;;  %v2725_v45 = vsel %vm2719_vm9, %v7141_v8, -inf }
 0x262   : > { %v2723_v29 = vsel %vm2719_vm9, %v7143_v36, -inf }
 0x263   : > { %v2724_v47 = vmax.f32 %v2722_v43, %v2723_v29 }
 0x264   : > { %v7149_v16 = vpop.f32.mrb[72].mxu1 }
 0x265   : > { %v7151_v38 = vpop.f32.mrb[73].mxu1  ;;  %v2726_v50 = vmax.f32 %v2724_v47, %v2725_v45  ;;  %v2729_v61 = vsel %vm2719_vm9, %v7149_v16, -inf }
 0x266   : > { %v2727_v56 = vsel %vm2719_vm9, %v7151_v38, -inf }
 0x267   : > { %v2728_v52 = vmax.f32 %v2726_v50, %v2727_v56 }
 0x268   : > { %v7157_v57 = vpop.f32.mrb[74].mxu1 }
 0x269   : > { %v7159_v48 = vpop.f32.mrb[75].mxu1  ;;  %v2730_v10 = vmax.f32 %v2728_v52, %v2729_v61  ;;  %v2733_v12 = vsel %vm2719_vm9, %v7157_v57, -inf }
 0x26a   : > { %v2731_v20 = vsel %vm2719_vm9, %v7159_v48, -inf }
 0x26b   : > { %v2732_v2 = vmax.f32 %v2730_v10, %v2731_v20 }
 0x26c   : > { %v7165_v13 = vpop.f32.mrb[76].mxu1 }
 0x26d   : > { %v2734_v23 = vmax.f32 %v2732_v2, %v2733_v12  ;;  %v2742_v28 = vsel %vm2719_vm9, %v7165_v13, -inf  ;;  %v7169_v11 = vpop.f32.mrb[77].mxu1 }
 0x26e   : > { %v2741_v55 = vsel %vm2719_vm9, %v7169_v11, -inf }
 0x26f   : > { %v2735_v18 = vrot.slane %v2734_v23, 4  ;;  %v2743_v42 = vmax.f32 %v2741_v55, %v2742_v28 }
 0x270   : > { %v7173_v15 = vpop.f32.mrb[78].mxu1 }
 0x271   : > { %v2736_v30 = vmax.f32 %v2734_v23, %v2735_v18  ;;  %v7175_v49 = vpop.f32.mrb[79].mxu1  ;;  %v2746_v21 = vsel %vm2719_vm9, %v7173_v15, -inf }
 0x272   : > { %v2744_v37 = vsel %vm2719_vm9, %v7175_v49, -inf }
 0x273   : > { %v2737_v40 = vrot.slane %v2736_v30, 2  ;;  %v2745_v44 = vmax.f32 %v2743_v42, %v2744_v37 }
 0x274   : > { %v7181_v0 = vpop.f32.mrb[80].mxu1 }
 0x275   : > { %v2738_v19 = vmax.f32 %v2736_v30, %v2737_v40  ;;  %v7183_v24 = vpop.f32.mrb[81].mxu1  ;;  %v2747_v22 = vmax.f32 %v2745_v44, %v2746_v21  ;;  %v2750_v4 = vsel %vm2719_vm9, %v7181_v0, -inf }
 0x276   : > { %v2748_v26 = vsel %vm2719_vm9, %v7183_v24, -inf }
 0x277   : > { %v2739_v14 = vrot.slane %v2738_v19, 1  ;;  %v2749_v34 = vmax.f32 %v2747_v22, %v2748_v26 }
 0x278   : > { %v7189_v5 = vpop.f32.mrb[82].mxu1 }
 0x279   : > { %v2740_v54 = vmax.f32 %v2738_v19, %v2739_v14  ;;  %v7191_v62 = vpop.f32.mrb[83].mxu1  ;;  %v2751_v33 = vmax.f32 %v2749_v34, %v2750_v4  ;;  %v2754_v58 = vsel %vm2719_vm9, %v7189_v5, -inf  ;;  %v2889_v4 = vrot.slane %v7131_v51, 1 }
 0x27a   : > { %v2752_v53 = vsel %vm2719_vm9, %v7191_v62, -inf }
 0x27b   : > { %v7196_v3 = vmax.f32 %v2740_v54, %v7131_v51  ;;  %v2753_v9 = vmax.f32 %v2751_v33, %v2752_v53 }
 0x27c   : > { %v7200_v25 = vpop.f32.mrb[84].mxu1 }
 0x27d   : > { %v2915_v59 = vrot.slane %v7196_v3, %v8585_v27  ;;  %v2755_v7 = vmax.f32 %v2753_v9, %v2754_v58  ;;  %v7204_v35 = vpop.f32.mrb[85].mxu1  ;;  %v2763_v1 = vsel %vm2719_vm9, %v7200_v25, -inf }
 0x27e   : > { %v2762_v41 = vsel %vm2719_vm9, %v7204_v35, -inf }
 0x27f   : > { %v2944_v17 = vsub.f32 %v7137_v32, %v2915_v59  ;;  %v2945_v39 = vsub.f32 %v7133_v31, %v2915_v59  ;;  %v2946_v63 = vsub.f32 %v7143_v36, %v2915_v59  ;;  %v2947_v6 = vsub.f32 %v7141_v8, %v2915_v59 }
 0x280   : > { %v2948_v60 = vsub.f32 %v7151_v38, %v2915_v59  ;;  %v2949_v43 = vsub.f32 %v7149_v16, %v2915_v59  ;;  %v2950_v29 = vsub.f32 %v7159_v48, %v2915_v59  ;;  %v2951_v47 = vsub.f32 %v7157_v57, %v2915_v59  ;;  %v7218_v45 = vpop.f32.mrb[86].mxu1 }
 0x281   : > { %v3008_v50 = vmul.f32 1.442695, %v2944_v17  ;;  %v3010_v56 = vmul.f32 1.442695, %v2945_v39  ;;  %v3012_v52 = vmul.f32 1.442695, %v2946_v63  ;;  %v2764_v32 = vmax.f32 %v2762_v41, %v2763_v1 }
 0x282   : > { %v3014_v61 = vmul.f32 1.442695, %v2947_v6  ;;  %v2756_v31 = vrot.slane %v2755_v7, 4  ;;  %v7220_v36 = vpop.f32.mrb[87].mxu1  ;;  %v3016_v8 = vmul.f32 1.442695, %v2948_v60 }
 0x283   : > { %5522 = vpow2.f32 %v3008_v50  ;;  %v2765_v16 = vsel %vm2719_vm9, %v7220_v36, -inf  ;;  %v3018_v20 = vmul.f32 1.442695, %v2949_v43  ;;  %v2767_v2 = vsel %vm2719_vm9, %v7218_v45, -inf }
 0x284   : > { %5524 = vpow2.f32 %v3010_v56  ;;  %v7224_v38 = vpop.f32.mrb[88].mxu1  ;;  %v2757_v57 = vmax.f32 %v2755_v7, %v2756_v31  ;;  %v2766_v48 = vmax.f32 %v2764_v32, %v2765_v16  ;;  %v3020_v55 = vmul.f32 1.442695, %v2950_v29 }
 0x285   : > { %5526 = vpow2.f32 %v3012_v52  ;;  %v7226_v10 = vpop.f32.mrb[89].mxu1  ;;  %v3022_v40 = vmul.f32 1.442695, %v2951_v47  ;;  %v2771_v44 = vsel %vm2719_vm9, %v7224_v38, -inf }
 0x286   : > { %5528 = vpow2.f32 %v3014_v61  ;;  %v2769_v12 = vsel %vm2719_vm9, %v7226_v10, -inf  ;;  %v2758_v23 = vrot.slane %v2757_v57, 2  ;;  %v2768_v28 = vmax.f32 %v2766_v48, %v2767_v2 }
 0x287   : > { %5530 = vpow2.f32 %v3016_v8 }
 0x288   : > { %v7232_v18 = vpop.f32.mrb[90].mxu1  ;;  %v2759_v42 = vmax.f32 %v2757_v57, %v2758_v23  ;;  %v2770_v30 = vmax.f32 %v2768_v28, %v2769_v12  ;;  %5532 = vpow2.f32 %v3018_v20 }
 0x289   : > { %v7234_v37 = vpop.f32.mrb[91].mxu1  ;;  %5534 = vpow2.f32 %v3020_v55  ;;  %v2775_v59 = vsel %vm2719_vm9, %v7232_v18, -inf }
 0x28a   : > { %v2773_v21 = vsel %vm2719_vm9, %v7234_v37, -inf  ;;  %v2760_v19 = vrot.slane %v2759_v42, 1  ;;  %v2772_v22 = vmax.f32 %v2770_v30, %v2771_v44  ;;  %5536 = vpow2.f32 %v3022_v40 }
 0x28c   : > { %v7240_v26 = vpop.f32.mrb[92].mxu1  ;;  %v2761_v34 = vmax.f32 %v2759_v42, %v2760_v19  ;;  %v2774_v54 = vmax.f32 %v2772_v22, %v2773_v21 }
 0x28d   : > { %v7242_v14 = vpop.eup %5522  ;;  %v2784_v33 = vsel %vm2719_vm9, %v7240_v26, -inf  ;;  %v7247_v53 = vpop.f32.mrb[93].mxu1 }
 0x28e   : > { %8608 = vst [vmem:[#allocation73_spill] sm:$0xff] %v7242_v14  ;;  %v7249_v9 = vpop.eup %5524  ;;  %v3162_v58 = vsel %vm2719_vm9, %v7242_v14, 0.0  ;;  %v2783_v7 = vsel %vm2719_vm9, %v7247_v53, -inf  ;;  %v2905_v17 = vmax.f32 %v2761_v34, %v2889_v4  ;;  %v2776_v39 = vmax.f32 %v2774_v54, %v2775_v59 }
 0x28f   : > { %8609 = vst [vmem:[#allocation76_spill] sm:$0xff] %v7249_v9  ;;  %v7257_v1 = vpop.eup %5526  ;;  %v3163_v41 = vsel %vm2719_vm9, %v7249_v9, 0.0  ;;  %v2785_v63 = vmax.f32 %v2783_v7, %v2784_v33 }
 0x290   : > { %8610 = vst [vmem:[#allocation78_spill] sm:$0xff] %v7257_v1  ;;  %v7261_v6 = vpop.eup %5528  ;;  %v3164_v60 = vadd.f32 %v3163_v41, %v3162_v58  ;;  %v7263_v43 = vpop.f32.mrb[94].mxu1  ;;  %v3165_v29 = vsel %vm2719_vm9, %v7257_v1, 0.0  ;;  %v7268_v47 = vrot.slane %v2905_v17, %v8585_v27  ;;  %v3144_v16 = vrot.slane %v2905_v17, 7 }
 0x291   : > { %8611 = vst [vmem:[#allocation81_spill] sm:$0xff] %v7261_v6  ;;  %v7270_v50 = vpop.f32.mrb[95].mxu1  ;;  %v7272_v56 = vpop.eup %5530  ;;  %v3167_v32 = vsel %vm2719_vm9, %v7261_v6, 0.0  ;;  %v2777_v12 = vrot.slane %v2776_v39, 4 }
 0x292   : > { %8612 = vst [vmem:[#allocation84_spill] sm:$0xff] %v7272_v56  ;;  %v3166_v52 = vadd.f32 %v3165_v29, %v3164_v60  ;;  %v7282_v57 = vpop.eup %5532  ;;  %v3169_v28 = vsel %vm2719_vm9, %v7272_v56, 0.0  ;;  %v2786_v19 = vsel %vm2719_vm9, %v7270_v50, -inf  ;;  %v3145_v34 = vsel %vm1753_vm1, %v3144_v16, %v7196_v3 }
 0x293   : > { %8613 = vst [vmem:[#allocation82_spill] sm:$0xff] %v7282_v57  ;;  %v7300_v44 = vpop.eup %5534  ;;  %v3171_v22 = vsel %vm2719_vm9, %v7282_v57, 0.0  ;;  %v2778_v59 = vmax.f32 %v2776_v39, %v2777_v12  ;;  %v2787_v7 = vmax.f32 %v2785_v63, %v2786_v19  ;;  %v2788_v60 = vsel %vm2719_vm9, %v7263_v43, -inf }
 0x294   : > { %v3168_v48 = vadd.f32 %v3167_v32, %v3166_v52  ;;  %v7288_v23 = vpop.f32.mrb[96].mxu1  ;;  %8614 = vst [vmem:[#allocation83_spill] sm:$0xff] %v7300_v44  ;;  %v7308_v4 = vpop.eup %5536  ;;  %v3173_v58 = vsel %vm2719_vm9, %v7300_v44, 0.0  ;;  %v2891_v57 = vrot.slane %v7131_v51, 3 }
 0x295   : > { %v7298_v40 = vpop.f32.mrb[97].mxu1  ;;  %8615 = vst [vmem:[#allocation85_spill] sm:$0xff] %v7308_v4  ;;  %v3175_v3 = vsel %vm2719_vm9, %v7308_v4, 0.0  ;;  %v2779_v52 = vrot.slane %v2778_v59, 2  ;;  %v2789_v32 = vmax.f32 %v2787_v7, %v2788_v60  ;;  %v2890_v60 = vrot.slane %v7131_v51, 2 }
 0x296   : > { %v3170_v21 = vadd.f32 %v3169_v28, %v3168_v48  ;;  %v2790_v29 = vsel %vm2719_vm9, %v7298_v40, -inf }
 0x297   : > { %v2780_v39 = vmax.f32 %v2778_v59, %v2779_v52  ;;  %v2791_v63 = vmax.f32 %v2789_v32, %v2790_v29 }
 0x298   : > { %v3172_v54 = vadd.f32 %v3171_v22, %v3170_v21  ;;  %v7310_v33 = vpop.f32.mrb[98].mxu1  ;;  %v2792_v21 = vsel %vm2719_vm9, %v7288_v23, -inf }
 0x299   : > { %8616 = vst [vmem:[#allocation87_spill] sm:$0xff] %v7310_v33  ;;  %v7314_v41 = vpop.f32.mrb[99].mxu1  ;;  %v2796_v52 = vsel %vm2719_vm9, %v7310_v33, -inf }
 0x29a   : > { %8617 = vst [vmem:[#allocation86_spill] sm:$0xff] %v7314_v41  ;;  %v3174_v17 = vadd.f32 %v3173_v58, %v3172_v54  ;;  %v2794_v19 = vsel %vm2719_vm9, %v7314_v41, -inf  ;;  %v2781_v54 = vrot.slane %v2780_v39, 1  ;;  %v2793_v58 = vmax.f32 %v2791_v63, %v2792_v21 }
 0x29c   : > { %v7322_v16 = vadd.f32 %v3175_v3, %v3174_v17  ;;  %v7324_v48 = vpop.f32.mrb[100].mxu1  ;;  %v2782_v59 = vmax.f32 %v2780_v39, %v2781_v54  ;;  %v2795_v29 = vmax.f32 %v2793_v58, %v2794_v19 }
 0x29d   : > { %v2805_v12 = vsel %vm2719_vm9, %v7324_v48, -inf  ;;  %v7328_v28 = vpop.f32.mrb[101].mxu1 }
 0x29e   : > { %8618 = vst [vmem:[#allocation88_spill] sm:$0xff] %v7322_v16  ;;  %v2804_v22 = vsel %vm2719_vm9, %v7328_v28, -inf  ;;  %v2906_v30 = vmax.f32 %v2782_v59, %v2890_v60  ;;  %v2797_v42 = vmax.f32 %v2795_v29, %v2796_v52 }
 0x29f   : > { %v2806_v7 = vmax.f32 %v2804_v22, %v2805_v12 }
 0x2a0   : > { %v7336_v17 = vpop.f32.mrb[102].mxu1  ;;  %v7348_v63 = vrot.slane %v2906_v30, %v8585_v27  ;;  %v3146_v59 = vrot.slane %v2906_v30, 6 }
 0x2a1   : > { %v7339_v3 = vpop.f32.mrb[103].mxu1  ;;  %v2809_v19 = vsel %vm2719_vm9, %v7336_v17, -inf }
 0x2a2   : > { %v2807_v32 = vsel %vm2719_vm9, %v7339_v3, -inf  ;;  %v3147_v22 = vsel %vm1756_vm2, %v3146_v59, %v3145_v34 }
 0x2a3   : > { %v2808_v55 = vmax.f32 %v2806_v7, %v2807_v32  ;;  %v2798_v32 = vrot.slane %v2797_v42, 4 }
 0x2a4   : > { %v7345_v2 = vpop.f32.mrb[104].mxu1 }
 0x2a5   : > { %8619 = vst [vmem:[#allocation59_spill] sm:$0xff] %v7345_v2  ;;  %v7350_v39 = vpop.f32.mrb[105].mxu1  ;;  %v2799_v58 = vmax.f32 %v2797_v42, %v2798_v32  ;;  %v2810_v12 = vmax.f32 %v2808_v55, %v2809_v19  ;;  %v2813_v34 = vsel %vm2719_vm9, %v7345_v2, -inf }
 0x2a6   : > { %v2811_v30 = vsel %vm2719_vm9, %v7350_v39, -inf }
 0x2a7   : > { %v2800_v20 = vrot.slane %v2799_v58, 2  ;;  %v2812_v29 = vmax.f32 %v2810_v12, %v2811_v30 }
 0x2a8   : > { %v7360_v54 = vpop.f32.mrb[106].mxu1 }
 0x2a9   : > { %8620 = vst [vmem:[#allocation63_spill] sm:$0xff] %v7360_v54  ;;  %v7366_v60 = vpop.f32.mrb[107].mxu1  ;;  %v2801_v19 = vmax.f32 %v2799_v58, %v2800_v20  ;;  %v2814_v32 = vmax.f32 %v2812_v29, %v2813_v34  ;;  %v2817_v56 = vsel %vm2719_vm9, %v7360_v54, -inf }
 0x2aa   : > { %8621 = vst [vmem:[#allocation71_spill] sm:$0xff] %v7366_v60  ;;  %v2815_v59 = vsel %vm2719_vm9, %v7366_v60, -inf }
 0x2ab   : > { %v2802_v30 = vrot.slane %v2801_v19, 1  ;;  %v2816_v61 = vmax.f32 %v2814_v32, %v2815_v59 }
 0x2ac   : > { %v7375_v21 = vpop.f32.mrb[108].mxu1 }
 0x2ad   : > { %v7379_v7 = vpop.f32.mrb[109].mxu1  ;;  %v2826_v52 = vsel %vm2719_vm9, %v7375_v21, -inf  ;;  %v2803_v20 = vmax.f32 %v2801_v19, %v2802_v30  ;;  %v2818_v58 = vmax.f32 %v2816_v61, %v2817_v56  ;;  %v8623_v19 = vsub.f32 %v7169_v11, %v7268_v47 }
 0x2ae   : > { %v2825_v55 = vsel %vm2719_vm9, %v7379_v7, -inf }
 0x2af   : > { %v2827_v31 = vmax.f32 %v2825_v55, %v2826_v52  ;;  %v2907_v34 = vmax.f32 %v2803_v20, %v2891_v57  ;;  %v3024_v56 = vmul.f32 1.442695, %v8623_v19  ;;  %v8625_v20 = vsub.f32 %v7165_v13, %v7268_v47 }
 0x2b0   : > { %v7383_v8 = vpop.f32.mrb[110].mxu1 }
 0x2b1   : > { %v7391_v42 = vpop.f32.mrb[111].mxu1  ;;  %v2830_v6 = vsel %vm2719_vm9, %v7383_v8, -inf  ;;  %v7411_v32 = vrot.slane %v2907_v34, %v8585_v27  ;;  %v3148_v57 = vrot.slane %v2907_v34, 5  ;;  %5538 = vpow2.f32 %v3024_v56 }
 0x2b2   : > { %v2828_v12 = vsel %vm2719_vm9, %v7391_v42, -inf }
 0x2b3   : > { %v2829_v4 = vmax.f32 %v2827_v31, %v2828_v12  ;;  %v2819_v12 = vrot.slane %v2818_v58, 4 }
 0x2b4   : > { %v7395_v44 = vpop.f32.mrb[112].mxu1 }
 0x2b5   : > { %v7402_v1 = vpop.f32.mrb[113].mxu1  ;;  %v2831_v29 = vmax.f32 %v2829_v4, %v2830_v6  ;;  %v2834_v9 = vsel %vm2719_vm9, %v7395_v44, -inf }
 0x2b6   : > { %v2832_v52 = vsel %vm2719_vm9, %v7402_v1, -inf }
 0x2b7   : > { %v2833_v31 = vmax.f32 %v2831_v29, %v2832_v52  ;;  %v2820_v52 = vmax.f32 %v2818_v58, %v2819_v12  ;;  %v3026_v29 = vmul.f32 1.442695, %v8625_v20 }
 0x2b8   : > { %v7406_v59 = vpop.f32.mrb[114].mxu1 }
 0x2b9   : > { %v7408_v55 = vpop.f32.mrb[115].mxu1  ;;  %v2835_v14 = vmax.f32 %v2833_v31, %v2834_v9  ;;  %v7436_v31 = vsel %vm1759_vm3, %v3148_v57, %v3147_v22  ;;  %v2821_v9 = vrot.slane %v2820_v52, 2  ;;  %v2838_v19 = vsel %vm2719_vm9, %v7406_v59, -inf }
 0x2ba   : > { %v2836_v58 = vsel %vm2719_vm9, %v7408_v55, -inf  ;;  %5540 = vpow2.f32 %v3026_v29 }
 0x2bb   : > { %v2822_v12 = vmax.f32 %v2820_v52, %v2821_v9  ;;  %v2837_v57 = vmax.f32 %v2835_v14, %v2836_v58  ;;  %v3503_v14 = vld [vmem:[%s8430_s12] sm:$0xf]  ;;  %v2892_v58 = vrot.slane %v7131_v51, 4 }
 0x2bc   : > { %v7421_v4 = vpop.f32.mrb[116].mxu1  ;;  %5445 = vmatpush3.msk.msra.mxu1 %vm3696_vm10, %v3503_v14  ;;  %5346 = vmatprep.subr.msk.mxu0 %vm3696_vm10, %v3503_v14 }
 0x2bd   : > { %v7425_v30 = vpop.f32.mrb[117].mxu1  ;;  %v2847_v22 = vsel %vm2719_vm9, %v7421_v4, -inf  ;;  %v2823_v13 = vrot.slane %v2822_v12, 1  ;;  %v2839_v20 = vmax.f32 %v2837_v57, %v2838_v19  ;;  %v8627_v57 = vsub.f32 %v7175_v49, %v7268_v47  ;;  %5347 = vmatpush3.msk.msra.mxu0 %vm3696_vm10, %v3503_v14  ;;  %5449 = vmatprep.subr.bf16.mxu1 %v8607_v46 }
 0x2be   : > { %v2846_v34 = vsel %vm2719_vm9, %v7425_v30, -inf  ;;  %v8634_v46 = vsub.f32 %v7183_v24, %v7268_v47  ;;  %v8638_v24 = vsub.f32 %v7220_v36, %v7348_v63 }
 0x2bf   : > { %v2848_v16 = vmax.f32 %v2846_v34, %v2847_v22  ;;  %v2824_v52 = vmax.f32 %v2822_v12, %v2823_v13  ;;  %v3028_v29 = vmul.f32 1.442695, %v8627_v57  ;;  %v2840_v12 = vrot.slane %v2839_v20, 4  ;;  %v7498_v57 = vpop.eup %5538 }
 0x2c0   : > { %v7438_v61 = vpop.f32.mrb[118].mxu1  ;;  %8630 = vst [vmem:[#allocation89_spill] sm:$0xff] %v7498_v57  ;;  %v3032_v2 = vmul.f32 1.442695, %v8634_v46  ;;  %v8637_v46 = vsub.f32 %v7189_v5, %v7268_v47 }
 0x2c1   : > { %8622 = vst [vmem:[#allocation61_spill] sm:$0xff] %v7438_v61  ;;  %v7443_v6 = vpop.f32.mrb[119].mxu1  ;;  %v2851_v34 = vsel %vm2719_vm9, %v7438_v61, -inf  ;;  %v2908_v19 = vmax.f32 %v2824_v52, %v2892_v58  ;;  %5542 = vpow2.f32 %v3028_v29 }
 0x2c2   : > { %8624 = vst [vmem:[#allocation65_spill] sm:$0xff] %v7443_v6  ;;  %v2849_v41 = vsel %vm2719_vm9, %v7443_v6, -inf }
 0x2c3   : > { %v2850_v9 = vmax.f32 %v2848_v16, %v2849_v41  ;;  %v7482_v6 = vrot.slane %v2908_v19, %v8585_v27 }
 0x2c4   : > { %v7454_v11 = vpop.f32.mrb[120].mxu1 }
 0x2c5   : > { %v7458_v33 = vpop.f32.mrb[121].mxu1  ;;  %v2852_v41 = vmax.f32 %v2850_v9, %v2851_v34  ;;  %v2855_v49 = vsel %vm2719_vm9, %v7454_v11, -inf }
 0x2c6   : > { %8626 = vst [vmem:[#allocation90_spill] sm:$0xff] %v7458_v33  ;;  %v2853_v56 = vsel %vm2719_vm9, %v7458_v33, -inf  ;;  %v8629_v33 = vsub.f32 %v7173_v15, %v7268_v47  ;;  %v2841_v15 = vmax.f32 %v2839_v20, %v2840_v12  ;;  %v8632_v20 = vsub.f32 %v7204_v35, %v7348_v63 }
 0x2c7   : > { %v2854_v13 = vmax.f32 %v2852_v41, %v2853_v56  ;;  %v8633_v41 = vsub.f32 %v7200_v25, %v7348_v63  ;;  %v8635_v35 = vsub.f32 %v7181_v0, %v7268_v47  ;;  %v3183_v25 = vsel %vm2719_vm9, %v7498_v57, 0.0 }
 0x2c8   : > { %v7470_v22 = vpop.f32.mrb[122].mxu1  ;;  %v3030_v61 = vmul.f32 1.442695, %v8629_v33  ;;  %v3040_v12 = vmul.f32 1.442695, %v8632_v20  ;;  %v3150_v33 = vrot.slane %v2908_v19, 4  ;;  %v8636_v19 = vsub.f32 %v7191_v62, %v7268_v47 }
 0x2c9   : > { %v7475_v16 = vpop.f32.mrb[123].mxu1  ;;  %v2856_v52 = vmax.f32 %v2854_v13, %v2855_v49  ;;  %v7506_v49 = vpop.eup %5540  ;;  %v3042_v29 = vmul.f32 1.442695, %v8633_v41  ;;  %v2842_v14 = vrot.slane %v2841_v15, 2  ;;  %v3034_v20 = vmul.f32 1.442695, %v8635_v35 }
 0x2ca   : > { %8628 = vst [vmem:[#allocation92_spill] sm:$0xff] %v7475_v16  ;;  %5544 = vpow2.f32 %v3030_v61  ;;  %8631 = vst [vmem:[#allocation91_spill] sm:$0xff] %v7506_v49  ;;  %v2857_v56 = vsel %vm2719_vm9, %v7475_v16, -inf  ;;  %v3036_v61 = vmul.f32 1.442695, %v8636_v19  ;;  %v3184_v41 = vsel %vm2719_vm9, %v7506_v49, 0.0 }
 0x2cb   : > { %v3038_v0 = vmul.f32 1.442695, %v8637_v46  ;;  %5546 = vpow2.f32 %v3040_v12  ;;  %v3044_v35 = vmul.f32 1.442695, %v8638_v24  ;;  %v7545_v62 = vsel %vm1762_vm4, %v3150_v33, %v7436_v31  ;;  %v7551_v16 = vpop.eup %5542 }
 0x2cc   : > { %v7486_v9 = vpop.f32.mrb[124].mxu1  ;;  %5548 = vpow2.f32 %v3042_v29  ;;  %v2843_v57 = vmax.f32 %v2841_v15, %v2842_v14  ;;  %v2858_v49 = vmax.f32 %v2856_v52, %v2857_v56  ;;  %v3185_v5 = vadd.f32 %v3184_v41, %v3183_v25 }
 0x2cd   : > { %v7488_v58 = vpop.f32.mrb[125].mxu1  ;;  %v2868_v60 = vsel %vm2719_vm9, %v7486_v9, -inf  ;;  %5550 = vpow2.f32 %v3032_v2  ;;  %v2859_v36 = vsel %vm2719_vm9, %v7470_v22, -inf  ;;  %v8639_v15 = vsub.f32 %v7218_v45, %v7348_v63 }
 0x2ce   : > { %v2867_v47 = vsel %vm2719_vm9, %v7488_v58, -inf  ;;  %5552 = vpow2.f32 %v3034_v20  ;;  %v2844_v31 = vrot.slane %v2843_v57, 1  ;;  %v2860_v33 = vmax.f32 %v2858_v49, %v2859_v36 }
 0x2cf   : > { %5554 = vpow2.f32 %v3036_v61  ;;  %v3046_v2 = vmul.f32 1.442695, %v8639_v15  ;;  %v2893_v56 = vrot.slane %v7131_v51, 5  ;;  %v2869_v29 = vmax.f32 %v2867_v47, %v2868_v60 }
 0x2d0   : > { %v7504_v13 = vpop.f32.mrb[126].mxu1  ;;  %v3186_v49 = vsel %vm2719_vm9, %v7551_v16, 0.0  ;;  %5556 = vpow2.f32 %v3044_v35  ;;  %v8640_v20 = vsub.f32 %v7226_v10, %v7348_v63  ;;  %v2845_v61 = vmax.f32 %v2843_v57, %v2844_v31 }
 0x2d1   : > { %v7515_v34 = vpop.f32.mrb[127].mxu1  ;;  %5558 = vpow2.f32 %v3038_v0  ;;  %v3187_v46 = vadd.f32 %v3186_v49, %v3185_v5  ;;  %v8641_v45 = vsub.f32 %v7224_v38, %v7348_v63  ;;  %v8642_v36 = vsub.f32 %v7234_v37, %v7348_v63 }
 0x2d2   : > { %v2870_v14 = vsel %vm2719_vm9, %v7515_v34, -inf  ;;  %v3048_v41 = vmul.f32 1.442695, %v8640_v20  ;;  %v2909_v15 = vmax.f32 %v2845_v61, %v2893_v56  ;;  %v2872_v35 = vsel %vm2719_vm9, %v7504_v13, -inf }
 0x2d3   : > { %v3050_v24 = vmul.f32 1.442695, %v8641_v45  ;;  %v2871_v60 = vmax.f32 %v2869_v29, %v2870_v14  ;;  %v3052_v47 = vmul.f32 1.442695, %v8642_v36  ;;  %5560 = vpow2.f32 %v3046_v2 }
 0x2d4   : > { %v7535_v54 = vpop.f32.mrb[128].mxu1  ;;  %v7567_v25 = vpop.eup %5544  ;;  %v2861_v57 = vrot.slane %v2860_v33, 4  ;;  %5562 = vpow2.f32 %v3048_v41  ;;  %v7587_v38 = vrot.slane %v2909_v15, %v8585_v27  ;;  %v8645_v2 = vsub.f32 %v7232_v18, %v7348_v63 }
 0x2d5   : > { %v7547_v19 = vpop.f32.mrb[129].mxu1  ;;  %v2873_v0 = vmax.f32 %v2871_v60, %v2872_v35  ;;  %v3188_v5 = vsel %vm2719_vm9, %v7567_v25, 0.0  ;;  %v7589_v31 = vpop.eup %5546  ;;  %5564 = vpow2.f32 %v3050_v24  ;;  %v8646_v61 = vsub.f32 %v7247_v53, %v7411_v32 }
 0x2d6   : > { %v2874_v10 = vsel %vm2719_vm9, %v7547_v19, -inf  ;;  %8643 = vst [vmem:[#allocation93_spill] sm:$0xff] %v7589_v31  ;;  %v3189_v37 = vadd.f32 %v3188_v5, %v3187_v46  ;;  %v7591_v56 = vpop.eup %5548  ;;  %5566 = vpow2.f32 %v3052_v47  ;;  %v3054_v29 = vmul.f32 1.442695, %v8645_v2 }
 0x2d7   : > { %v2875_v14 = vmax.f32 %v2873_v0, %v2874_v10  ;;  %8644 = vst [vmem:[#allocation94_spill] sm:$0xff] %v7591_v56  ;;  %v2984_v49 = vsub.f32 %v7379_v7, %v7587_v38  ;;  %v2985_v20 = vsub.f32 %v7375_v21, %v7587_v38  ;;  %v7600_v41 = vpop.eup %5550  ;;  %v3056_v46 = vmul.f32 1.442695, %v8646_v61 }
 0x2d8   : > { %v7559_v52 = vpop.f32.mrb[130].mxu1  ;;  %v2862_v18 = vmax.f32 %v2860_v33, %v2861_v57  ;;  %v7609_v63 = vpop.eup %5552  ;;  %v3204_v7 = vsel %vm2719_vm9, %v7589_v31, 0.0  ;;  %v8648_v21 = vsub.f32 %v7240_v26, %v7411_v32  ;;  %v3205_v33 = vsel %vm2719_vm9, %v7591_v56, 0.0 }
 0x2d9   : > { %v7565_v12 = vpop.f32.mrb[131].mxu1  ;;  %8647 = vst [vmem:[#allocation95_spill] sm:$0xff] %v7609_v63  ;;  %v7620_v47 = vpop.eup %5554  ;;  %v8649_v35 = vsub.f32 %v7270_v50, %v7411_v32  ;;  %5568 = vpow2.f32 %v3054_v29  ;;  %v3152_v5 = vrot.slane %v2909_v15, 3  ;;  %v2894_v2 = vrot.slane %v7131_v51, 6 }
 0x2da   : > { %v3058_v60 = vmul.f32 1.442695, %v8648_v21  ;;  %v7631_v0 = vpop.eup %5556  ;;  %v3190_v21 = vsel %vm2719_vm9, %v7600_v41, 0.0  ;;  %5570 = vpow2.f32 %v3056_v46  ;;  %v8651_v50 = vsub.f32 %v7328_v28, %v7482_v6 }
 0x2db   : > { %v3060_v10 = vmul.f32 1.442695, %v8649_v35  ;;  %8650 = vst [vmem:[#allocation96_spill] sm:$0xff] %v7631_v0  ;;  %v7634_v61 = vpop.eup %5558  ;;  %v2863_v57 = vrot.slane %v2862_v18, 2  ;;  %v3191_v36 = vadd.f32 %v3190_v21, %v3189_v37  ;;  %v3206_v53 = vadd.f32 %v3205_v33, %v3204_v7 }
 0x2dc   : > { %v3072_v35 = vmul.f32 1.442695, %v8651_v50  ;;  %5572 = vpow2.f32 %v3058_v60  ;;  %v8652_v29 = vsub.f32 %v7324_v48, %v7482_v6  ;;  %v3192_v24 = vsel %vm2719_vm9, %v7609_v63, 0.0 }
 0x2dd   : > { %v7644_v26 = vpop.eup %5560  ;;  %v3207_v46 = vsel %vm2719_vm9, %v7631_v0, 0.0  ;;  %5574 = vpow2.f32 %v3060_v10  ;;  %v8653_v28 = vsub.f32 %v7263_v43, %v7411_v32  ;;  %v3088_v7 = vmul.f32 1.442695, %v2984_v49 }
 0x2de   : > { %v3074_v15 = vmul.f32 1.442695, %v8652_v29  ;;  %v7653_v37 = vpop.eup %5562  ;;  %v7657_v48 = vsel %vm1765_vm5, %v3152_v5, %v7545_v62  ;;  %v2876_v60 = vsel %vm2719_vm9, %v7535_v54, -inf  ;;  %v2878_v33 = vsel %vm2719_vm9, %v7565_v12, -inf }
 0x2df   : > { %v3062_v50 = vmul.f32 1.442695, %v8653_v28  ;;  %v7663_v21 = vpop.eup %5564  ;;  %5576 = vpow2.f32 %v3072_v35  ;;  %v3090_v10 = vmul.f32 1.442695, %v2985_v20  ;;  %v2864_v29 = vmax.f32 %v2862_v18, %v2863_v57 }
 0x2e0   : > { %v2877_v43 = vmax.f32 %v2875_v14, %v2876_v60  ;;  %v7665_v28 = vpop.eup %5566  ;;  %v3193_v45 = vadd.f32 %v3192_v24, %v3191_v36  ;;  %v3208_v49 = vadd.f32 %v3207_v46, %v3206_v53  ;;  %v8654_v62 = vsub.f32 %v7298_v40, %v7411_v32  ;;  %v8656_v14 = vld [vmem:[#allocation86_spill] sm:$0xff] }
 0x2e1   : > { %5578 = vpow2.f32 %v3074_v15  ;;  %v8655_v0 = vsub.f32 %v7288_v23, %v7411_v32  ;;  %v2865_v31 = vrot.slane %v2864_v29, 1  ;;  %v3209_v20 = vsel %vm2719_vm9, %v7644_v26, 0.0 }
 0x2e2   : > { %v3064_v5 = vmul.f32 1.442695, %v8654_v62  ;;  %5580 = vpow2.f32 %v3062_v50  ;;  %v2879_v63 = vmax.f32 %v2877_v43, %v2878_v33  ;;  %v8657_v18 = vsub.f32 %v8656_v14, %v7411_v32 }
 0x2e3   : > { %v3066_v56 = vmul.f32 1.442695, %v8655_v0  ;;  %5582 = vpow2.f32 %v3088_v7  ;;  %v2880_v40 = vsel %vm2719_vm9, %v7559_v52, -inf  ;;  %v8658_v53 = vsub.f32 %v7339_v3, %v7482_v6  ;;  %v7683_v0 = vpop.eup %5568 }
 0x2e4   : > { %v3068_v24 = vmul.f32 1.442695, %v8657_v18  ;;  %5584 = vpow2.f32 %v3090_v10  ;;  %v2866_v23 = vmax.f32 %v2864_v29, %v2865_v31  ;;  %v2881_v57 = vmax.f32 %v2879_v63, %v2880_v40  ;;  %v7688_v50 = vpop.eup %5570 }
 0x2e5   : > { %v3076_v36 = vmul.f32 1.442695, %v8658_v53  ;;  %v3210_v35 = vadd.f32 %v3209_v20, %v3208_v49  ;;  %5586 = vpow2.f32 %v3064_v5  ;;  %v8659_v15 = vsub.f32 %v7336_v17, %v7482_v6  ;;  %8660 = vst [vmem:[#allocation86_spill] sm:$0xff] %v7688_v50 }
 0x2e6   : > { %v3194_v7 = vsel %vm2719_vm9, %v7620_v47, 0.0  ;;  %5588 = vpow2.f32 %v3066_v56  ;;  %v8661_v3 = vsub.f32 %v7391_v42, %v7587_v38  ;;  %v2910_v31 = vmax.f32 %v2866_v23, %v2894_v2  ;;  %v7695_v63 = vpop.eup %5572  ;;  %v8669_v23 = vld [vmem:[#allocation61_spill] sm:$0xff] }
 0x2e7   : > { %v3078_v46 = vmul.f32 1.442695, %v8659_v15  ;;  %8662 = vst [vmem:[#allocation97_spill] sm:$0xff] %v7695_v63  ;;  %v7697_v33 = vadd.f32 %v3194_v7, %v3193_v45  ;;  %v7701_v10 = vsel %vm2719_vm9, %v7634_v61, 0.0  ;;  %5590 = vpow2.f32 %v3068_v24  ;;  %v7704_v29 = vpop.eup %5574  ;;  %v8670_v7 = vld [vmem:[#allocation90_spill] sm:$0xff] }
 0x2e8   : > { %v3092_v60 = vmul.f32 1.442695, %v8661_v3  ;;  %v3211_v56 = vsel %vm2719_vm9, %v7653_v37, 0.0  ;;  %5592 = vpow2.f32 %v3076_v36  ;;  %v8663_v42 = vsub.f32 %v7350_v39, %v7482_v6  ;;  %v8668_v36 = vld [vmem:[#allocation65_spill] sm:$0xff] }
 0x2e9   : > { %v7712_v45 = vrot.slane %v2910_v31, %v8585_v27  ;;  %v3212_v43 = vadd.f32 %v3211_v56, %v3210_v35  ;;  %v3213_v49 = vsel %vm2719_vm9, %v7663_v21, 0.0  ;;  %5594 = vpow2.f32 %v3078_v46  ;;  %v7719_v20 = vpop.eup %5576 }
 0x2ea   : > { %v3080_v2 = vmul.f32 1.442695, %v8663_v42  ;;  %v8664_v62 = vsub.f32 %v7383_v8, %v7587_v38  ;;  %8665 = vst [vmem:[#allocation98_spill] sm:$0xff] %v7719_v20  ;;  %5596 = vpow2.f32 %v3092_v60  ;;  %v8666_v14 = vsub.f32 %v7402_v1, %v7587_v38 }
 0x2eb   : > { %v2992_v18 = vsub.f32 %v7425_v30, %v7712_v45  ;;  %v2882_v24 = vrot.slane %v2881_v57, 4  ;;  %v7726_v40 = vpop.eup %5578  ;;  %v2993_v53 = vsub.f32 %v7421_v4, %v7712_v45  ;;  %v2994_v8 = vsub.f32 %v8668_v36, %v7712_v45 }
 0x2ec   : > { %v3094_v5 = vmul.f32 1.442695, %v8664_v62  ;;  %v3096_v39 = vmul.f32 1.442695, %v8666_v14  ;;  %8667 = vst [vmem:[#allocation99_spill] sm:$0xff] %v7726_v40  ;;  %v2995_v35 = vsub.f32 %v8669_v23, %v7712_v45  ;;  %v3154_v15 = vrot.slane %v2910_v31, 2  ;;  %v7734_v46 = vpop.eup %5580 }
 0x2ed   : > { %v3225_v1 = vsel %vm2719_vm9, %v7688_v50, 0.0  ;;  %v3226_v30 = vsel %vm2719_vm9, %v7695_v63, 0.0  ;;  %5598 = vpow2.f32 %v3080_v2  ;;  %v2996_v3 = vsub.f32 %v8670_v7, %v7712_v45  ;;  %v7742_v4 = vpop.eup %5582  ;;  %v8672_v31 = vld [vmem:[#allocation92_spill] sm:$0xff] }
 0x2ee   : > { %8671 = vst [vmem:[#allocation65_spill] sm:$0xff] %v7742_v4  ;;  %5600 = vpow2.f32 %v3094_v5  ;;  %v2997_v60 = vsub.f32 %v7454_v11, %v7712_v45  ;;  %v2998_v56 = vsub.f32 %v8672_v31, %v7712_v45  ;;  %v7750_v62 = vpop.eup %5584  ;;  %v3246_v2 = vsel %vm2719_vm9, %v7719_v20, 0.0  ;;  %v8674_v20 = vld [vmem:[#allocation87_spill] sm:$0xff] }
 0x2ef   : > { %8673 = vst [vmem:[#allocation61_spill] sm:$0xff] %v7750_v62  ;;  %v3247_v14 = vsel %vm2719_vm9, %v7726_v40, 0.0  ;;  %5602 = vpow2.f32 %v3096_v39  ;;  %v3104_v36 = vmul.f32 1.442695, %v2992_v18  ;;  %v7756_v5 = vpop.eup %5586  ;;  %v3106_v23 = vmul.f32 1.442695, %v2993_v53 }
 0x2f0   : > { %v3108_v11 = vmul.f32 1.442695, %v2994_v8  ;;  %v7760_v7 = vsel %vm1768_vm6, %v3154_v15, %v7657_v48  ;;  %v2883_v31 = vmax.f32 %v2881_v57, %v2882_v24  ;;  %v7762_v42 = vpop.eup %5588  ;;  %v7766_v17 = vsel %vm2719_vm9, %v7665_v28, 0.0  ;;  %v8677_v15 = vld [vmem:[#allocation59_spill] sm:$0xff] }
 0x2f1   : > { %v8675_v40 = vsub.f32 %v8674_v20, %v7411_v32  ;;  %5604 = vpow2.f32 %v3104_v36  ;;  %v3110_v18 = vmul.f32 1.442695, %v2995_v35  ;;  %v7771_v63 = vpop.eup %5590  ;;  %v3267_v53 = vsel %vm2719_vm9, %v7742_v4, 0.0 }
 0x2f2   : > { %v3268_v48 = vsel %vm2719_vm9, %v7750_v62, 0.0  ;;  %5606 = vpow2.f32 %v3106_v23  ;;  %v3112_v57 = vmul.f32 1.442695, %v2996_v3  ;;  %v7777_v24 = vpop.eup %5592  ;;  %v3227_v8 = vadd.f32 %v3226_v30, %v3225_v1  ;;  %v8683_v62 = vld [vmem:[#allocation63_spill] sm:$0xff] }
 0x2f3   : > { %v3070_v39 = vmul.f32 1.442695, %v8675_v40  ;;  %8676 = vst [vmem:[#allocation90_spill] sm:$0xff] %v7777_v24  ;;  %v8678_v50 = vsub.f32 %v8677_v15, %v7482_v6  ;;  %v3248_v20 = vadd.f32 %v3247_v14, %v3246_v2  ;;  %5608 = vpow2.f32 %v3108_v11  ;;  %v7782_v40 = vpop.eup %5594  ;;  %v8681_v11 = vld [vmem:[#allocation71_spill] sm:$0xff] }
 0x2f4   : > { %v7784_v35 = vadd.f32 %v3213_v49, %v3212_v43  ;;  %v8679_v36 = vsub.f32 %v7395_v44, %v7587_v38  ;;  %5610 = vpow2.f32 %v3110_v18  ;;  %v2884_v23 = vrot.slane %v2883_v31, 2  ;;  %v7789_v3 = vpop.eup %5596 }
 0x2f5   : > { %v3082_v32 = vmul.f32 1.442695, %v8678_v50  ;;  %8680 = vst [vmem:[#allocation92_spill] sm:$0xff] %v7789_v3  ;;  %5612 = vpow2.f32 %v3070_v39  ;;  %v3228_v1 = vsel %vm2719_vm9, %v7704_v29, 0.0  ;;  %v3230_v50 = vsel %vm2719_vm9, %v7734_v46, 0.0 }
 0x2f6   : > { %v3098_v4 = vmul.f32 1.442695, %v8679_v36  ;;  %v3269_v30 = vadd.f32 %v3268_v48, %v3267_v53  ;;  %v3249_v43 = vsel %vm2719_vm9, %v7777_v24, 0.0  ;;  %5614 = vpow2.f32 %v3112_v57 }
 0x2f7   : > { %v3114_v49 = vmul.f32 1.442695, %v2997_v60  ;;  %v2885_v2 = vmax.f32 %v2883_v31, %v2884_v23  ;;  %v7797_v44 = vpop.eup %5598  ;;  %v3229_v14 = vadd.f32 %v3228_v1, %v3227_v8  ;;  %5616 = vpow2.f32 %v3082_v32 }
 0x2f8   : > { %v8682_v39 = vsub.f32 %v8681_v11, %v7482_v6  ;;  %v3250_v15 = vadd.f32 %v3249_v43, %v3248_v20  ;;  %v7802_v36 = vpop.eup %5600  ;;  %v8684_v53 = vsub.f32 %v8683_v62, %v7482_v6  ;;  %5618 = vpow2.f32 %v3098_v4 }
 0x2f9   : > { %v3270_v60 = vsel %vm2719_vm9, %v7789_v3, 0.0  ;;  %v2886_v31 = vrot.slane %v2885_v2, 1  ;;  %v7809_v57 = vpop.eup %5602  ;;  %v3232_v8 = vsel %vm2719_vm9, %v7756_v5, 0.0  ;;  %v3234_v32 = vsel %vm2719_vm9, %v7762_v42, 0.0 }
 0x2fa   : > { %v3084_v18 = vmul.f32 1.442695, %v8682_v39  ;;  %v3086_v48 = vmul.f32 1.442695, %v8684_v53  ;;  %v8685_v20 = vsub.f32 %v7408_v55, %v7587_v38  ;;  %v3271_v1 = vadd.f32 %v3270_v60, %v3269_v30 }
 0x2fb   : > { %v3251_v6 = vsel %vm2719_vm9, %v7782_v40, 0.0  ;;  %5620 = vpow2.f32 %v3114_v49  ;;  %v3116_v4 = vmul.f32 1.442695, %v2998_v56  ;;  %v2887_v62 = vmax.f32 %v2885_v2, %v2886_v31  ;;  %v7820_v43 = vpop.eup %5604 }
 0x2fc   : > { %v3100_v23 = vmul.f32 1.442695, %v8685_v20  ;;  %v3231_v11 = vadd.f32 %v3230_v50, %v3229_v14  ;;  %5622 = vpow2.f32 %v3084_v18  ;;  %v3252_v39 = vadd.f32 %v3251_v6, %v3250_v15  ;;  %v7825_v24 = vpop.eup %5606 }
 0x2fd   : > { %v8686_v53 = vsub.f32 %v7406_v59, %v7587_v38  ;;  %5624 = vpow2.f32 %v3086_v48  ;;  %v3272_v55 = vsel %vm2719_vm9, %v7802_v36, 0.0  ;;  %v3288_v30 = vsel %vm2719_vm9, %v7820_v43, 0.0  ;;  %v7833_v2 = vpop.eup %5608 }
 0x2fe   : > { %v8687_v56 = vrot.slane %v7131_v51, 7  ;;  %8688 = vst [vmem:[#allocation87_spill] sm:$0xff] %v7833_v2  ;;  %v3253_v50 = vsel %vm2719_vm9, %v7797_v44, 0.0  ;;  %5626 = vpow2.f32 %v3100_v23  ;;  %v3273_v59 = vadd.f32 %v3272_v55, %v3271_v1  ;;  %v7839_v14 = vpop.eup %5610 }
 0x2ff   : > { %v3102_v3 = vmul.f32 1.442695, %v8686_v53  ;;  %v3289_v38 = vsel %vm2719_vm9, %v7825_v24, 0.0  ;;  %8689 = vst [vmem:[#allocation59_spill] sm:$0xff] %v7839_v14  ;;  %5628 = vpow2.f32 %v3116_v4  ;;  %v8690_v18 = vsub.f32 %v7470_v22, %v7712_v45  ;;  %v7847_v31 = vpop.eup %5612 }
 0x300   : > { %v2911_v49 = vmax.f32 %v2887_v62, %v8687_v56  ;;  %v3290_v48 = vadd.f32 %v3289_v38, %v3288_v30  ;;  %v3233_v20 = vadd.f32 %v3232_v8, %v3231_v11  ;;  %v3254_v6 = vadd.f32 %v3253_v50, %v3252_v39  ;;  %v7851_v1 = vpop.eup %5614 }
 0x301   : > { %v3118_v15 = vmul.f32 1.442695, %v8690_v18  ;;  %5630 = vpow2.f32 %v3102_v3  ;;  %v3291_v23 = vsel %vm2719_vm9, %v7833_v2, 0.0  ;;  %8691 = vst [vmem:[#allocation71_spill] sm:$0xff] %v7851_v1  ;;  %v3274_v4 = vsel %vm2719_vm9, %v7809_v57, 0.0  ;;  %v7859_v53 = vpop.eup %5616 }
 0x302   : > { %v7845_v60 = vrot.slane %v2911_v49, %v8585_v27  ;;  %v3292_v62 = vadd.f32 %v3291_v23, %v3290_v48  ;;  %v3275_v8 = vadd.f32 %v3274_v4, %v3273_v59  ;;  %v3293_v3 = vsel %vm2719_vm9, %v7839_v14, 0.0  ;;  %v7867_v55 = vpop.eup %5618 }
 0x303   : > { %5632 = vpow2.f32 %v3118_v15  ;;  %v3295_v56 = vsel %vm2719_vm9, %v7851_v1, 0.0  ;;  %v3235_v23 = vadd.f32 %v3234_v32, %v3233_v20  ;;  %v3276_v4 = vsel %vm2719_vm9, %v7867_v55, 0.0 }
 0x304   : > { %v3000_v22 = vsub.f32 %v7488_v58, %v7845_v60  ;;  %v3001_v45 = vsub.f32 %v7486_v9, %v7845_v60  ;;  %v3002_v11 = vsub.f32 %v7515_v34, %v7845_v60  ;;  %v3003_v39 = vsub.f32 %v7504_v13, %v7845_v60 }
 0x305   : > { %v3294_v30 = vadd.f32 %v3293_v3, %v3292_v62  ;;  %v3004_v58 = vsub.f32 %v7547_v19, %v7845_v60  ;;  %v3005_v9 = vsub.f32 %v7535_v54, %v7845_v60  ;;  %v3006_v50 = vsub.f32 %v7565_v12, %v7845_v60  ;;  %v7879_v59 = vpop.eup %5620 }
 0x306   : > { %v3007_v34 = vsub.f32 %v7559_v52, %v7845_v60  ;;  %v3156_v13 = vrot.slane %v2911_v49, 1  ;;  %8692 = vst [vmem:[#allocation63_spill] sm:$0xff] %v7879_v59  ;;  %v3120_v18 = vmul.f32 1.442695, %v3000_v22  ;;  %v3122_v15 = vmul.f32 1.442695, %v3001_v45  ;;  %v7881_v19 = vpop.eup %5622 }
 0x307   : > { %v3296_v38 = vadd.f32 %v3295_v56, %v3294_v30  ;;  %v3124_v48 = vmul.f32 1.442695, %v3002_v11  ;;  %v3255_v54 = vsel %vm2719_vm9, %v7859_v53, 0.0  ;;  %v3126_v12 = vmul.f32 1.442695, %v3003_v39  ;;  %v7887_v62 = vpop.eup %5624 }
 0x308   : > { %v3216_v52 = vadd.f32 %v7766_v17, %v7784_v35  ;;  %v3256_v49 = vadd.f32 %v3255_v54, %v3254_v6  ;;  %v3277_v60 = vadd.f32 %v3276_v4, %v3275_v8  ;;  %5634 = vpow2.f32 %v3120_v18  ;;  %v7891_v22 = vpop.eup %5626 }
 0x309   : > { %v3297_v32 = vsel %vm2719_vm9, %v7879_v59, 0.0  ;;  %5636 = vpow2.f32 %v3122_v15  ;;  %v3128_v20 = vmul.f32 1.442695, %v3004_v58  ;;  %v7897_v45 = vsel %vm1771_vm7, %v3156_v13, %v7760_v7  ;;  %v7899_v3 = vpop.eup %5628 }
 0x30a   : > { %8693 = vst [vmem:[#allocation100_spill] sm:$0xff] %v7899_v3  ;;  %v3236_v11 = vsel %vm2719_vm9, %v7771_v63, 0.0  ;;  %v3298_v17 = vadd.f32 %v3297_v32, %v3296_v38  ;;  %5638 = vpow2.f32 %v3124_v48  ;;  %v3257_v39 = vsel %vm2719_vm9, %v7881_v19, 0.0 }
 0x30b   : > { %v7905_v6 = vpop.eup %5630  ;;  %v3237_v8 = vadd.f32 %v3236_v11, %v3235_v23  ;;  %5640 = vpow2.f32 %v3126_v12  ;;  %v3130_v30 = vmul.f32 1.442695, %v3005_v9  ;;  %v3197_v7 = vadd.f32 %v7701_v10, %v7697_v33 }
 0x30c   : > { %v3217_v58 = vsel %vm2719_vm9, %v7683_v0, 0.0  ;;  %v3258_v56 = vadd.f32 %v3257_v39, %v3256_v49  ;;  %v3278_v13 = vsel %vm2719_vm9, %v7891_v22, 0.0  ;;  %v3299_v18 = vsel %vm2719_vm9, %v7899_v3, 0.0 }
 0x30d   : > { %v3279_v38 = vadd.f32 %v3278_v13, %v3277_v60  ;;  %5642 = vpow2.f32 %v3128_v20  ;;  %v3132_v15 = vmul.f32 1.442695, %v3006_v50  ;;  %v7917_v48 = vpop.eup %5632  ;;  %v3218_v23 = vadd.f32 %v3217_v58, %v3216_v52 }
 0x30e   : > { %8694 = vst [vmem:[#allocation101_spill] sm:$0xff] %v7917_v48  ;;  %v3238_v9 = vsel %vm2719_vm9, %v7847_v31, 0.0  ;;  %v3300_v33 = vadd.f32 %v3299_v18, %v3298_v17  ;;  %v3259_v54 = vsel %vm2719_vm9, %v7887_v62, 0.0  ;;  %5644 = vpow2.f32 %v3130_v30 }
 0x30f   : > { %v3239_v10 = vadd.f32 %v3238_v9, %v3237_v8  ;;  %v3134_v4 = vmul.f32 1.442695, %v3007_v34  ;;  %v3260_v12 = vadd.f32 %v3259_v54, %v3258_v56  ;;  %v3280_v49 = vsel %vm2719_vm9, %v7905_v6, 0.0  ;;  %v8697_v8 = vld [vmem:[#allocation88_spill] sm:$0xff] }
 0x310   : > { %v3198_v60 = vrot.slane %v3197_v7, 4  ;;  %v3281_v32 = vadd.f32 %v3280_v49, %v3279_v38  ;;  %v3301_v50 = vsel %vm2719_vm9, %v7917_v48, 0.0  ;;  %5646 = vpow2.f32 %v3132_v15 }
 0x311   : > { %v3219_v20 = vrot.slane %v3218_v23, 4  ;;  %v3302_v11 = vadd.f32 %v3301_v50, %v3300_v33  ;;  %v3177_v39 = vrot.slane %v8697_v8, 4  ;;  %v3240_v30 = vrot.slane %v3239_v10, 4 }
 0x312   : > { %v7927_v52 = vpop.eup %5634  ;;  %5648 = vpow2.f32 %v3134_v4  ;;  %v3261_v56 = vrot.slane %v3260_v12, 4  ;;  %v3199_v18 = vadd.f32 %v3198_v60, %v3197_v7  ;;  %v3282_v15 = vrot.slane %v3281_v32, 4 }
 0x313   : > { %8695 = vst [vmem:[#allocation102_spill] sm:$0xff] %v7927_v52  ;;  %v7929_v17 = vpop.eup %5636  ;;  %v3309_v34 = vsel %vm2719_vm9, %v7927_v52, 0.0  ;;  %v3220_v33 = vadd.f32 %v3219_v20, %v3218_v23  ;;  %v3303_v54 = vrot.slane %v3302_v11, 4  ;;  %v3178_v50 = vadd.f32 %v3177_v39, %v8697_v8 }
 0x314   : > { %8696 = vst [vmem:[#allocation103_spill] sm:$0xff] %v7929_v17  ;;  %v7934_v58 = vpop.eup %5638  ;;  %v3310_v13 = vsel %vm2719_vm9, %v7929_v17, 0.0  ;;  %v3241_v35 = vadd.f32 %v3240_v30, %v3239_v10  ;;  %v3262_v48 = vadd.f32 %v3261_v56, %v3260_v12  ;;  %v3200_v7 = vrot.slane %v3199_v18, 2 }
 0x315   : > { %8698 = vst [vmem:[#allocation88_spill] sm:$0xff] %v7934_v58  ;;  %v7938_v38 = vpop.eup %5640  ;;  %v3311_v9 = vadd.f32 %v3310_v13, %v3309_v34  ;;  %v3312_v49 = vsel %vm2719_vm9, %v7934_v58, 0.0  ;;  %v3283_v60 = vadd.f32 %v3282_v15, %v3281_v32  ;;  %v3221_v23 = vrot.slane %v3220_v33, 2 }
 0x316   : > { %8699 = vst [vmem:[#allocation104_spill] sm:$0xff] %v7938_v38  ;;  %v3314_v17 = vsel %vm2719_vm9, %v7938_v38, 0.0  ;;  %v3304_v20 = vadd.f32 %v3303_v54, %v3302_v11  ;;  %v3179_v59 = vrot.slane %v3178_v50, 2  ;;  %v3242_v8 = vrot.slane %v3241_v35, 2 }
 0x317   : > { %v7942_v4 = vpop.eup %5642  ;;  %v3313_v52 = vadd.f32 %v3312_v49, %v3311_v9  ;;  %v3263_v39 = vrot.slane %v3262_v48, 2  ;;  %v3201_v56 = vadd.f32 %v3200_v7, %v3199_v18  ;;  %v3284_v9 = vrot.slane %v3283_v60, 2 }
 0x318   : > { %8700 = vst [vmem:[#allocation105_spill] sm:$0xff] %v7942_v4  ;;  %v7947_v3 = vpop.eup %5644  ;;  %v3316_v13 = vsel %vm2719_vm9, %v7942_v4, 0.0  ;;  %v3180_v15 = vadd.f32 %v3179_v59, %v3178_v50  ;;  %v3243_v54 = vadd.f32 %v3242_v8, %v3241_v35  ;;  %v8701_v1 = vsub.f32 %v7131_v51, %v7897_v45 }
 0x319   : > { %v3315_v34 = vadd.f32 %v3314_v17, %v3313_v52  ;;  %v3318_v12 = vsel %vm2719_vm9, %v7947_v3, 0.0  ;;  %v3222_v52 = vadd.f32 %v3221_v23, %v3220_v33  ;;  %v3305_v17 = vrot.slane %v3304_v20, 2 }
 0x31a   : > { %v7951_v58 = vpop.eup %5646  ;;  %v3264_v4 = vadd.f32 %v3263_v39, %v3262_v48  ;;  %v3285_v38 = vadd.f32 %v3284_v9, %v3283_v60  ;;  %v3160_v18 = vmul.f32 1.442695, %v8701_v1  ;;  %v3181_v23 = vrot.slane %v3180_v15, 1 }
 0x31b   : > { %v3317_v10 = vadd.f32 %v3316_v13, %v3315_v34  ;;  %v3320_v11 = vsel %vm2719_vm9, %v7951_v58, 0.0  ;;  %v3202_v13 = vrot.slane %v3201_v56, 1  ;;  %v3306_v33 = vadd.f32 %v3305_v17, %v3304_v20 }
 0x31c   : > { %v7955_v30 = vpop.eup %5648  ;;  %v3265_v2 = vrot.slane %v3264_v4, 1  ;;  %v3286_v35 = vrot.slane %v3285_v38, 1  ;;  %5650 = vpow2.f32 %v3160_v18  ;;  %v3182_v39 = vadd.f32 %v3181_v23, %v3180_v15 }
 0x31d   : > { %v3319_v32 = vadd.f32 %v3318_v12, %v3317_v10  ;;  %v3322_v34 = vsel %vm2719_vm9, %v7955_v30, 0.0  ;;  %v3223_v10 = vrot.slane %v3222_v52, 1  ;;  %v3244_v12 = vrot.slane %v3243_v54, 1 }
 0x31e   : > { %v3203_v59 = vadd.f32 %v3202_v13, %v3201_v56  ;;  %v3307_v8 = vrot.slane %v3306_v33, 1  ;;  %v3266_v9 = vadd.f32 %v3265_v2, %v3264_v4  ;;  %v3287_v1 = vadd.f32 %v3286_v35, %v3285_v38  ;;  %v8702_v13 = vld [vmem:[#allocation75_spill] sm:$0xff]  ;;  %v8705_v35 = vld [vmem:[#allocation76_spill] sm:$0xff] }
 0x31f   : > { %v3321_v49 = vadd.f32 %v3320_v11, %v3319_v32  ;;  %v3224_v50 = vadd.f32 %v3223_v10, %v3222_v52  ;;  %v3245_v32 = vadd.f32 %v3244_v12, %v3243_v54  ;;  %v8703_v10 = vmov 0.0   ;;  %v8704_v12 = vld [vmem:[#allocation73_spill] sm:$0xff] }
 0x320   : > { %v3338_v51 = vsel %vm1753_vm1, %v3203_v59, %v3182_v39  ;;  %v3308_v17 = vadd.f32 %v3307_v8, %v3306_v33  ;;  %v8707_v39 = vld [vmem:[#allocation81_spill] sm:$0xff] }
 0x321   : > { %v3323_v7 = vadd.f32 %v3322_v34, %v3321_v49  ;;  %v3339_v20 = vsel %vm1756_vm2, %v3224_v50, %v3338_v51  ;;  %v8706_v50 = vld [vmem:[#allocation78_spill] sm:$0xff] }
 0x322   : > { %v3340_v11 = vsel %vm1759_vm3, %v3245_v32, %v3339_v20  ;;  %v8709_v51 = vld [vmem:[#allocation82_spill] sm:$0xff] }
 0x323   : > { %v3324_v14 = vrot.slane %v3323_v7, 4  ;;  %v3341_v56 = vsel %vm1762_vm4, %v3266_v9, %v3340_v11 }
 0x325   : > { %v3325_v48 = vadd.f32 %v3324_v14, %v3323_v7  ;;  %v3342_v14 = vsel %vm1765_vm5, %v3287_v1, %v3341_v56 }
 0x326   : > { %v3343_v15 = vsel %vm1768_vm6, %v3308_v17, %v3342_v14  ;;  %v5651_v54 = vpop.eup %5650  ;;  %v8711_v17 = vld [vmem:[#allocation85_spill] sm:$0xff] }
 0x327   : > { %v3326_v60 = vrot.slane %v3325_v48, 2 }
 0x329   : > { %v3327_v45 = vadd.f32 %v3326_v60, %v3325_v48  ;;  %v8708_v60 = vld [vmem:[#allocation84_spill] sm:$0xff] }
 0x32b   : > { %v3328_v49 = vrot.slane %v3327_v45, 1 }
 0x32d   : > { %v3329_v52 = vadd.f32 %v3328_v49, %v3327_v45  ;;  %v8710_v45 = vld [vmem:[#allocation83_spill] sm:$0xff] }
 0x32f   : > { %v3344_v2 = vsel %vm1771_vm7, %v3329_v52, %v3343_v15 }
 0x330   : > { %v3346_v4 = vadd.f32 %v5651_v54, %v3344_v2  ;;  %v8712_v2 = vld [vmem:[#allocation89_spill] sm:$0xff] }
 0x332   : > { %5652 = vrcp.f32 %v3346_v4 }
 0x33c   : > { %v5653_v38 = vpop.eup %5652 }
 0x33d   : > { %v3502_v34 = vmul.f32 %v5653_v38, %v5651_v54  ;;  %v3356_v18 = vrot.slane %v5653_v38, %v8702_v13  ;;  %v3349_v23 = vcombine.high %v5653_v38, %v5653_v38 }
 0x33f   : > { %5447 = vmatmul.mubr.msk.f32.vlgmr.msra.gmra.mrb[132].mxu1 %vm2719_vm9, %v3502_v34  ;;  %v3372_v7 = vrot.slane %v3356_v18, %v8702_v13  ;;  %v3364_v49 = vcombine.high %v3356_v18, %v3356_v18  ;;  %v3363_v56 = vrot.slane %v3349_v23, %v8702_v13  ;;  %v8713_v34 = vld [vmem:[#allocation91_spill] sm:$0xff] }
 0x340   : > { %5453 = vmatprep.mubr.msk.bf16.mxu1 %vm5725_vm8, %v8703_v10 }
 0x341   : > { %v3401_v33 = vrot.slane %v3372_v7, %v8585_v27  ;;  %v3386_v14 = vrot.slane %v3364_v49, %v8702_v13  ;;  %v3365_v52 = vcombine.high %v3363_v56, %v3363_v56 }
 0x343   : > { %v3438_v59 = vmul.f32 %v8704_v12, %v3401_v33  ;;  %v3439_v48 = vmul.f32 %v8705_v35, %v3401_v33  ;;  %v3440_v8 = vmul.f32 %v8706_v50, %v3401_v33  ;;  %v3441_v32 = vmul.f32 %v8707_v39, %v3401_v33 }
 0x344   : > { %v3442_v9 = vmul.f32 %v8708_v60, %v3401_v33  ;;  %v3443_v1 = vmul.f32 %v8709_v51, %v3401_v33  ;;  %v3444_v20 = vmul.f32 %v8710_v45, %v3401_v33  ;;  %v3445_v11 = vmul.f32 %v8711_v17, %v3401_v33  ;;  %v8717_v60 = vld [vmem:[#allocation96_spill] sm:$0xff] }
 0x345   : > { %5348 = vmatprep.mubr.msk.f32.mxu0 %vm2719_vm9, %v3438_v59  ;;  %v3405_v15 = vrot.slane %v3386_v14, %v8585_v27  ;;  %v7994_v54 = vrot.slane %v3365_v52, %v8702_v13  ;;  %v3394_v50 = vcombine.high %v3372_v7, %v3372_v7 }
 0x346   : > { %5349 = vmatmul.mubr.msk.f32.vlgmr.msra.gmra.mrb[74].mxu0 %vm2719_vm9, %v3439_v48 }
 0x347   : > { %5351 = vmatprep.mubr.msk.f32.mxu0 %vm2719_vm9, %v3440_v8  ;;  %v3446_v4 = vmul.f32 %v8712_v2, %v3405_v15  ;;  %v3397_v38 = vcombine.high %v7994_v54, %v7994_v54  ;;  %v3447_v18 = vmul.f32 %v8713_v34, %v3405_v15  ;;  %v3448_v33 = vmul.f32 %v7551_v16, %v3405_v15  ;;  %v8720_v2 = vld [vmem:[#allocation98_spill] sm:$0xff] }
 0x348   : > { %v3449_v12 = vmul.f32 %v7567_v25, %v3405_v15  ;;  %v3450_v48 = vmul.f32 %v7600_v41, %v3405_v15  ;;  %v8714_v25 = vld [vmem:[#allocation95_spill] sm:$0xff]  ;;  %v3409_v39 = vrot.slane %v3394_v50, %v8585_v27  ;;  %v8716_v41 = vld [vmem:[#allocation94_spill] sm:$0xff] }
 0x349   : > { %v8006_v23 = vrot.slane %v3397_v38, %v8585_v27  ;;  %v3451_v8 = vmul.f32 %v8714_v25, %v3405_v15 }
 0x34a   : > { %5352 = vmatmul.mubr.msk.f32.gmra.mrb[76].mxu0 %vm2719_vm9, %v3441_v32  ;;  %v3455_v7 = vmul.f32 %v8716_v41, %v3409_v39  ;;  %v3458_v51 = vmul.f32 %v7653_v37, %v3409_v39  ;;  %v3460_v45 = vmul.f32 %v7665_v28, %v3409_v39  ;;  %v3461_v17 = vmul.f32 %v7683_v0, %v3409_v39  ;;  %v8719_v37 = vld [vmem:[#allocation97_spill] sm:$0xff]  ;;  %v8730_v41 = vld [vmem:[#allocation100_spill] sm:$0xff] }
 0x34b   : > { %5354 = vmatprep.mubr.msk.f32.mxu0 %vm2719_vm9, %v3442_v9  ;;  %v8013_v59 = vmul.f32 %v7947_v3, %v8006_v23  ;;  %v8017_v35 = vmul.f32 %v7951_v58, %v8006_v23  ;;  %v8021_v16 = vmul.f32 %v7955_v30, %v8006_v23  ;;  %v3452_v3 = vmul.f32 %v7620_v47, %v3405_v15  ;;  %v8715_v30 = vld [vmem:[#allocation93_spill] sm:$0xff] }
 0x34c   : > { %v3453_v58 = vmul.f32 %v7634_v61, %v3405_v15  ;;  %v3454_v32 = vmul.f32 %v8715_v30, %v3409_v39  ;;  %v3456_v9 = vmul.f32 %v8717_v60, %v3409_v39  ;;  %v3457_v47 = vmul.f32 %v7644_v26, %v3409_v39  ;;  %v8718_v26 = vld [vmem:[#allocation86_spill] sm:$0xff]  ;;  %v8728_v30 = vld [vmem:[#allocation71_spill] sm:$0xff] }
 0x34d   : > { %v3459_v61 = vmul.f32 %v7663_v21, %v3409_v39  ;;  %v3379_v0 = vrot.slane %v3363_v56, %v8702_v13  ;;  %v8721_v13 = vld [vmem:[#allocation99_spill] sm:$0xff] }
 0x34e   : > { %5355 = vmatmul.mubr.msk.f32.gmra.mrb[78].mxu0 %vm2719_vm9, %v3443_v1  ;;  %v3396_v1 = vcombine.high %v3386_v14, %v3386_v14 }
 0x34f   : > { %5357 = vmatprep.mubr.msk.f32.mxu0 %vm2719_vm9, %v3444_v20  ;;  %v3395_v25 = vcombine.high %v3379_v0, %v3379_v0 }
 0x350   : > { %v3413_v20 = vrot.slane %v3396_v1, %v8585_v27 }
 0x352   : > { %5358 = vmatmul.mubr.msk.f32.gmra.mrb[80].mxu0 %vm2719_vm9, %v3445_v11  ;;  %v3462_v11 = vmul.f32 %v8718_v26, %v3413_v20  ;;  %v3463_v49 = vmul.f32 %v8719_v37, %v3413_v20  ;;  %v3464_v21 = vmul.f32 %v7704_v29, %v3413_v20  ;;  %v3465_v28 = vmul.f32 %v7734_v46, %v3413_v20  ;;  %v8736_v26 = vld [vmem:[#allocation105_spill] sm:$0xff] }
 0x353   : > { %5360 = vmatprep.mubr.msk.f32.mxu0 %vm2719_vm9, %v3446_v4  ;;  %v3466_v14 = vmul.f32 %v7756_v5, %v3413_v20  ;;  %v3467_v52 = vmul.f32 %v7762_v42, %v3413_v20  ;;  %v3468_v15 = vmul.f32 %v7771_v63, %v3413_v20  ;;  %v3417_v29 = vrot.slane %v3379_v0, %v8585_v27  ;;  %v8722_v4 = vld [vmem:[#allocation90_spill] sm:$0xff]  ;;  %v8143_v37 = vld [vmem:[%s8426_s8] ss:$0 sm:$0xff]  ;;  %v8738_v0 = vld [vmem:[#allocation11_spill] sm:$0xff] }
 0x354   : > { %v3469_v46 = vmul.f32 %v7847_v31, %v3413_v20  ;;  %v8735_v20 = vld [vmem:[#allocation104_spill] sm:$0xff] }
 0x355   : > { %v3470_v5 = vmul.f32 %v8720_v2, %v3417_v29  ;;  %v3471_v56 = vmul.f32 %v8721_v13, %v3417_v29  ;;  %v3472_v42 = vmul.f32 %v8722_v4, %v3417_v29  ;;  %v3473_v63 = vmul.f32 %v7782_v40, %v3417_v29  ;;  %v8723_v40 = vld [vmem:[#allocation65_spill] sm:$0xff]  ;;  %v8740_v2 = vld [vmem:[#allocation10_spill] sm:$0xff] }
 0x356   : > { %5361 = vmatmul.mubr.msk.f32.gmra.mrb[82].mxu0 %vm2719_vm9, %v3447_v18  ;;  %v3474_v38 = vmul.f32 %v7797_v44, %v3417_v29  ;;  %v3475_v31 = vmul.f32 %v7859_v53, %v3417_v29  ;;  %v3476_v34 = vmul.f32 %v7881_v19, %v3417_v29  ;;  %v3421_v18 = vrot.slane %v7994_v54, %v8585_v27  ;;  %v8724_v44 = vld [vmem:[#allocation61_spill] sm:$0xff]  ;;  %v8725_v53 = vld [vmem:[#allocation92_spill] sm:$0xff] }
 0x357   : > { %5363 = vmatprep.mubr.msk.f32.mxu0 %vm2719_vm9, %v3448_v33  ;;  %v3477_v33 = vmul.f32 %v7887_v62, %v3417_v29 }
 0x358   : > { %v3480_v50 = vmul.f32 %v8725_v53, %v3421_v18  ;;  %v3481_v19 = vmul.f32 %v7802_v36, %v3421_v18  ;;  %v3482_v54 = vmul.f32 %v7809_v57, %v3421_v18  ;;  %v3483_v62 = vmul.f32 %v7867_v55, %v3421_v18 }
 0x359   : > { %v3485_v39 = vmul.f32 %v7905_v6, %v3421_v18 }
 0x35a   : > { %5364 = vmatmul.mubr.msk.f32.gmra.mrb[84].mxu0 %vm2719_vm9, %v3449_v12  ;;  %v3478_v12 = vmul.f32 %v8723_v40, %v3421_v18 }
 0x35b   : > { %5366 = vmatprep.mubr.msk.f32.mxu0 %vm2719_vm9, %v3450_v48  ;;  %v3479_v48 = vmul.f32 %v8724_v44, %v3421_v18 }
 0x35e   : > { %5367 = vmatmul.mubr.msk.f32.gmra.mrb[86].mxu0 %vm2719_vm9, %v3451_v8  ;;  %v3484_v8 = vmul.f32 %v7891_v22, %v3421_v18 }
 0x35f   : > { %5369 = vmatprep.mubr.msk.f32.mxu0 %vm2719_vm9, %v3452_v3  ;;  %v3425_v3 = vrot.slane %v3395_v25, %v8585_v27  ;;  %v8727_v27 = vld [vmem:[#allocation59_spill] sm:$0xff] }
 0x361   : > { %v3486_v36 = vmul.f32 %v7820_v43, %v3425_v3  ;;  %v3487_v57 = vmul.f32 %v7825_v24, %v3425_v3  ;;  %v3489_v22 = vmul.f32 %v8727_v27, %v3425_v3  ;;  %v8729_v43 = vld [vmem:[#allocation63_spill] sm:$0xff]  ;;  %v8731_v24 = vld [vmem:[#allocation101_spill] sm:$0xff] }
 0x362   : > { %5370 = vmatmul.mubr.msk.f32.gmra.mrb[88].mxu0 %vm2719_vm9, %v3453_v58  ;;  %v8726_v58 = vld [vmem:[#allocation87_spill] sm:$0xff]  ;;  %v3491_v6 = vmul.f32 %v8729_v43, %v3425_v3  ;;  %v3493_v60 = vmul.f32 %v8731_v24, %v3425_v3  ;;  %v8747_v24 = vld [vmem:[#allocation17_spill] sm:$0xff] }
 0x363   : > { %5372 = vmatprep.mubr.msk.f32.mxu0 %vm2719_vm9, %v3454_v32  ;;  %v3488_v55 = vmul.f32 %v8726_v58, %v3425_v3  ;;  %v3490_v32 = vmul.f32 %v8728_v30, %v3425_v3 }
 0x366   : > { %5373 = vmatmul.mubr.msk.f32.gmra.mrb[90].mxu0 %vm2719_vm9, %v3455_v7  ;;  %v3492_v7 = vmul.f32 %v8730_v41, %v3425_v3 }
 0x367   : > { %5375 = vmatprep.mubr.msk.f32.mxu0 %vm2719_vm9, %v3456_v9  ;;  %v8732_v9 = vld [vmem:[#allocation102_spill] sm:$0xff] }
 0x36a   : > { %5376 = vmatmul.mubr.msk.f32.gmra.mrb[92].mxu0 %vm2719_vm9, %v3457_v47  ;;  %v3494_v47 = vmul.f32 %v8732_v9, %v8006_v23 }
 0x36b   : > { %5378 = vmatprep.mubr.msk.f32.mxu0 %vm2719_vm9, %v3458_v51  ;;  %v8733_v51 = vld [vmem:[#allocation103_spill] sm:$0xff] }
 0x36c   : > { %v3495_v1 = vmul.f32 %v8733_v51, %v8006_v23 }
 0x36e   : > { %5379 = vmatmul.mubr.msk.f32.gmra.mrb[94].mxu0 %vm2719_vm9, %v3459_v61  ;;  %v8734_v61 = vld [vmem:[#allocation88_spill] sm:$0xff] }
 0x36f   : > { %5381 = vmatprep.mubr.msk.f32.mxu0 %vm2719_vm9, %v3460_v45  ;;  %v3496_v45 = vmul.f32 %v8734_v61, %v8006_v23 }
 0x372   : > { %5382 = vmatmul.mubr.msk.f32.gmra.mrb[96].mxu0 %vm2719_vm9, %v3461_v17  ;;  %v3497_v17 = vmul.f32 %v8735_v20, %v8006_v23 }
 0x373   : > { %5384 = vmatprep.mubr.msk.f32.mxu0 %vm2719_vm9, %v3462_v11  ;;  %v3498_v11 = vmul.f32 %v8736_v26, %v8006_v23 }
 0x376   : > { %5385 = vmatmul.mubr.msk.f32.gmra.mrb[98].mxu0 %vm2719_vm9, %v3463_v49  ;;  %v8737_v49 = vld [vmem:[#allocation7_spill] sm:$0xff] }
 0x377   : > { %5387 = vmatprep.mubr.msk.f32.mxu0 %vm2719_vm9, %v3464_v21  ;;  %v1905_v23 = vadd.f32 %v8143_v37, %v8737_v49 }
 0x37a   : > { %5388 = vmatmul.mubr.msk.f32.gmra.mrb[100].mxu0 %vm2719_vm9, %v3465_v28 }
 0x37b   : > { %5390 = vmatprep.mubr.msk.f32.mxu0 %vm2719_vm9, %v3466_v14 }
 0x37e   : > { %5391 = vmatmul.mubr.msk.f32.gmra.mrb[102].mxu0 %vm2719_vm9, %v3467_v52  ;;  %v8739_v52 = vld [vmem:[#allocation9_spill] sm:$0xff] }
 0x37f   : > { %5393 = vmatprep.mubr.msk.f32.mxu0 %vm2719_vm9, %v3468_v15 }
 0x382   : > { %5394 = vmatmul.mubr.msk.f32.gmra.mrb[104].mxu0 %vm2719_vm9, %v3469_v46 }
 0x383   : > { %5396 = vmatprep.mubr.msk.f32.mxu0 %vm2719_vm9, %v3470_v5  ;;  %v1482_v5 = vadd.f32 %v8740_v2, %v8143_v37 }
 0x386   : > { %5397 = vmatmul.mubr.msk.f32.gmra.mrb[106].mxu0 %vm2719_vm9, %v3471_v56  ;;  %v8741_v56 = vld [vmem:[#allocation8_spill] sm:$0xff] }
 0x387   : > { %5399 = vmatprep.mubr.msk.f32.mxu0 %vm2719_vm9, %v3472_v42  ;;  %v1479_v4 = vadd.f32 %v8741_v56, %v8143_v37 }
 0x38a   : > { %5400 = vmatmul.mubr.msk.f32.gmra.mrb[108].mxu0 %vm2719_vm9, %v3473_v63 }
 0x38b   : > { %5402 = vmatprep.mubr.msk.f32.mxu0 %vm2719_vm9, %v3474_v38 }
 0x38e   : > { %5403 = vmatmul.mubr.msk.f32.gmra.mrb[110].mxu0 %vm2719_vm9, %v3475_v31 }
 0x38f   : > { %5405 = vmatprep.mubr.msk.f32.mxu0 %vm2719_vm9, %v3476_v34 }
 0x392   : > { %5406 = vmatmul.mubr.msk.f32.gmra.mrb[112].mxu0 %vm2719_vm9, %v3477_v33  ;;  %v8742_v33 = vld [vmem:[#allocation15_spill] sm:$0xff] }
 0x393   : > { %5408 = vmatprep.mubr.msk.f32.mxu0 %vm2719_vm9, %v3478_v12  ;;  %v1490_v40 = vadd.f32 %v8143_v37, %v8742_v33  ;;  %v8743_v12 = vld [vmem:[#allocation13_spill] sm:$0xff] }
 0x394   : > { %v1487_v44 = vadd.f32 %v8143_v37, %v8743_v12  ;;  %v8752_v12 = vld [vmem:[#allocation22_spill] sm:$0xff] }
 0x396   : > { %5409 = vmatmul.mubr.msk.f32.gmra.mrb[114].mxu0 %vm2719_vm9, %v3479_v48 }
 0x397   : > { %5411 = vmatprep.mubr.msk.f32.mxu0 %vm2719_vm9, %v3480_v50 }
 0x39a   : > { %5412 = vmatmul.mubr.msk.f32.gmra.mrb[116].mxu0 %vm2719_vm9, %v3481_v19 }
 0x39b   : > { %5414 = vmatprep.mubr.msk.f32.mxu0 %vm2719_vm9, %v3482_v54 }
 0x39e   : > { %5415 = vmatmul.mubr.msk.f32.gmra.mrb[118].mxu0 %vm2719_vm9, %v3483_v62 }
 0x39f   : > { %5417 = vmatprep.mubr.msk.f32.mxu0 %vm2719_vm9, %v3484_v8  ;;  %v8744_v8 = vld [vmem:[#allocation14_spill] sm:$0xff] }
 0x3a0   : > { %v1498_v3 = vadd.f32 %v8744_v8, %v8143_v37 }
 0x3a2   : > { %5418 = vmatmul.mubr.msk.f32.gmra.mrb[120].mxu0 %vm2719_vm9, %v3485_v39 }
 0x3a3   : > { %5420 = vmatprep.mubr.msk.f32.mxu0 %vm2719_vm9, %v3486_v36  ;;  %v8745_v36 = vld [vmem:[#allocation12_spill] sm:$0xff] }
 0x3a6   : > { %5421 = vmatmul.mubr.msk.f32.gmra.mrb[122].mxu0 %vm2719_vm9, %v3487_v57  ;;  %v1495_v57 = vadd.f32 %v8745_v36, %v8143_v37 }
 0x3a7   : > { %5423 = vmatprep.mubr.msk.f32.mxu0 %vm2719_vm9, %v3488_v55 }
 0x3aa   : > { %5424 = vmatmul.mubr.msk.f32.gmra.mrb[124].mxu0 %vm2719_vm9, %v3489_v22 }
 0x3ab   : > { %5426 = vmatprep.mubr.msk.f32.mxu0 %vm2719_vm9, %v3490_v32 }
 0x3ae   : > { %5427 = vmatmul.mubr.msk.f32.gmra.mrb[126].mxu0 %vm2719_vm9, %v3491_v6  ;;  %v8746_v6 = vld [vmem:[#allocation19_spill] sm:$0xff] }
 0x3af   : > { %5429 = vmatprep.mubr.msk.f32.mxu0 %vm2719_vm9, %v3492_v7  ;;  %v1506_v41 = vadd.f32 %v8143_v37, %v8746_v6 }
 0x3b2   : > { %5430 = vmatmul.mubr.msk.f32.gmra.mrb[128].mxu0 %vm2719_vm9, %v3493_v60  ;;  %v1503_v60 = vadd.f32 %v8143_v37, %v8747_v24 }
 0x3b3   : > { %5432 = vmatprep.mubr.msk.f32.mxu0 %vm2719_vm9, %v3494_v47 }
 0x3b6   : > { %5433 = vmatmul.mubr.msk.f32.gmra.mrb[130].mxu0 %vm2719_vm9, %v3495_v1 }
 0x3b7   : > { %5435 = vmatprep.mubr.msk.f32.mxu0 %vm2719_vm9, %v3496_v45 }
 0x3ba   : > { %5436 = vmatmul.mubr.msk.f32.gmra.mrb[132].mxu0 %vm2719_vm9, %v3497_v17  ;;  %v8748_v17 = vld [vmem:[#allocation18_spill] sm:$0xff] }
 0x3bb   : > { %5438 = vmatprep.mubr.msk.f32.mxu0 %vm2719_vm9, %v3498_v11  ;;  %v1514_v26 = vadd.f32 %v8748_v17, %v8143_v37 }
 0x3be   : > { %5439 = vmatmul.mubr.msk.f32.gmra.mrb[134].mxu0 %vm2719_vm9, %v8013_v59  ;;  %v1474_v59 = vadd.f32 %v8143_v37, %v8738_v0 }
 0x3bf   : > { %5441 = vmatprep.mubr.msk.f32.mxu0 %vm2719_vm9, %v8017_v35  ;;  %v1471_v35 = vadd.f32 %v8143_v37, %v8739_v52 }
 0x3c2   : > { %5442 = vmatmul.mubr.msk.f32.gmra.mrb[136].mxu0 %vm2719_vm9, %v8021_v16 }
 0x412   : > { %v4154_v21 = vpop.f32.mrb[132].mxu1 }
 0x413   : > { %v8147_v28 = vmul.f32 %v4154_v21, %v1905_v23  ;;  %v5448_v14 = vpop.f32.mrb[133].mxu1  ;;  %v8749_v23 = vld [vmem:[#allocation16_spill] sm:$0xff] }
 0x414   : > { %v1511_v21 = vadd.f32 %v8749_v23, %v8143_v37 }
 0x419   : > { %v5350_v15 = vpop.f32.mrb[74].mxu0 }
 0x41a   : > { %v4159_v16 = vmul.f32 %v5350_v15, %v1474_v59  ;;  %v3766_v29 = vpop.f32.mrb[75].mxu0 }
 0x41b   : > { %v4158_v46 = vmul.f32 %v3766_v29, %v1471_v35  ;;  %v8750_v29 = vld [vmem:[#allocation23_spill] sm:$0xff] }
 0x41c   : > { %v4223_v13 = vsel %vm573_vm0, %v4159_v16, 0.0 }
 0x41d   : > { %v4222_v42 = vsel %vm573_vm0, %v4158_v46, 0.0  ;;  %v5353_v63 = vpop.f32.mrb[76].mxu0  ;;  %v1522_v46 = vadd.f32 %v8143_v37, %v8750_v29 }
 0x41e   : > { %v4224_v38 = vadd.f32 %v4223_v13, %v4222_v42  ;;  %v4161_v31 = vmul.f32 %v5353_v63, %v1482_v5  ;;  %v3776_v34 = vpop.f32.mrb[77].mxu0  ;;  %v5520_v5 = vld [vmem:[%s8427_s9] sm:$0xff]  }
 0x41f   : > { %v4160_v18 = vmul.f32 %v3776_v34, %v1479_v4  ;;  %v8751_v13 = vld [vmem:[#allocation21_spill] sm:$0xff]  ;;  %5450 = vmatpush3.bf16.msra.mxu1 %v5520_v5 }
 0x420   : > { %v4227_v25 = vsel %vm573_vm0, %v4161_v31, 0.0  ;;  %v1519_v56 = vadd.f32 %v8143_v37, %v8751_v13  ;;  %5451 = vmatprep.subr.bf16.mxu1 %v8703_v10  ;;  %v8754_v10 = vld [vmem:[#allocation27_spill] sm:$0xff] }
 0x421   : > { %v4225_v48 = vsel %vm573_vm0, %v4160_v18, 0.0  ;;  %v5356_v53 = vpop.f32.mrb[78].mxu0  ;;  %v5521_v18 = vld [vmem:[%s8427_s9 + $0x8] sm:$0xff]  }
 0x422   : > { %v4226_v50 = vadd.f32 %v4225_v48, %v4224_v38  ;;  %v4163_v19 = vmul.f32 %v5356_v53, %v1490_v40  ;;  %v3786_v54 = vpop.f32.mrb[79].mxu0 }
 0x423   : > { %v4162_v62 = vmul.f32 %v3786_v54, %v1487_v44  ;;  %v1530_v44 = vadd.f32 %v8752_v12, %v8143_v37  ;;  %5452 = vmatpush3.bf16.msra.mxu1 %v5521_v18 }
 0x424   : > { %v4228_v39 = vadd.f32 %v4227_v25, %v4226_v50  ;;  %v4231_v32 = vsel %vm573_vm0, %v4163_v19, 0.0  ;;  %v8753_v50 = vld [vmem:[#allocation20_spill] sm:$0xff] }
 0x425   : > { %v4229_v58 = vsel %vm573_vm0, %v4162_v62, 0.0  ;;  %v5359_v55 = vpop.f32.mrb[80].mxu0  ;;  %v1527_v19 = vadd.f32 %v8753_v50, %v8143_v37 }
 0x426   : > { %v4230_v27 = vadd.f32 %v4229_v58, %v4228_v39  ;;  %v4165_v22 = vmul.f32 %v5359_v55, %v1498_v3  ;;  %v3796_v30 = vpop.f32.mrb[81].mxu0  ;;  %v1538_v58 = vadd.f32 %v8143_v37, %v8754_v10 }
 0x427   : > { %v4164_v43 = vmul.f32 %v3796_v30, %v1495_v57 }
 0x428   : > { %v4232_v7 = vadd.f32 %v4231_v32, %v4230_v27  ;;  %v4235_v45 = vsel %vm573_vm0, %v4165_v22, 0.0  ;;  %v8755_v22 = vld [vmem:[#allocation25_spill] sm:$0xff] }
 0x429   : > { %v4233_v9 = vsel %vm573_vm0, %v4164_v43, 0.0  ;;  %v5362_v47 = vpop.f32.mrb[82].mxu0  ;;  %v1535_v30 = vadd.f32 %v8143_v37, %v8755_v22 }
 0x42a   : > { %v4234_v51 = vadd.f32 %v4233_v9, %v4232_v7  ;;  %v4167_v1 = vmul.f32 %v5362_v47, %v1506_v41  ;;  %v3806_v61 = vpop.f32.mrb[83].mxu0  ;;  %v8756_v47 = vld [vmem:[#allocation26_spill] sm:$0xff] }
 0x42b   : > { %v4166_v20 = vmul.f32 %v3806_v61, %v1503_v60 }
 0x42c   : > { %v4236_v11 = vadd.f32 %v4235_v45, %v4234_v51  ;;  %v4244_v49 = vsel %vm573_vm0, %v4167_v1, 0.0  ;;  %v1546_v51 = vadd.f32 %v8756_v47, %v8143_v37  ;;  %v8757_v45 = vld [vmem:[#allocation24_spill] sm:$0xff] }
 0x42d   : > { %v4243_v14 = vsel %vm573_vm0, %v4166_v20, 0.0  ;;  %v5365_v0 = vpop.f32.mrb[84].mxu0  ;;  %v1543_v20 = vadd.f32 %v8757_v45, %v8143_v37  ;;  %v8765_v47 = vld [vmem:[#allocation32_spill] sm:$0xff] }
 0x42e   : > { %v4237_v59 = vrot.slane %v4236_v11, 4  ;;  %v4245_v52 = vadd.f32 %v4244_v49, %v4243_v14  ;;  %v4169_v35 = vmul.f32 %v5365_v0, %v1514_v26  ;;  %v3816_v15 = vpop.f32.mrb[85].mxu0  ;;  %v8758_v0 = vld [vmem:[#allocation31_spill] sm:$0xff] }
 0x42f   : > { %v4168_v16 = vmul.f32 %v3816_v15, %v1511_v21 }
 0x430   : > { %v4238_v2 = vadd.f32 %v4237_v59, %v4236_v11  ;;  %v4248_v33 = vsel %vm573_vm0, %v4169_v35, 0.0  ;;  %v1554_v59 = vadd.f32 %v8143_v37, %v8758_v0  ;;  %v8759_v35 = vld [vmem:[#allocation29_spill] sm:$0xff] }
 0x431   : > { %v4246_v4 = vsel %vm573_vm0, %v4168_v16, 0.0  ;;  %v5368_v42 = vpop.f32.mrb[86].mxu0  ;;  %v1551_v15 = vadd.f32 %v8143_v37, %v8759_v35 }
 0x432   : > { %v4239_v63 = vrot.slane %v4238_v2, 2  ;;  %v4247_v38 = vadd.f32 %v4246_v4, %v4245_v52  ;;  %v4171_v31 = vmul.f32 %v5368_v42, %v1522_v46  ;;  %v3826_v34 = vpop.f32.mrb[87].mxu0  ;;  %v8760_v42 = vld [vmem:[#allocation30_spill] sm:$0xff] }
 0x433   : > { %v4170_v40 = vmul.f32 %v3826_v34, %v1519_v56  ;;  %v8761_v34 = vld [vmem:[#allocation28_spill] sm:$0xff] }
 0x434   : > { %v4240_v48 = vadd.f32 %v4239_v63, %v4238_v2  ;;  %v4249_v53 = vadd.f32 %v4248_v33, %v4247_v38  ;;  %v4252_v36 = vsel %vm573_vm0, %v4171_v31, 0.0  ;;  %v1562_v63 = vadd.f32 %v8760_v42, %v8143_v37 }
 0x435   : > { %v4250_v54 = vsel %vm573_vm0, %v4170_v40, 0.0  ;;  %v5371_v25 = vpop.f32.mrb[88].mxu0  ;;  %v1559_v18 = vadd.f32 %v8761_v34, %v8143_v37 }
 0x436   : > { %v4241_v62 = vrot.slane %v4240_v48, 1  ;;  %v4251_v8 = vadd.f32 %v4250_v54, %v4249_v53  ;;  %v4173_v3 = vmul.f32 %v5371_v25, %v1530_v44  ;;  %v3836_v39 = vpop.f32.mrb[89].mxu0  ;;  %v8762_v54 = vld [vmem:[#allocation35_spill] sm:$0xff] }
 0x437   : > { %v4172_v57 = vmul.f32 %v3836_v39, %v1527_v19  ;;  %v1570_v25 = vadd.f32 %v8143_v37, %v8762_v54  ;;  %v8763_v39 = vld [vmem:[#allocation33_spill] sm:$0xff] }
 0x438   : > { %v4242_v55 = vadd.f32 %v4241_v62, %v4240_v48  ;;  %v4253_v27 = vadd.f32 %v4252_v36, %v4251_v8  ;;  %v4256_v60 = vsel %vm573_vm0, %v4173_v3, 0.0  ;;  %v4392_v8 = vrot.slane %v8147_v28, 1 }
 0x439   : > { %v4254_v32 = vsel %vm573_vm0, %v4172_v57, 0.0  ;;  %v5374_v43 = vpop.f32.mrb[90].mxu0  ;;  %v1567_v36 = vadd.f32 %v8143_v37, %v8763_v39 }
 0x43a   : > { %v8208_v6 = vadd.f32 %v8147_v28, %v4242_v55  ;;  %v4255_v41 = vadd.f32 %v4254_v32, %v4253_v27  ;;  %v4175_v7 = vmul.f32 %v5374_v43, %v1538_v58  ;;  %v3846_v24 = vpop.f32.mrb[91].mxu0 }
 0x43b   : > { %v4174_v9 = vmul.f32 %v3846_v24, %v1535_v30  ;;  %v8764_v30 = vld [vmem:[#allocation34_spill] sm:$0xff] }
 0x43c   : > { %v4257_v1 = vadd.f32 %v4256_v60, %v4255_v41  ;;  %v4265_v61 = vsel %vm573_vm0, %v4175_v7, 0.0  ;;  %v1578_v32 = vadd.f32 %v8764_v30, %v8143_v37  ;;  %v4415_v7 = vpack.c.bf16 %v8208_v6, %v8208_v6 }
 0x43d   : > { %v4264_v17 = vsel %vm573_vm0, %v4174_v9, 0.0  ;;  %v5377_v26 = vpop.f32.mrb[92].mxu0 }
 0x43e   : > { %v4258_v11 = vrot.slane %v4257_v1, 4  ;;  %v4266_v49 = vadd.f32 %v4265_v61, %v4264_v17  ;;  %v4177_v23 = vmul.f32 %v5377_v26, %v1546_v51  ;;  %v3856_v21 = vpop.f32.mrb[93].mxu0  ;;  %v1575_v51 = vadd.f32 %v8765_v47, %v8143_v37 }
 0x43f   : > { %v4176_v14 = vmul.f32 %v3856_v21, %v1543_v20  ;;  %v4442_v6 = vunpack.c.l.b16 %v4415_v7 }
 0x440   : > { %v4259_v52 = vadd.f32 %v4258_v11, %v4257_v1  ;;  %v4269_v56 = vsel %vm573_vm0, %v4177_v23, 0.0  ;;  %v8766_v23 = vld [vmem:[#allocation39_spill] sm:$0xff] }
 0x441   : > { %v4267_v16 = vsel %vm573_vm0, %v4176_v14, 0.0  ;;  %v5380_v29 = vpop.f32.mrb[94].mxu0  ;;  %v1586_v21 = vadd.f32 %v8143_v37, %v8766_v23 }
 0x442   : > { %v4260_v46 = vrot.slane %v4259_v52, 2  ;;  %v4268_v2 = vadd.f32 %v4267_v16, %v4266_v49  ;;  %v4179_v5 = vmul.f32 %v5380_v29, %v1554_v59  ;;  %v3866_v13 = vpop.f32.mrb[95].mxu0  ;;  %v8767_v59 = vld [vmem:[#allocation37_spill] sm:$0xff] }
 0x443   : > { %v4178_v4 = vmul.f32 %v3866_v13, %v1551_v15 }
 0x444   : > { %v4261_v38 = vadd.f32 %v4260_v46, %v4259_v52  ;;  %v4270_v31 = vadd.f32 %v4269_v56, %v4268_v2  ;;  %v4273_v50 = vsel %vm573_vm0, %v4179_v5, 0.0  ;;  %v1583_v52 = vadd.f32 %v8143_v37, %v8767_v59 }
 0x445   : > { %v4271_v33 = vsel %vm573_vm0, %v4178_v4, 0.0  ;;  %v5383_v40 = vpop.f32.mrb[96].mxu0  ;;  %v8768_v4 = vld [vmem:[#allocation38_spill] sm:$0xff] }
 0x446   : > { %v4262_v12 = vrot.slane %v4261_v38, 1  ;;  %v4272_v44 = vadd.f32 %v4271_v33, %v4270_v31  ;;  %v4181_v48 = vmul.f32 %v5383_v40, %v1562_v63  ;;  %v3876_v53 = vpop.f32.mrb[97].mxu0  ;;  %v1594_v42 = vadd.f32 %v8768_v4, %v8143_v37  ;;  %v8769_v31 = vld [vmem:[#allocation36_spill] sm:$0xff] }
 0x447   : > { %v4180_v19 = vmul.f32 %v3876_v53, %v1559_v18  ;;  %v1591_v34 = vadd.f32 %v8769_v31, %v8143_v37 }
 0x448   : > { %v4263_v62 = vadd.f32 %v4262_v12, %v4261_v38  ;;  %v4274_v3 = vadd.f32 %v4273_v50, %v4272_v44  ;;  %v4277_v43 = vsel %vm573_vm0, %v4181_v48, 0.0 }
 0x449   : > { %v4275_v57 = vsel %vm573_vm0, %v4180_v19, 0.0  ;;  %v5386_v10 = vpop.f32.mrb[98].mxu0  ;;  %v8770_v19 = vld [vmem:[#allocation43_spill] sm:$0xff] }
 0x44a   : > { %v4408_v58 = vadd.f32 %v4392_v8, %v4263_v62  ;;  %v4276_v55 = vadd.f32 %v4275_v57, %v4274_v3  ;;  %v4183_v27 = vmul.f32 %v5386_v10, %v1570_v25  ;;  %v3886_v22 = vpop.f32.mrb[99].mxu0  ;;  %v1602_v54 = vadd.f32 %v8143_v37, %v8770_v19  ;;  %v8771_v3 = vld [vmem:[#allocation41_spill] sm:$0xff] }
 0x44b   : > { %v4182_v41 = vmul.f32 %v3886_v22, %v1567_v36  ;;  %v4393_v62 = vrot.slane %v8147_v28, 2  ;;  %v1599_v39 = vadd.f32 %v8143_v37, %v8771_v3  ;;  %v4394_v19 = vrot.slane %v8147_v28, 3 }
 0x44c   : > { %v4416_v24 = vpack.c.bf16 %v4408_v58, %v4408_v58  ;;  %v4278_v60 = vadd.f32 %v4277_v43, %v4276_v55  ;;  %v4286_v9 = vsel %vm573_vm0, %v4183_v27, 0.0 }
 0x44d   : > { %v4285_v1 = vsel %vm573_vm0, %v4182_v41, 0.0  ;;  %v5389_v61 = vpop.f32.mrb[100].mxu0 }
 0x44e   : > { %v4443_v45 = vunpack.c.l.b16 %v4416_v24  ;;  %v4279_v20 = vrot.slane %v4278_v60, 4  ;;  %v4287_v17 = vadd.f32 %v4286_v9, %v4285_v1  ;;  %v4185_v26 = vmul.f32 %v5389_v61, %v1578_v32  ;;  %v3896_v11 = vpop.f32.mrb[101].mxu0  ;;  %v8772_v32 = vld [vmem:[#allocation42_spill] sm:$0xff] }
 0x44f   : > { %v4184_v49 = vmul.f32 %v3896_v11, %v1575_v51  ;;  %v1610_v43 = vadd.f32 %v8772_v32, %v8143_v37  ;;  %v8774_v11 = vld [vmem:[#allocation47_spill] sm:$0xff] }
 0x450   : > { %v4450_v14 = vrot.slane %v4443_v45, 7  ;;  %v4280_v0 = vadd.f32 %v4279_v20, %v4278_v60  ;;  %v4290_v13 = vsel %vm573_vm0, %v4185_v26, 0.0  ;;  %v8773_v60 = vld [vmem:[#allocation40_spill] sm:$0xff] }
 0x451   : > { %v4288_v35 = vsel %vm573_vm0, %v4184_v49, 0.0  ;;  %v5392_v15 = vpop.f32.mrb[102].mxu0  ;;  %v1607_v9 = vadd.f32 %v8773_v60, %v8143_v37  ;;  %v1618_v49 = vadd.f32 %v8143_v37, %v8774_v11 }
 0x452   : > { %v4451_v16 = vsel %vm1753_vm1, %v4450_v14, %v4442_v6  ;;  %v4281_v29 = vrot.slane %v4280_v0, 2  ;;  %v4289_v46 = vadd.f32 %v4288_v35, %v4287_v17  ;;  %v4187_v2 = vmul.f32 %v5392_v15, %v1586_v21  ;;  %v3906_v5 = vpop.f32.mrb[103].mxu0  ;;  %v8775_v6 = vld [vmem:[#allocation45_spill] sm:$0xff] }
 0x453   : > { %v4186_v56 = vmul.f32 %v3906_v5, %v1583_v52  ;;  %v1615_v14 = vadd.f32 %v8143_v37, %v8775_v6 }
 0x454   : > { %v4282_v63 = vadd.f32 %v4281_v29, %v4280_v0  ;;  %v4291_v38 = vadd.f32 %v4290_v13, %v4289_v46  ;;  %v4294_v53 = vsel %vm573_vm0, %v4187_v2, 0.0  ;;  %v8776_v13 = vld [vmem:[#allocation46_spill] sm:$0xff] }
 0x455   : > { %v4292_v18 = vsel %vm573_vm0, %v4186_v56, 0.0  ;;  %v5395_v33 = vpop.f32.mrb[104].mxu0  ;;  %v1626_v56 = vadd.f32 %v8776_v13, %v8143_v37 }
 0x456   : > { %v4283_v40 = vrot.slane %v4282_v63, 1  ;;  %v4293_v12 = vadd.f32 %v4292_v18, %v4291_v38  ;;  %v4189_v44 = vmul.f32 %v5395_v33, %v1594_v42  ;;  %v3916_v48 = vpop.f32.mrb[105].mxu0 }
 0x457   : > { %v4188_v50 = vmul.f32 %v3916_v48, %v1591_v34  ;;  %v8778_v48 = vld [vmem:[#allocation51_spill] sm:$0xff] }
 0x458   : > { %v4284_v25 = vadd.f32 %v4283_v40, %v4282_v63  ;;  %v4295_v8 = vadd.f32 %v4294_v53, %v4293_v12  ;;  %v4298_v22 = vsel %vm573_vm0, %v4189_v44, 0.0  ;;  %v8777_v63 = vld [vmem:[#allocation44_spill] sm:$0xff]  ;;  %v1634_v53 = vadd.f32 %v8143_v37, %v8778_v48 }
 0x459   : > { %v4296_v36 = vsel %vm573_vm0, %v4188_v50, 0.0  ;;  %v5398_v57 = vpop.f32.mrb[106].mxu0  ;;  %v1623_v38 = vadd.f32 %v8777_v63, %v8143_v37  ;;  %v4395_v48 = vrot.slane %v8147_v28, 4 }
 0x45a   : > { %v4409_v10 = vadd.f32 %v4393_v62, %v4284_v25  ;;  %v4297_v58 = vadd.f32 %v4296_v36, %v4295_v8  ;;  %v4191_v55 = vmul.f32 %v5398_v57, %v1602_v54  ;;  %v3926_v27 = vpop.f32.mrb[107].mxu0  ;;  %v8779_v25 = vld [vmem:[#allocation49_spill] sm:$0xff] }
 0x45b   : > { %v4190_v30 = vmul.f32 %v3926_v27, %v1599_v39  ;;  %v1631_v62 = vadd.f32 %v8143_v37, %v8779_v25  ;;  %v8780_v27 = vld [vmem:[#allocation50_spill] sm:$0xff] }
 0x45c   : > { %v4417_v41 = vpack.c.bf16 %v4409_v10, %v4409_v10  ;;  %v4299_v7 = vadd.f32 %v4298_v22, %v4297_v58  ;;  %v4307_v24 = vsel %vm573_vm0, %v4191_v55, 0.0  ;;  %v1642_v22 = vadd.f32 %v8780_v27, %v8143_v37 }
 0x45d   : > { %v4306_v47 = vsel %vm573_vm0, %v4190_v30, 0.0  ;;  %v5401_v51 = vpop.f32.mrb[108].mxu0 }
 0x45e   : > { %v4444_v1 = vunpack.c.l.b16 %v4417_v41  ;;  %v4300_v61 = vrot.slane %v4299_v7, 4  ;;  %v4308_v45 = vadd.f32 %v4307_v24, %v4306_v47  ;;  %v4193_v20 = vmul.f32 %v5401_v51, %v1610_v43  ;;  %v3936_v17 = vpop.f32.mrb[109].mxu0  ;;  %v8781_v41 = vld [vmem:[#allocation48_spill] sm:$0xff] }
 0x45f   : > { %v4192_v26 = vmul.f32 %v3936_v17, %v1607_v9 }
 0x460   : > { %v4452_v23 = vrot.slane %v4444_v1, 6  ;;  %v4301_v21 = vadd.f32 %v4300_v61, %v4299_v7  ;;  %v4311_v2 = vsel %vm573_vm0, %v4193_v20, 0.0  ;;  %v1639_v7 = vadd.f32 %v8781_v41, %v8143_v37  ;;  %v8782_v20 = vld [vmem:[#allocation55_spill] sm:$0xff] }
 0x461   : > { %v4309_v0 = vsel %vm573_vm0, %v4192_v26, 0.0  ;;  %v5404_v59 = vpop.f32.mrb[110].mxu0  ;;  %v1650_v17 = vadd.f32 %v8143_v37, %v8782_v20 }
 0x462   : > { %v4453_v52 = vsel %vm1756_vm2, %v4452_v23, %v4451_v16  ;;  %v4302_v35 = vrot.slane %v4301_v21, 2  ;;  %v4310_v15 = vadd.f32 %v4309_v0, %v4308_v45  ;;  %v4195_v29 = vmul.f32 %v5404_v59, %v1618_v49  ;;  %v3946_v46 = vpop.f32.mrb[111].mxu0  ;;  %v8783_v49 = vld [vmem:[#allocation53_spill] sm:$0xff] }
 0x463   : > { %v4194_v5 = vmul.f32 %v3946_v46, %v1615_v14  ;;  %v1647_v23 = vadd.f32 %v8143_v37, %v8783_v49 }
 0x464   : > { %v4303_v4 = vadd.f32 %v4302_v35, %v4301_v21  ;;  %v4312_v42 = vadd.f32 %v4311_v2, %v4310_v15  ;;  %v4315_v12 = vsel %vm573_vm0, %v4195_v29, 0.0  ;;  %v8784_v2 = vld [vmem:[#allocation54_spill] sm:$0xff] }
 0x465   : > { %v4313_v31 = vsel %vm573_vm0, %v4194_v5, 0.0  ;;  %v5407_v34 = vpop.f32.mrb[112].mxu0  ;;  %v1658_v5 = vadd.f32 %v8784_v2, %v8143_v37 }
 0x466   : > { %v4304_v18 = vrot.slane %v4303_v4, 1  ;;  %v4314_v16 = vadd.f32 %v4313_v31, %v4312_v42  ;;  %v4197_v33 = vmul.f32 %v5407_v34, %v1626_v56  ;;  %v3956_v40 = vpop.f32.mrb[113].mxu0 }
 0x467   : > { %v4196_v44 = vmul.f32 %v3956_v40, %v1623_v38  ;;  %v8786_v40 = vld [vmem:[#allocation60_spill] sm:$0xff] }
 0x468   : > { %v4305_v50 = vadd.f32 %v4304_v18, %v4303_v4  ;;  %v4316_v54 = vadd.f32 %v4315_v12, %v4314_v16  ;;  %v4319_v58 = vsel %vm573_vm0, %v4197_v33, 0.0  ;;  %v8785_v4 = vld [vmem:[#allocation52_spill] sm:$0xff]  ;;  %v1666_v12 = vadd.f32 %v8143_v37, %v8786_v40 }
 0x469   : > { %v4317_v8 = vsel %vm573_vm0, %v4196_v44, 0.0  ;;  %v5410_v3 = vpop.f32.mrb[114].mxu0  ;;  %v1655_v42 = vadd.f32 %v8785_v4, %v8143_v37  ;;  %v4396_v40 = vrot.slane %v8147_v28, 5 }
 0x46a   : > { %v4410_v39 = vadd.f32 %v4394_v19, %v4305_v50  ;;  %v4318_v36 = vadd.f32 %v4317_v8, %v4316_v54  ;;  %v4199_v57 = vmul.f32 %v5410_v3, %v1634_v53  ;;  %v3966_v10 = vpop.f32.mrb[115].mxu0  ;;  %v8787_v50 = vld [vmem:[#allocation57_spill] sm:$0xff] }
 0x46b   : > { %v4198_v55 = vmul.f32 %v3966_v10, %v1631_v62  ;;  %v1663_v19 = vadd.f32 %v8143_v37, %v8787_v50  ;;  %v8788_v10 = vld [vmem:[#allocation58_spill] sm:$0xff] }
 0x46c   : > { %v4418_v30 = vpack.c.bf16 %v4410_v39, %v4410_v39  ;;  %v4320_v32 = vadd.f32 %v4319_v58, %v4318_v36  ;;  %v4328_v43 = vsel %vm573_vm0, %v4199_v57, 0.0  ;;  %v1674_v58 = vadd.f32 %v8788_v10, %v8143_v37 }
 0x46d   : > { %v4327_v24 = vsel %vm573_vm0, %v4198_v55, 0.0  ;;  %v5413_v60 = vpop.f32.mrb[116].mxu0 }
 0x46e   : > { %v4445_v9 = vunpack.c.l.b16 %v4418_v30  ;;  %v4321_v47 = vrot.slane %v4320_v32, 4  ;;  %v4329_v51 = vadd.f32 %v4328_v43, %v4327_v24  ;;  %v4201_v1 = vmul.f32 %v5413_v60, %v1642_v22  ;;  %v3976_v61 = vpop.f32.mrb[117].mxu0  ;;  %v8789_v30 = vld [vmem:[#allocation56_spill] sm:$0xff] }
 0x46f   : > { %v4200_v45 = vmul.f32 %v3976_v61, %v1639_v7 }
 0x470   : > { %v4454_v26 = vrot.slane %v4445_v9, 5  ;;  %v4322_v11 = vadd.f32 %v4321_v47, %v4320_v32  ;;  %v4332_v29 = vsel %vm573_vm0, %v4201_v1, 0.0  ;;  %v1671_v32 = vadd.f32 %v8789_v30, %v8143_v37  ;;  %v8790_v1 = vld [vmem:[#allocation67_spill] sm:$0xff] }
 0x471   : > { %v4330_v21 = vsel %vm573_vm0, %v4200_v45, 0.0  ;;  %v5416_v6 = vpop.f32.mrb[118].mxu0  ;;  %v1682_v61 = vadd.f32 %v8143_v37, %v8790_v1 }
 0x472   : > { %v4455_v14 = vsel %vm1759_vm3, %v4454_v26, %v4453_v52  ;;  %v4323_v0 = vrot.slane %v4322_v11, 2  ;;  %v4331_v59 = vadd.f32 %v4330_v21, %v4329_v51  ;;  %v4203_v35 = vmul.f32 %v5416_v6, %v1650_v17  ;;  %v3986_v15 = vpop.f32.mrb[119].mxu0  ;;  %v8791_v17 = vld [vmem:[#allocation64_spill] sm:$0xff] }
 0x473   : > { %v4202_v46 = vmul.f32 %v3986_v15, %v1647_v23  ;;  %v1679_v26 = vadd.f32 %v8143_v37, %v8791_v17 }
 0x474   : > { %v4324_v13 = vadd.f32 %v4323_v0, %v4322_v11  ;;  %v4333_v56 = vadd.f32 %v4332_v29, %v4331_v59  ;;  %v4336_v16 = vsel %vm573_vm0, %v4203_v35, 0.0  ;;  %v8792_v29 = vld [vmem:[#allocation66_spill] sm:$0xff] }
 0x475   : > { %v4334_v63 = vsel %vm573_vm0, %v4202_v46, 0.0  ;;  %v5419_v38 = vpop.f32.mrb[120].mxu0  ;;  %v1690_v46 = vadd.f32 %v8792_v29, %v8143_v37 }
 0x476   : > { %v4325_v31 = vrot.slane %v4324_v13, 1  ;;  %v4335_v52 = vadd.f32 %v4334_v63, %v4333_v56  ;;  %v4205_v34 = vmul.f32 %v5419_v38, %v1658_v5  ;;  %v3996_v18 = vpop.f32.mrb[121].mxu0 }
 0x477   : > { %v4204_v33 = vmul.f32 %v3996_v18, %v1655_v42  ;;  %v8794_v18 = vld [vmem:[#allocation72_spill] sm:$0xff] }
 0x478   : > { %v4326_v44 = vadd.f32 %v4325_v31, %v4324_v13  ;;  %v4337_v53 = vadd.f32 %v4336_v16, %v4335_v52  ;;  %v4340_v36 = vsel %vm573_vm0, %v4205_v34, 0.0  ;;  %v8793_v13 = vld [vmem:[#allocation62_spill] sm:$0xff]  ;;  %v1698_v16 = vadd.f32 %v8143_v37, %v8794_v18 }
 0x479   : > { %v4338_v54 = vsel %vm573_vm0, %v4204_v33, 0.0  ;;  %v5422_v25 = vpop.f32.mrb[122].mxu0  ;;  %v1687_v56 = vadd.f32 %v8793_v13, %v8143_v37 }
 0x47a   : > { %v4411_v62 = vadd.f32 %v4395_v48, %v4326_v44  ;;  %v4339_v8 = vadd.f32 %v4338_v54, %v4337_v53  ;;  %v4207_v3 = vmul.f32 %v5422_v25, %v1666_v12  ;;  %v4006_v39 = vpop.f32.mrb[123].mxu0  ;;  %v8795_v44 = vld [vmem:[#allocation69_spill] sm:$0xff] }
 0x47b   : > { %v4206_v57 = vmul.f32 %v4006_v39, %v1663_v19  ;;  %v1695_v48 = vadd.f32 %v8143_v37, %v8795_v44  ;;  %v8796_v39 = vld [vmem:[#allocation70_spill] sm:$0xff] }
 0x47c   : > { %v4419_v55 = vpack.c.bf16 %v4411_v62, %v4411_v62  ;;  %v4341_v27 = vadd.f32 %v4340_v36, %v4339_v8  ;;  %v4349_v22 = vsel %vm573_vm0, %v4207_v3, 0.0  ;;  %v1706_v36 = vadd.f32 %v8796_v39, %v8143_v37 }
 0x47d   : > { %v4348_v43 = vsel %vm573_vm0, %v4206_v57, 0.0  ;;  %v5425_v41 = vpop.f32.mrb[124].mxu0 }
 0x47e   : > { %v4446_v7 = vunpack.c.l.b16 %v4419_v55  ;;  %v4342_v24 = vrot.slane %v4341_v27, 4  ;;  %v4350_v60 = vadd.f32 %v4349_v22, %v4348_v43  ;;  %v4209_v9 = vmul.f32 %v5425_v41, %v1674_v58  ;;  %v4016_v47 = vpop.f32.mrb[125].mxu0  ;;  %v8797_v55 = vld [vmem:[#allocation68_spill] sm:$0xff] }
 0x47f   : > { %v4208_v51 = vmul.f32 %v4016_v47, %v1671_v32 }
 0x480   : > { %v4456_v45 = vrot.slane %v4446_v7, 4  ;;  %v4343_v20 = vadd.f32 %v4342_v24, %v4341_v27  ;;  %v4353_v35 = vsel %vm573_vm0, %v4209_v9, 0.0  ;;  %v1703_v27 = vadd.f32 %v8797_v55, %v8143_v37  ;;  %v8798_v9 = vld [vmem:[#allocation80_spill] sm:$0xff] }
 0x481   : > { %v4351_v11 = vsel %vm573_vm0, %v4208_v51, 0.0  ;;  %v5428_v49 = vpop.f32.mrb[126].mxu0  ;;  %v1714_v47 = vadd.f32 %v8143_v37, %v8798_v9 }
 0x482   : > { %v4344_v23 = vrot.slane %v4343_v20, 2  ;;  %v4352_v21 = vadd.f32 %v4351_v11, %v4350_v60  ;;  %v4211_v6 = vmul.f32 %v5428_v49, %v1682_v61  ;;  %v4026_v0 = vpop.f32.mrb[127].mxu0  ;;  %v4457_v59 = vsel %vm1762_vm4, %v4456_v45, %v4455_v14  ;;  %v8799_v61 = vld [vmem:[#allocation77_spill] sm:$0xff] }
 0x483   : > { %v4210_v15 = vmul.f32 %v4026_v0, %v1679_v26  ;;  %v1711_v45 = vadd.f32 %v8143_v37, %v8799_v61 }
 0x484   : > { %v4345_v2 = vadd.f32 %v4344_v23, %v4343_v20  ;;  %v4354_v5 = vadd.f32 %v4353_v35, %v4352_v21  ;;  %v4357_v14 = vsel %vm573_vm0, %v4211_v6, 0.0  ;;  %v8800_v35 = vld [vmem:[#allocation79_spill] sm:$0xff] }
 0x485   : > { %v4355_v4 = vsel %vm573_vm0, %v4210_v15, 0.0  ;;  %v5431_v42 = vpop.f32.mrb[128].mxu0  ;;  %v1722_v15 = vadd.f32 %v8800_v35, %v8143_v37 }
 0x486   : > { %v4346_v63 = vrot.slane %v4345_v2, 1  ;;  %v4356_v38 = vadd.f32 %v4355_v4, %v4354_v5  ;;  %v4213_v31 = vmul.f32 %v5431_v42, %v1690_v46  ;;  %v4036_v52 = vpop.f32.mrb[129].mxu0 }
 0x487   : > { %v4212_v34 = vmul.f32 %v4036_v52, %v1687_v56 }
 0x488   : > { %v4347_v33 = vadd.f32 %v4346_v63, %v4345_v2  ;;  %v4358_v12 = vadd.f32 %v4357_v14, %v4356_v38  ;;  %v4361_v8 = vsel %vm573_vm0, %v4213_v31, 0.0  ;;  %v8801_v2 = vld [vmem:[#allocation74_spill] sm:$0xff]  ;;  %v4397_v14 = vrot.slane %v8147_v28, 6 }
 0x489   : > { %v4359_v53 = vsel %vm573_vm0, %v4212_v34, 0.0  ;;  %v5434_v50 = vpop.f32.mrb[130].mxu0  ;;  %v1719_v5 = vadd.f32 %v8801_v2, %v8143_v37 }
 0x48a   : > { %v4412_v19 = vadd.f32 %v4396_v40, %v4347_v33  ;;  %v4360_v54 = vadd.f32 %v4359_v53, %v4358_v12  ;;  %v4215_v25 = vmul.f32 %v5434_v50, %v1698_v16  ;;  %v4046_v62 = vpop.f32.mrb[131].mxu0 }
 0x48b   : > { %v4214_v3 = vmul.f32 %v4046_v62, %v1695_v48 }
 0x48c   : > { %v4420_v57 = vpack.c.bf16 %v4412_v19, %v4412_v19  ;;  %v4362_v10 = vadd.f32 %v4361_v8, %v4360_v54  ;;  %v4370_v58 = vsel %vm573_vm0, %v4215_v25, 0.0 }
 0x48d   : > { %v4369_v22 = vsel %vm573_vm0, %v4214_v3, 0.0  ;;  %v5437_v30 = vpop.f32.mrb[132].mxu0  ;;  %v4398_v3 = vrot.slane %v8147_v28, 7 }
 0x48e   : > { %v4447_v32 = vunpack.c.l.b16 %v4420_v57  ;;  %v4363_v43 = vrot.slane %v4362_v10, 4  ;;  %v4371_v41 = vadd.f32 %v4370_v58, %v4369_v22  ;;  %v4217_v7 = vmul.f32 %v5437_v30, %v1706_v36  ;;  %v4056_v24 = vpop.f32.mrb[133].mxu0 }
 0x48f   : > { %v4216_v60 = vmul.f32 %v4056_v24, %v1703_v27  ;;  %v4842_v27 = vld [vmem:[%s8428_s10] ss:$0 sm:$0xff] }
 0x490   : > { %v4458_v51 = vrot.slane %v4447_v32, 3  ;;  %v4364_v1 = vadd.f32 %v4363_v43, %v4362_v10  ;;  %v4374_v6 = vsel %vm573_vm0, %v4217_v7, 0.0 }
 0x491   : > { %v4372_v20 = vsel %vm573_vm0, %v4216_v60, 0.0  ;;  %v5440_v17 = vpop.f32.mrb[134].mxu0 }
 0x492   : > { %v4365_v26 = vrot.slane %v4364_v1, 2  ;;  %v4373_v11 = vadd.f32 %v4372_v20, %v4371_v41  ;;  %v4219_v49 = vmul.f32 %v5440_v17, %v1714_v47  ;;  %v4066_v23 = vpop.f32.mrb[135].mxu0  ;;  %v4459_v21 = vsel %vm1765_vm5, %v4458_v51, %v4457_v59 }
 0x493   : > { %v4218_v0 = vmul.f32 %v4066_v23, %v1711_v45 }
 0x494   : > { %v4366_v29 = vadd.f32 %v4365_v26, %v4364_v1  ;;  %v4375_v46 = vadd.f32 %v4374_v6, %v4373_v11  ;;  %v4378_v59 = vsel %vm573_vm0, %v4219_v49, 0.0 }
 0x495   : > { %v4376_v13 = vsel %vm573_vm0, %v4218_v0, 0.0  ;;  %v5443_v56 = vpop.f32.mrb[136].mxu0 }
 0x496   : > { %v4367_v4 = vrot.slane %v4366_v29, 1  ;;  %v4377_v42 = vadd.f32 %v4376_v13, %v4375_v46  ;;  %v4221_v63 = vmul.f32 %v5443_v56, %v1722_v15  ;;  %v4076_v38 = vpop.f32.mrb[137].mxu0 }
 0x497   : > { %v4220_v31 = vmul.f32 %v4076_v38, %v1719_v5 }
 0x498   : > { %v4368_v52 = vadd.f32 %v4367_v4, %v4366_v29  ;;  %v4379_v34 = vadd.f32 %v4378_v59, %v4377_v42  ;;  %v4382_v37 = vsel %vm573_vm0, %v4221_v63, 0.0 }
 0x499   : > { %v4380_v18 = vsel %vm573_vm0, %v4220_v31, 0.0 }
 0x49a   : > { %v4413_v16 = vadd.f32 %v4397_v14, %v4368_v52  ;;  %v4381_v33 = vadd.f32 %v4380_v18, %v4379_v34 }
 0x49c   : > { %v4421_v40 = vpack.c.bf16 %v4413_v16, %v4413_v16  ;;  %v4383_v12 = vadd.f32 %v4382_v37, %v4381_v33 }
 0x49e   : > { %v4448_v44 = vunpack.c.l.b16 %v4421_v40  ;;  %v4384_v48 = vrot.slane %v4383_v12, 4 }
 0x4a0   : > { %v4460_v53 = vrot.slane %v4448_v44, 2  ;;  %v4385_v50 = vadd.f32 %v4384_v48, %v4383_v12 }
 0x4a2   : > { %v4386_v19 = vrot.slane %v4385_v50, 2  ;;  %v4461_v54 = vsel %vm1768_vm6, %v4460_v53, %v4459_v21 }
 0x4a4   : > { %v4387_v25 = vadd.f32 %v4386_v19, %v4385_v50 }
 0x4a6   : > { %v4388_v62 = vrot.slane %v4387_v25, 1 }
 0x4a8   : > { %v4389_v8 = vadd.f32 %v4388_v62, %v4387_v25 }
 0x4aa   : > { %v4414_v39 = vadd.f32 %v4398_v3, %v4389_v8 }
 0x4ac   : > { %v4422_v36 = vpack.c.bf16 %v4414_v39, %v4414_v39 }
 0x4ae   : > { %v4449_v57 = vunpack.c.l.b16 %v4422_v36 }
 0x4b0   : > { %v4462_v10 = vrot.slane %v4449_v57, 1 }
 0x4b2   : > { %v4463_v58 = vsel %vm1771_vm7, %v4462_v10, %v4461_v54 }
 0x4b3   : > { %v4464_v55 = vpack.c.b16 %v4463_v58, %v4463_v58 }
 0x4b5   : > { %5454 = vmatmul.mubr.msk.bf16.vlgmr.msra.gmra.mrb[136].mxu1 %vm573_vm0, %v4464_v55 }
 0x588   : > { %v4514_v28 = vpop.f32.mrb[136].mxu1 }
 0x589   : > { %v4515_v22 = vadd.f32 %v4842_v27, %v4514_v28  ;;  %v5455_v30 = vpop.f32.mrb[137].mxu1 }
 0x58a   : > { %v4517_v32 = vpop.f32.mrb[138].mxu1 }
 0x58b   : > { %4520 = vst [vmem:[%s436_s20] sm:$0xff] %v4515_v22  ;;  %v5456_v43 = vpop.f32.mrb[139].mxu1 }
 0x58c   : > { %5673 = shalt.err (!%p5670_p3)
}
 0x58d   : > { %s5674_s24 = scalar_lea.hbm %s8376_s17, 128  ;;  %s5678_s23 = scalar_lea.hbm %s8431_s13, 256 }
 0x58e   : > { %p5675_p4 = scmp.ne.s32.totalorder %s8376_s17, %s5674_s24  ;;  %p5679_p9 = scmp.lt.u32.totalorder %s8376_s17, %s8431_s13 }
 0x58f   : > { %p5680_p10 = scmp.lt.u32.totalorder %s5678_s23, %s5674_s24  ;;  %p5682_p12 = scmp.lt.u32.totalorder %s5674_s24, %s8376_s17 }
 0x590   : > { %p5676_p7 = pnand %p5675_p4, %p5837_p5 }
 0x591   : > { %p5681_p11 = por %p5680_p10, %p5679_p9 }
 0x592   : > { %p5677_p8 = pneg %p5676_p7 }
 0x593   : > { %p5683_p13 = por %p5682_p12, %p5681_p11 }
 0x595   : > { %p5684_p0 = pnand %p5683_p13, %p5677_p8 }
 0x597   : > { %5687 = shalt.err (!%p5684_p0)
}
 0x598   : > { %5471 = dma.vmem_to_hbm [thread:$0]  (%p5837_p5), %s8378_s21, 128, %s8376_s17, %s4522_s22  }
 0x599 PF: > { %p5477_p1 = scmp.ge.s32.totalorder %s5722_s28, 2  ;;  %s4547_s29 = sand.u32 1, %s5710_s25  }
 0x59a   : > { %s4548_s30 = scalar_lea.sflag [#allocation3], %s4547_s29 }
 0x59b   : > { %p5474_p2 = pnand %p5477_p1, %p5841_p6 }
 0x59d   : > { %5705 = dma.done.wait (!%p5474_p2), %s4548_s30, 128  }
 0x59e   : > { %5707 = vsyncadd (!%p5474_p2), %s4548_s30, 4294967168  ;;  %s8802_s15 = sld [smem:[#allocation5_spill]]  ;;  %s8803_s27 = sld [smem:[#allocation6_spill]] }
 0x59f   : > { %p23_p3 = scmp.ge.s32.totalorder %s5824_s14, 4   ;;  %s8804_s25 = smov %s5714_s26 }
 0x5a0   : > { %s8806_s28 = smov %s5824_s14 }
 0x5a1   :  { %25 = sbr.rel (!%p23_p3) target bundleno = 5 (0x5), region = 107 }
 0x5a4   : > { %s8805_s26 = smov %s8802_s15 }
 0x5a8   :  { %4553 = vsyncpa [#allocation3], 1 }
 0x5a9   :  { %4555 = vsyncpa [#allocation3 + $0x1], 1 }

</bundles_post_ra>
